<compile_context>
chip_gen: v7x
topology: tpu7x:2x2x1
jax: 0.10.0
libtpu: 0.0.40
codegen_flags: <defaults>
</compile_context>

<pallas_src>
import functools

import jax
import jax.numpy as jnp
from jax import lax
from jax.experimental import pallas as pl
from jax.experimental.pallas import tpu as pltpu


def change_contrast(X, factor):
    """JAX port of the torch change_contrast helper (parameter-setup glue)."""
    if X.ndim == 4:
        axes = (-3, -2, -1)
    elif X.ndim == 5:
        axes = (-4, -2, -1)
    else:
        raise ValueError("Wrong dimensionality of input tensor")
    mean = jnp.mean(X, axis=axes, keepdims=True)
    return X * factor + (1.0 - factor) * mean


def _round_up(x, m):
    return ((x + m - 1) // m) * m


def _pick_row_tile(oh, ow):
    """Largest divisor TOH of OH with TOH*OW <= 512 (targets MXU-friendly M)."""
    best = 1
    for t in range(1, oh + 1):
        if oh % t:
            continue
        if t * ow <= 512:
            best = t
    return best


def _conv_im2col_kernel(x_ref, w_ref, o_ref, patches_ref, *,
                        kh, kw, toh, ow, stride, cp):
    # x_ref:       (1, Hp, Wp, Cp)      bf16  full padded image for this batch
    # w_ref:       (kh*kw*Cp, Coutp)    bf16  im2col-flattened weights (pre-scaled by 1/n)
    # o_ref:       (1, toh, ow, Coutp)  f32   lane-dense output row tile
    # patches_ref: (toh*ow, kh*kw*Cp)   bf16  VMEM scratch: im2col matrix
    r = pl.program_id(1)
    row0 = r * (toh * stride)
    if (toh * stride) % 8 == 0:
        row0 = pl.multiple_of(row0, 8)

    # Build the im2col matrix: each tap contributes a lane-aligned 128-wide slab.
    for i in range(kh):
        if stride == 1:
            row_ds = pl.ds(row0 + i, toh)
        else:
            row_ds = pl.ds(row0 + i, toh, stride=stride)
        for j in range(kw):
            if stride == 1:
                col_ds = pl.ds(j, ow)
            else:
                col_ds = pl.ds(j, ow, stride=stride)
            tap = i * kw + j
            patch = x_ref[0, row_ds, col_ds, :]                     # (toh, ow, cp)
            patches_ref[:, tap * cp:(tap + 1) * cp] = patch.reshape(toh * ow, cp)

    # Single MXU matmul: (toh*ow, kh*kw*cp) x (kh*kw*cp, coutp), f32 accumulate.
    acc = jnp.dot(patches_ref[...], w_ref[...],
                  preferred_element_type=jnp.float32)               # (toh*ow, coutp)
    o_ref[0] = acc.reshape(toh, ow, o_ref.shape[-1]).astype(o_ref.dtype)


def conv2d_im2col_pallas(x_nhwc, w_flat, *, kh, kw, stride, oh, ow):
    """VALID 2D conv (NHWC bf16 x flattened HWIO bf16 -> NHWC f32) via im2col+MXU."""
    B, Hp, Wp, Cp = x_nhwc.shape
    K, Coutp = w_flat.shape
    assert K == kh * kw * Cp
    toh = _pick_row_tile(oh, ow)
    grid = (B, oh // toh)
    body = functools.partial(_conv_im2col_kernel, kh=kh, kw=kw, toh=toh, ow=ow,
                             stride=stride, cp=Cp)
    return pl.pallas_call(
        body,
        out_shape=jax.ShapeDtypeStruct((B, oh, ow, Coutp), jnp.float32),
        grid=grid,
        in_specs=[
            # Full padded image per batch; constant across row tiles -> DMA'd once.
            pl.BlockSpec((1, Hp, Wp, Cp), lambda b, r: (b, 0, 0, 0)),
            # Whole (small) weight matrix, resident across the grid.
            pl.BlockSpec((K, Coutp), lambda b, r: (0, 0)),
        ],
        out_specs=pl.BlockSpec((1, toh, ow, Coutp), lambda b, r: (b, r, 0, 0)),
        scratch_shapes=[pltpu.VMEM((toh * ow, K), jnp.bfloat16)],
        compiler_params=pltpu.CompilerParams(
            dimension_semantics=("parallel", "parallel"),
            vmem_limit_bytes=32 * 1024 * 1024,
        ),
    )(x_nhwc, w_flat)


def lifted_conv_forward(X, kernel, cs, stride=1, padding=0, *, use_pallas=True):
    """Forward of LiftedConv.

    X:      (ib, cin, d, ih, iw) with d == len(cs)   (torch 5-D input convention)
    kernel: (cout, cin, size, size)                  (nn.Parameter shape)
    returns (ib, cout, d, oh, ow)
    """
    cout = kernel.shape[0]
    n = len(cs)

    # --- lift the kernel (tiny parameter glue); fold the final /n into the weights ---
    lifted_kernel = jnp.stack(
        [change_contrast(kernel, c) for c in cs[::-1]], axis=2)        # (cout, cin, n, k, k)
    k_stack = jnp.concatenate(
        [change_contrast(lifted_kernel, c) for c in cs], axis=0)       # (cout*n, cin, n, k, k)
    kcout, kcin, kd, kh, kw = k_stack.shape
    k_stack = k_stack.reshape(kcout, kcin * kd, kh, kw) / n            # OIHW, pre-scaled by 1/n

    # --- flatten + pad the input with its global mean (matches F.pad value=fX.mean()) ---
    ib, icin, idim, ih, iw = X.shape
    cin_tot = icin * idim
    cout_tot = kcout
    fX = X.reshape(ib, cin_tot, ih, iw)
    pad_val = jnp.mean(fX)
    fX = jnp.pad(
        fX, ((0, 0), (0, 0), (padding, padding), (padding, padding)),
        mode="constant", constant_values=pad_val)
    Hp, Wp = ih + 2 * padding, iw + 2 * padding
    oh = (Hp - kh) // stride + 1
    ow = (Wp - kw) // stride + 1

    # bf16 activations / weights, f32 accumulation inside the kernel.
    fX = fX.astype(jnp.bfloat16)
    kb = k_stack.astype(jnp.bfloat16)

    if use_pallas:
        cp = _round_up(cin_tot, 128)
        coutp = _round_up(cout_tot, 128)
        x_nhwc = jnp.transpose(fX, (0, 2, 3, 1))                       # NCHW -> NHWC
        x_nhwc = jnp.pad(x_nhwc, ((0, 0), (0, 0), (0, 0), (0, cp - cin_tot)))
        w_hwio = jnp.transpose(kb, (2, 3, 1, 0))                       # OIHW -> HWIO
        w_hwio = jnp.pad(w_hwio, ((0, 0), (0, 0),
                                  (0, cp - cin_tot), (0, coutp - cout_tot)))
        w_flat = w_hwio.reshape(kh * kw * cp, coutp)
        out_nhwc = conv2d_im2col_pallas(x_nhwc, w_flat, kh=kh, kw=kw,
                                        stride=stride, oh=oh, ow=ow)   # (B, oh, ow, coutp)
        # Slice off padded lanes and collapse the reshape/transpose chain.
        out = out_nhwc[..., :cout_tot].reshape(ib, oh, ow, idim, cout)
        out = jnp.transpose(out, (0, 4, 3, 1, 2))                      # (ib, cout, n, oh, ow)
    else:
        # pure-JAX reference path (same bf16-in / f32-acc semantics; verification only)
        out = lax.conv_general_dilated(
            fX, kb, window_strides=(stride, stride), padding="VALID",
            dimension_numbers=("NCHW", "OIHW", "NCHW"),
            preferred_element_type=jnp.float32)
        out = out.reshape(ib, idim, cout, oh, ow)
        out = jnp.transpose(out, (0, 2, 1, 3, 4))                      # (ib, cout, n, oh, ow)
    return out


if __name__ == "__main__":
    key = jax.random.PRNGKey(0)
    k_x, k_w = jax.random.split(key)

    # Small shapes consistent with the module: X is 5-D (ib, cin, d=len(cs), h, w).
    ib, cin, cout, size = 2, 3, 4, 3
    cs = [1.0, 0.5]
    n = len(cs)
    h = w = 16
    stride, padding = 1, 1

    X = jax.random.normal(k_x, (ib, cin, n, h, w), dtype=jnp.float32)
    weight = jax.random.normal(k_w, (cout, cin, size, size), dtype=jnp.float32)

    out = lifted_conv_forward(X, weight, cs, stride=stride, padding=padding, use_pallas=True)
    out = jax.block_until_ready(out)

    ref = lifted_conv_forward(X, weight, cs, stride=stride, padding=padding, use_pallas=False)
    ref = jax.block_until_ready(ref)

    assert out.shape == (ib, cout, n, h, w), out.shape
    max_err = float(jnp.max(jnp.abs(out - ref)))
    assert jnp.allclose(out, ref, atol=1e-2, rtol=1e-2), max_err
    print("KERNEL_OK")
</pallas_src>

<mosaic_0001>
module attributes {stable_mosaic.version = 11 : i64} {
  func.func @_conv_im2col_kernel(%arg0: i32, %arg1: i32, %arg2: memref<1x18x18x128xbf16, #tpu.memory_space<vmem>>, %arg3: memref<1152x128xbf16, #tpu.memory_space<vmem>>, %arg4: memref<1x16x16x128xf32, #tpu.memory_space<vmem>>, %arg5: memref<256x1152xbf16, #tpu.memory_space<vmem>>) attributes {dimension_semantics = [#tpu.dimension_semantics<parallel>, #tpu.dimension_semantics<parallel>], iteration_bounds = array<i64: 2, 1>, scalar_prefetch = 0 : i64, scratch_operands = 1 : i64, tpu.core_type = #tpu.core_type<tc>, window_params = [{transform_indices = @transform_0, window_bounds = array<i64: 1, 18, 18, 128>}, {pipeline_mode = #tpu.pipeline_mode<synchronous>, transform_indices = @transform_1, window_bounds = array<i64: 1152, 128>}, {transform_indices = @transform_2, window_bounds = array<i64: 1, 16, 16, 128>}]} {
    %c16_i32 = arith.constant 16 : i32
    %0 = arith.muli %arg1, %c16_i32 : i32
    %1 = tpu.assume_multiple %0, 8 : i32
    %c0_i32 = arith.constant 0 : i32
    %2 = arith.addi %1, %c0_i32 : i32
    %c0 = arith.constant 0 : index
    %3 = arith.index_cast %2 : i32 to index
    %c0_0 = arith.constant 0 : index
    %c0_1 = arith.constant 0 : index
    %4 = vector.load %arg2[%c0, %3, %c0_0, %c0_1] : memref<1x18x18x128xbf16, #tpu.memory_space<vmem>>, vector<1x16x16x128xbf16>
    %5 = vector.shape_cast %4 : vector<1x16x16x128xbf16> to vector<16x16x128xbf16>
    %6 = vector.shape_cast %5 : vector<16x16x128xbf16> to vector<256x128xbf16>
    %c0_2 = arith.constant 0 : index
    %c0_3 = arith.constant 0 : index
    %7 = vector.load %arg5[%c0_2, %c0_3] : memref<256x1152xbf16, #tpu.memory_space<vmem>>, vector<256x128xbf16>
    tpu.vector_store %arg5[%c0_2, %c0_3], %6 {strides = array<i32>} : memref<256x1152xbf16, #tpu.memory_space<vmem>>, vector<256x128xbf16>,
    %c0_4 = arith.constant 0 : index
    %8 = arith.index_cast %2 : i32 to index
    %c1 = arith.constant 1 : index
    %c0_5 = arith.constant 0 : index
    %9 = vector.load %arg2[%c0_4, %8, %c1, %c0_5] : memref<1x18x18x128xbf16, #tpu.memory_space<vmem>>, vector<1x16x16x128xbf16>
    %10 = vector.shape_cast %9 : vector<1x16x16x128xbf16> to vector<16x16x128xbf16>
    %11 = vector.shape_cast %10 : vector<16x16x128xbf16> to vector<256x128xbf16>
    %c0_6 = arith.constant 0 : index
    %c128 = arith.constant 128 : index
    %12 = vector.load %arg5[%c0_6, %c128] : memref<256x1152xbf16, #tpu.memory_space<vmem>>, vector<256x128xbf16>
    tpu.vector_store %arg5[%c0_6, %c128], %11 {strides = array<i32>} : memref<256x1152xbf16, #tpu.memory_space<vmem>>, vector<256x128xbf16>,
    %c0_7 = arith.constant 0 : index
    %13 = arith.index_cast %2 : i32 to index
    %c2 = arith.constant 2 : index
    %c0_8 = arith.constant 0 : index
    %14 = vector.load %arg2[%c0_7, %13, %c2, %c0_8] : memref<1x18x18x128xbf16, #tpu.memory_space<vmem>>, vector<1x16x16x128xbf16>
    %15 = vector.shape_cast %14 : vector<1x16x16x128xbf16> to vector<16x16x128xbf16>
    %16 = vector.shape_cast %15 : vector<16x16x128xbf16> to vector<256x128xbf16>
    %c0_9 = arith.constant 0 : index
    %c256 = arith.constant 256 : index
    %17 = vector.load %arg5[%c0_9, %c256] : memref<256x1152xbf16, #tpu.memory_space<vmem>>, vector<256x128xbf16>
    tpu.vector_store %arg5[%c0_9, %c256], %16 {strides = array<i32>} : memref<256x1152xbf16, #tpu.memory_space<vmem>>, vector<256x128xbf16>,
    %c1_i32 = arith.constant 1 : i32
    %18 = arith.addi %1, %c1_i32 : i32
    %c0_10 = arith.constant 0 : index
    %19 = arith.index_cast %18 : i32 to index
    %c0_11 = arith.constant 0 : index
    %c0_12 = arith.constant 0 : index
    %20 = vector.load %arg2[%c0_10, %19, %c0_11, %c0_12] : memref<1x18x18x128xbf16, #tpu.memory_space<vmem>>, vector<1x16x16x128xbf16>
    %21 = vector.shape_cast %20 : vector<1x16x16x128xbf16> to vector<16x16x128xbf16>
    %22 = vector.shape_cast %21 : vector<16x16x128xbf16> to vector<256x128xbf16>
    %c0_13 = arith.constant 0 : index
    %c384 = arith.constant 384 : index
    %23 = vector.load %arg5[%c0_13, %c384] : memref<256x1152xbf16, #tpu.memory_space<vmem>>, vector<256x128xbf16>
    tpu.vector_store %arg5[%c0_13, %c384], %22 {strides = array<i32>} : memref<256x1152xbf16, #tpu.memory_space<vmem>>, vector<256x128xbf16>,
    %c0_14 = arith.constant 0 : index
    %24 = arith.index_cast %18 : i32 to index
    %c1_15 = arith.constant 1 : index
    %c0_16 = arith.constant 0 : index
    %25 = vector.load %arg2[%c0_14, %24, %c1_15, %c0_16] : memref<1x18x18x128xbf16, #tpu.memory_space<vmem>>, vector<1x16x16x128xbf16>
    %26 = vector.shape_cast %25 : vector<1x16x16x128xbf16> to vector<16x16x128xbf16>
    %27 = vector.shape_cast %26 : vector<16x16x128xbf16> to vector<256x128xbf16>
    %c0_17 = arith.constant 0 : index
    %c512 = arith.constant 512 : index
    %28 = vector.load %arg5[%c0_17, %c512] : memref<256x1152xbf16, #tpu.memory_space<vmem>>, vector<256x128xbf16>
    tpu.vector_store %arg5[%c0_17, %c512], %27 {strides = array<i32>} : memref<256x1152xbf16, #tpu.memory_space<vmem>>, vector<256x128xbf16>,
    %c0_18 = arith.constant 0 : index
    %29 = arith.index_cast %18 : i32 to index
    %c2_19 = arith.constant 2 : index
    %c0_20 = arith.constant 0 : index
    %30 = vector.load %arg2[%c0_18, %29, %c2_19, %c0_20] : memref<1x18x18x128xbf16, #tpu.memory_space<vmem>>, vector<1x16x16x128xbf16>
    %31 = vector.shape_cast %30 : vector<1x16x16x128xbf16> to vector<16x16x128xbf16>
    %32 = vector.shape_cast %31 : vector<16x16x128xbf16> to vector<256x128xbf16>
    %c0_21 = arith.constant 0 : index
    %c640 = arith.constant 640 : index
    %33 = vector.load %arg5[%c0_21, %c640] : memref<256x1152xbf16, #tpu.memory_space<vmem>>, vector<256x128xbf16>
    tpu.vector_store %arg5[%c0_21, %c640], %32 {strides = array<i32>} : memref<256x1152xbf16, #tpu.memory_space<vmem>>, vector<256x128xbf16>,
    %c2_i32 = arith.constant 2 : i32
    %34 = arith.addi %1, %c2_i32 : i32
    %c0_22 = arith.constant 0 : index
    %35 = arith.index_cast %34 : i32 to index
    %c0_23 = arith.constant 0 : index
    %c0_24 = arith.constant 0 : index
    %36 = vector.load %arg2[%c0_22, %35, %c0_23, %c0_24] : memref<1x18x18x128xbf16, #tpu.memory_space<vmem>>, vector<1x16x16x128xbf16>
    %37 = vector.shape_cast %36 : vector<1x16x16x128xbf16> to vector<16x16x128xbf16>
    %38 = vector.shape_cast %37 : vector<16x16x128xbf16> to vector<256x128xbf16>
    %c0_25 = arith.constant 0 : index
    %c768 = arith.constant 768 : index
    %39 = vector.load %arg5[%c0_25, %c768] : memref<256x1152xbf16, #tpu.memory_space<vmem>>, vector<256x128xbf16>
    tpu.vector_store %arg5[%c0_25, %c768], %38 {strides = array<i32>} : memref<256x1152xbf16, #tpu.memory_space<vmem>>, vector<256x128xbf16>,
    %c0_26 = arith.constant 0 : index
    %40 = arith.index_cast %34 : i32 to index
    %c1_27 = arith.constant 1 : index
    %c0_28 = arith.constant 0 : index
    %41 = vector.load %arg2[%c0_26, %40, %c1_27, %c0_28] : memref<1x18x18x128xbf16, #tpu.memory_space<vmem>>, vector<1x16x16x128xbf16>
    %42 = vector.shape_cast %41 : vector<1x16x16x128xbf16> to vector<16x16x128xbf16>
    %43 = vector.shape_cast %42 : vector<16x16x128xbf16> to vector<256x128xbf16>
    %c0_29 = arith.constant 0 : index
    %c896 = arith.constant 896 : index
    %44 = vector.load %arg5[%c0_29, %c896] : memref<256x1152xbf16, #tpu.memory_space<vmem>>, vector<256x128xbf16>
    tpu.vector_store %arg5[%c0_29, %c896], %43 {strides = array<i32>} : memref<256x1152xbf16, #tpu.memory_space<vmem>>, vector<256x128xbf16>,
    %c0_30 = arith.constant 0 : index
    %45 = arith.index_cast %34 : i32 to index
    %c2_31 = arith.constant 2 : index
    %c0_32 = arith.constant 0 : index
    %46 = vector.load %arg2[%c0_30, %45, %c2_31, %c0_32] : memref<1x18x18x128xbf16, #tpu.memory_space<vmem>>, vector<1x16x16x128xbf16>
    %47 = vector.shape_cast %46 : vector<1x16x16x128xbf16> to vector<16x16x128xbf16>
    %48 = vector.shape_cast %47 : vector<16x16x128xbf16> to vector<256x128xbf16>
    %c0_33 = arith.constant 0 : index
    %c1024 = arith.constant 1024 : index
    %49 = vector.load %arg5[%c0_33, %c1024] : memref<256x1152xbf16, #tpu.memory_space<vmem>>, vector<256x128xbf16>
    tpu.vector_store %arg5[%c0_33, %c1024], %48 {strides = array<i32>} : memref<256x1152xbf16, #tpu.memory_space<vmem>>, vector<256x128xbf16>,
    %c0_34 = arith.constant 0 : index
    %c0_35 = arith.constant 0 : index
    %50 = vector.load %arg5[%c0_34, %c0_35] : memref<256x1152xbf16, #tpu.memory_space<vmem>>, vector<256x1152xbf16>
    %c0_36 = arith.constant 0 : index
    %c0_37 = arith.constant 0 : index
    %51 = vector.load %arg3[%c0_36, %c0_37] : memref<1152x128xbf16, #tpu.memory_space<vmem>>, vector<1152x128xbf16>
    %cst = arith.constant dense<0.000000e+00> : vector<256x128xf32>
    %52 = tpu.matmul %50, %51, %cst {dimension_numbers = #tpu.dot_dimension_numbers<[1], [0], [0], [1], [0, 0, 1, 1], [], []>} : vector<256x1152xbf16>, vector<1152x128xbf16>, vector<256x128xf32> -> vector<256x128xf32>
    %53 = vector.shape_cast %52 : vector<256x128xf32> to vector<16x16x128xf32>
    %c0_38 = arith.constant 0 : index
    %c0_39 = arith.constant 0 : index
    %c0_40 = arith.constant 0 : index
    %c0_41 = arith.constant 0 : index
    %54 = vector.load %arg4[%c0_38, %c0_39, %c0_40, %c0_41] : memref<1x16x16x128xf32, #tpu.memory_space<vmem>>, vector<1x16x16x128xf32>
    %55 = vector.shape_cast %54 : vector<1x16x16x128xf32> to vector<16x16x128xf32>
    %56 = vector.shape_cast %53 : vector<16x16x128xf32> to vector<1x16x16x128xf32>
    tpu.vector_store %arg4[%c0_38, %c0_39, %c0_40, %c0_41], %56 {strides = array<i32>} : memref<1x16x16x128xf32, #tpu.memory_space<vmem>>, vector<1x16x16x128xf32>,
    return
  }
  func.func @transform_0(%arg0: i32, %arg1: i32) -> (i32, i32, i32, i32) {
    %c0_i32 = arith.constant 0 : i32
    %c0_i32_0 = arith.constant 0 : i32
    %c0_i32_1 = arith.constant 0 : i32
    %c0_i32_2 = arith.constant 0 : i32
    return %arg0, %c0_i32, %c0_i32_0, %c0_i32_1 : i32, i32, i32, i32
  }
  func.func @transform_1(%arg0: i32, %arg1: i32) -> (i32, i32) {
    %c0_i32 = arith.constant 0 : i32
    %c0_i32_0 = arith.constant 0 : i32
    %c0_i32_1 = arith.constant 0 : i32
    return %c0_i32, %c0_i32_0 : i32, i32
  }
  func.func @transform_2(%arg0: i32, %arg1: i32) -> (i32, i32, i32, i32) {
    %c0_i32 = arith.constant 0 : i32
    %c0_i32_0 = arith.constant 0 : i32
    %c0_i32_1 = arith.constant 0 : i32
    return %arg0, %arg1, %c0_i32, %c0_i32_0 : i32, i32, i32, i32
  }
}

</mosaic_0001>

<bundles_post_ra>
// kernel: tpu_custom_call.1
= control target key start
LH: loop header
LB: loop body
LE: loop exit
PB: predicated region body
PF: predicated region fallthrough
CT: control target
= control target key end

     0   :  { %7 = vsyncpa [#allocation4], 0  ;;  %s7723_s0 = inlined_call_operand.vmem [shape: bf16[2,18,18,128], index: 0, kind: input, shape index: {}]   ;;  %s7724_s1 = inlined_call_operand.vmem [shape: bf16[1152,128], index: 1, kind: input, shape index: {}]   ;;  %s7725_s2 = inlined_call_operand.hbm [shape: f32[2,16,16,128], index: 2, kind: output, shape index: {}]  }
   0x1   :  { %9 = vsyncpa [#allocation4 + $0x1], 0  ;;  %s6010_s9 = smov 0   ;;  %s6012_s10 = smov 0  }
   0x2   :  { %s6014_s11 = smov 0   ;;  %s6016_s12 = smov 0  }
   0x3   :  { %s6018_s13 = smov 0   ;;  %s6020_s14 = smov 0  }
   0x4 LB: > { %s4665_s15 = sadd.s32 4294967295, %s5990_s14   ;;  %s4666_s16 = sadd.s32 4294967294, %s5990_s14   ;;  %s5990_s14 = sphi %s6020_s14, %s15_s14   ;;  %s5986_s13 = sphi %s6018_s13, %s7772_s13   ;;  %s5982_s12 = sphi %s6016_s12, %s7771_s12   ;;  %s5978_s11 = sphi %s6014_s11, %s7770_s11   ;;  %s5974_s10 = sphi %s6012_s10, %s7769_s10   ;;  %s5970_s9 = sphi %s6010_s9, %s7768_s9  }
   0x5   : > { %s27_s17 = sadd.s32 1, %s5986_s13  ;;  %s83_s18 = sadd.s32 1, %s5978_s11 }
   0x6   : > { %p29_p0 = scmp.ge.s32.totalorder %s27_s17, 2  ;;  %p93_p1 = scmp.ne.s32.totalorder %s5978_s11, %s5974_s10 }
   0x7   : > { %p94_p2 = scmp.eq.s32.totalorder %s4665_s15, 1  ;;  %p99_p3 = scmp.ne.s32.totalorder %s5974_s10, %s5970_s9 }
   0x8   : > { %s7774_s17 = smov (%p29_p0, %s27_s17), 0  ;;  %p100_p5 = scmp.eq.s32.totalorder %s4666_s16, 1 }
   0x9   : > { %p6050_p4 = por %p94_p2, %p93_p1  ;;  %s78_s20 = ssub.s32 %s5986_s13, %s7774_s17 }
   0xa   : > { %p4669_p6 = scmp.ge.s32.totalorder %s5990_s14, 1  ;;  %p81_p7 = scmp.eq.s32.totalorder %s78_s20, 0 }
   0xb   : > { %p6057_p8 = por %p100_p5, %p99_p3  ;;  %p129_p9 = scmp.lt.s32.totalorder %s5990_s14, 3 }
   0xc   : > { %s6063_s22 = scalar_select %p81_p7, %s5978_s11, %s83_s18  }
   0xd   : > { %p130_p10 = pnand %p4669_p6, %p129_p9 }
   0xf   : > { %133 = sbr.rel (%p130_p10) target bundleno = 592 (0x250), region = 28 }
  0x16   : > { %v5792_v0 = vld [vmem:[%s7724_s1 + $0x40] sm:$0xff]   ;;  %p151_p11 = scmp.lt.s32.totalorder %s5982_s12, 1  ;;  %v5794_v2 = vld [vmem:[%s7724_s1 + $0x48] sm:$0xff]   ;;  %v5796_v4 = vld [vmem:[%s7724_s1 + $0x50] sm:$0xff]   ;;  %vm354_vm0 = vsmask.f32 3328 }
  0x17   : > { %v5793_v1 = vld [vmem:[%s7724_s1] sm:$0xff]   ;;  %5198 = vmatprep.subr.bf16.mxu0 %v5792_v0  ;;  %5718 = vmatprep.subr.bf16.mxu1 %v5792_v0  ;;  %v5795_v3 = vld [vmem:[%s7724_s1 + $0x8] sm:$0xff]   ;;  %v5797_v5 = vld [vmem:[%s7724_s1 + $0x10] sm:$0xff]   ;;  %vm355_vm1 = vsmask.f32 7440  ;;  %vm917_vm3 = vcmask 1042432  }
  0x18   : > { %5199 = vmatpush3.bf16.msra.mxu0 %v5793_v1  ;;  %5726 = vmatpush3.bf16.msra.mxu1 %v5793_v1  ;;  %s152_s5 = scalar_select %p151_p11, %s5982_s12, 1  ;;  %v5798_v6 = vld [vmem:[%s7724_s1 + $0x58] sm:$0xff]   ;;  %v5800_v8 = vld [vmem:[%s7724_s1 + $0x60] sm:$0xff]   ;;  %v5802_v10 = vld [vmem:[%s7724_s1 + $0x68] sm:$0xff]   ;;  %vm918_vm4 = vcmask 1046532  }
  0x19   : > { %5200 = vmatprep.subr.bf16.mxu0 %v5794_v2  ;;  %5719 = vmatprep.subr.bf16.mxu1 %v5794_v2  ;;  %v5799_v7 = vld [vmem:[%s7724_s1 + $0x18] sm:$0xff]   ;;  %v5801_v9 = vld [vmem:[%s7724_s1 + $0x20] sm:$0xff]   ;;  %v5803_v14 = vld [vmem:[%s7724_s1 + $0x28] sm:$0xff]   ;;  %s5197_s15 = sshll.u32 %s5982_s12, 12  ;;  %s5992_s25 = smov [#allocation3]  }
  0x1a   : > { %s5734_s16 = smul.u32 216, %s152_s5  ;;  %v5804_v17 = vld [vmem:[%s7724_s1 + $0x70] sm:$0xff]   ;;  %vm6122_vm2 = vmor %vm354_vm0, %vm355_vm1  ;;  %v5806_v43 = vld [vmem:[%s7724_s1 + $0x78] sm:$0xff]   ;;  %s7669_s23 = scalar_lea.hbm %s7725_s2, %s5197_s15 }
  0x1b   : > { %v5805_v30 = vld [vmem:[%s7724_s1 + $0x30] sm:$0xff]   ;;  %v5807_v50 = vld [vmem:[%s7724_s1 + $0x38] sm:$0xff]   ;;  %v5810_v54 = vld [vmem:[%s7724_s1 + $0xc0] sm:$0xff]   ;;  %s5916_s26 = sshll.u32 %s5992_s25, 4  ;;  %s5917_s26 = int_to_ptr.vmem [resolvable:$false] %s5916_s26 }
  0x1c   : > { %5201 = vmatpush3.bf16.msra.mxu0 %v5795_v3  ;;  %5727 = vmatpush3.bf16.msra.mxu1 %v5795_v3  ;;  %s6097_s27 = scalar_lea.vmem %s7723_s0, %s5734_s16  ;;  %v5811_v59 = vld [vmem:[%s7724_s1 + $0x80] sm:$0xff]   ;;  %v5812_v63 = vld [vmem:[%s7724_s1 + $0xc8] sm:$0xff]   ;;  %vm6262_vm5 = vmor %vm917_vm3, %vm918_vm4  ;;  %s5918_s28 = scalar_lea.vmem %s5917_s26, 8192 }
  0x1d   : > { %5202 = vmatprep.subr.bf16.mxu0 %v5796_v4  ;;  %5720 = vmatprep.subr.bf16.mxu1 %v5796_v4  ;;  %v306_v11 = vld [vmem:[%s6097_s27] sm:$0xf]  ;;  %v307_v12 = vld [vmem:[%s6097_s27 + $0x4] sm:$0xf]  ;;  %v308_v13 = vld [vmem:[%s6097_s27 + $0x8] sm:$0x1] }
  0x1e   : > { %v358_v15 = vshrl.u32 %v306_v11, 16  ;;  %v361_v16 = vshll.u32 %v306_v11, 16  ;;  %v367_v18 = vshll.u32 %v307_v12, 16  ;;  %v371_v19 = vshrl.u32 %v307_v12, 16  ;;  %v342_v21 = vld [vmem:[%s6097_s27 + $0x90] sm:$0xf] }
  0x1f   : > { %v377_v20 = vshll.u32 %v308_v13, 16  ;;  %v343_v24 = vld [vmem:[%s6097_s27 + $0x94] sm:$0xf]  ;;  %v344_v25 = vld [vmem:[%s6097_s27 + $0x98] sm:$0x1]  ;;  %v646_v29 = vshrl.u32 %v342_v21, 16 }
  0x20   : > { %5203 = vmatpush3.bf16.msra.mxu0 %v5797_v5  ;;  %5728 = vmatpush3.bf16.msra.mxu1 %v5797_v5  ;;  %v360_v22 = vrot.slane %v358_v15, 4  ;;  %v363_v23 = vrot.slane %v361_v16, 5  ;;  %v369_v26 = vrot.slane %v367_v18, 5  ;;  %v373_v27 = vrot.slane %v371_v19, 4  ;;  %v5808_v55 = vld [vmem:[%s6097_s27] sm:$0xff]   ;;  %v5809_v56 = vld [vmem:[%s6097_s27 + $0x90] sm:$0xff]  }
  0x21   : > { %5204 = vmatprep.subr.bf16.mxu0 %v5798_v6  ;;  %5721 = vmatprep.subr.bf16.mxu1 %v5798_v6  ;;  %v379_v28 = vrot.slane %v377_v20, 5  ;;  %v649_v32 = vshll.u32 %v342_v21, 16  ;;  %v655_v33 = vshll.u32 %v343_v24, 16  ;;  %v659_v34 = vshrl.u32 %v343_v24, 16  ;;  %v5813_v60 = vld [vmem:[%s7724_s1 + $0x140] sm:$0xff]  }
  0x22   : > { %v364_v31 = vor.u32 %v363_v23, %v360_v22  ;;  %v374_v36 = vor.u32 %v373_v27, %v369_v26  ;;  %v648_v37 = vrot.slane %v646_v29, 4  ;;  %v665_v38 = vshll.u32 %v344_v25, 16  ;;  %v309_v61 = vld [vmem:[%s6097_s27 + $0xc] sm:$0xf]  ;;  %v310_v0 = vld [vmem:[%s6097_s27 + $0x10] sm:$0xf] }
  0x23   : > { %v651_v40 = vrot.slane %v649_v32, 5  ;;  %v657_v41 = vrot.slane %v655_v33, 5  ;;  %v661_v42 = vrot.slane %v659_v34, 4  ;;  %v311_v1 = vld [vmem:[%s6097_s27 + $0x14] sm:$0x1]  ;;  %v382_v2 = vshrl.u32 %v309_v61, 16 }
  0x24   : > { %5205 = vmatpush3.bf16.msra.mxu0 %v5799_v7  ;;  %5729 = vmatpush3.bf16.msra.mxu1 %v5799_v7  ;;  %v365_v39 = vrot.slane %v364_v31, 4  ;;  %v375_v44 = vrot.slane %v374_v36, 4  ;;  %v667_v45 = vrot.slane %v665_v38, 5  ;;  %v385_v3 = vshll.u32 %v309_v61, 16  ;;  %v5815_v4 = vld [vmem:[%s7724_s1 + $0x100] sm:$0xff]   ;;  %v5816_v31 = vld [vmem:[%s6097_s27 + $0xc] sm:$0xff]  }
  0x25   : > { %5206 = vmatprep.subr.bf16.mxu0 %v5800_v8  ;;  %5722 = vmatprep.subr.bf16.mxu1 %v5800_v8  ;;  %v652_v47 = vor.u32 %v651_v40, %v648_v37  ;;  %v662_v48 = vor.u32 %v661_v42, %v657_v41  ;;  %v391_v5 = vshll.u32 %v310_v0, 16  ;;  %v395_v6 = vshrl.u32 %v310_v0, 16  ;;  %v345_v8 = vld [vmem:[%s6097_s27 + $0x9c] sm:$0xf]  ;;  %v346_v11 = vld [vmem:[%s6097_s27 + $0xa0] sm:$0xf] }
  0x26   : > { %v370_v46 = vsel %vm6122_vm2, %v365_v39, %v369_v26  ;;  %v380_v49 = vsel %vm6122_vm2, %v375_v44, %v379_v28  ;;  %v401_v7 = vshll.u32 %v311_v1, 16  ;;  %v347_v12 = vld [vmem:[%s6097_s27 + $0xa4] sm:$0x1]  ;;  %v670_v16 = vshrl.u32 %v345_v8, 16  ;;  %v5818_v32 = vld [vmem:[%s7724_s1 + $0xd0] sm:$0xff]   ;;  %v5817_v42 = vld [vmem:[%s6097_s27 + $0x9c] sm:$0xff]  }
  0x27   : > { %v4688_v51 = vcombine.low %v370_v46, %v380_v49  ;;  %v653_v52 = vrot.slane %v652_v47, 4  ;;  %v663_v53 = vrot.slane %v662_v48, 4  ;;  %v393_v13 = vrot.slane %v391_v5, 5  ;;  %v5819_v38 = vld [vmem:[%s7724_s1 + $0x90] sm:$0xff]   ;;  %v312_v44 = vld [vmem:[%s6097_s27 + $0x18] sm:$0xf] }
  0x28   : > { %5207 = vmatpush3.bf16.msra.mxu0 %v5801_v9  ;;  %5730 = vmatpush3.bf16.msra.mxu1 %v5801_v9  ;;  %v384_v9 = vrot.slane %v382_v2, 4  ;;  %v403_v15 = vrot.slane %v401_v7, 5  ;;  %v673_v19 = vshll.u32 %v345_v8, 16  ;;  %v679_v20 = vshll.u32 %v346_v11, 16  ;;  %v314_v46 = vld [vmem:[%s6097_s27 + $0x20] sm:$0x1] }
  0x29   : > { %5208 = vmatprep.subr.bf16.mxu0 %v5802_v10  ;;  %5723 = vmatprep.subr.bf16.mxu1 %v5802_v10  ;;  %v658_v57 = vsel %vm6122_vm2, %v653_v52, %v657_v41  ;;  %v668_v58 = vsel %vm6122_vm2, %v663_v53, %v667_v45  ;;  %v387_v10 = vrot.slane %v385_v3, 5  ;;  %v683_v21 = vshrl.u32 %v346_v11, 16  ;;  %v313_v45 = vld [vmem:[%s6097_s27 + $0x1c] sm:$0xf]  ;;  %v349_v52 = vld [vmem:[%s6097_s27 + $0xac] sm:$0xf] }
  0x2a   : > { %3760 = vmatprep.mubr.bf16.mxu0 %v4688_v51  ;;  %v4700_v62 = vcombine.low %v658_v57, %v668_v58  ;;  %v672_v23 = vrot.slane %v670_v16, 4  ;;  %v689_v24 = vshll.u32 %v347_v12, 16  ;;  %v675_v26 = vrot.slane %v673_v19, 5  ;;  %v348_v51 = vld [vmem:[%s6097_s27 + $0xa8] sm:$0xf]  ;;  %v5824_v7 = vld [vmem:[%s7724_s1 + $0xe0] sm:$0xff]  }
  0x2b   : > { %v388_v18 = vor.u32 %v387_v10, %v384_v9  ;;  %v681_v27 = vrot.slane %v679_v20, 5  ;;  %v685_v28 = vrot.slane %v683_v21, 4  ;;  %v406_v49 = vshrl.u32 %v312_v44, 16  ;;  %v350_v58 = vld [vmem:[%s6097_s27 + $0xb0] sm:$0x1]  ;;  %v5822_v16 = vld [vmem:[%s6097_s27 + $0x18] sm:$0xff]  }
  0x2c   : > { %5209 = vmatpush3.bf16.msra.mxu0 %v5803_v14  ;;  %5731 = vmatpush3.bf16.msra.mxu1 %v5803_v14  ;;  %v397_v14 = vrot.slane %v395_v6, 4  ;;  %v676_v34 = vor.u32 %v675_v26, %v672_v23  ;;  %v425_v57 = vshll.u32 %v314_v46, 16  ;;  %v694_v61 = vshrl.u32 %v348_v51, 16 }
  0x2d   : > { %5210 = vmatprep.subr.bf16.mxu0 %v5804_v17  ;;  %5724 = vmatprep.subr.bf16.mxu1 %v5804_v17  ;;  %v5814_v17 = vld [vmem:[%s7724_s1 + $0x88] sm:$0xff]   ;;  %v389_v25 = vrot.slane %v388_v18, 4  ;;  %v686_v36 = vor.u32 %v685_v28, %v681_v27  ;;  %v703_v2 = vshll.u32 %v349_v52, 16  ;;  %v707_v6 = vshrl.u32 %v349_v52, 16  ;;  %v5826_v18 = vld [vmem:[%s7724_s1 + $0xa0] sm:$0xff]  }
  0x2e   : > { %3856 = vmatprep.mubr.bf16.mxu1 %v4700_v62  ;;  %v398_v22 = vor.u32 %v397_v14, %v393_v13  ;;  %v677_v40 = vrot.slane %v676_v34, 4  ;;  %v697_v62 = vshll.u32 %v348_v51, 16  ;;  %v427_v1 = vrot.slane %v425_v57, 5  ;;  %v5828_v28 = vld [vmem:[%s7724_s1 + $0xe8] sm:$0xff]  }
  0x2f   : > { %v394_v33 = vsel %vm6122_vm2, %v389_v25, %v393_v13  ;;  %v687_v41 = vrot.slane %v686_v36, 4  ;;  %v705_v9 = vrot.slane %v703_v2, 5  ;;  %v713_v10 = vshll.u32 %v350_v58, 16 }
  0x30   : > { %5211 = vmatpush3.bf16.msra.mxu0 %v5805_v30  ;;  %5732 = vmatpush3.bf16.msra.mxu1 %v5805_v30  ;;  %v399_v29 = vrot.slane %v398_v22, 4  ;;  %v691_v30 = vrot.slane %v689_v24, 5  ;;  %v682_v47 = vsel %vm6122_vm2, %v677_v40, %v681_v27  ;;  %v699_v5 = vrot.slane %v697_v62, 5  ;;  %v5827_v22 = vld [vmem:[%s7724_s1 + $0x108] sm:$0xff]  }
  0x31   : > { %5212 = vmatprep.subr.bf16.mxu0 %v5806_v43  ;;  %5725 = vmatprep.subr.bf16.mxu1 %v5806_v43  ;;  %v5820_v43 = vld [vmem:[%s7724_s1 + $0xd8] sm:$0xff]   ;;  %v709_v13 = vrot.slane %v707_v6, 4  ;;  %v5823_v27 = vld [vmem:[%s6097_s27 + $0xa8] sm:$0xff]  }
  0x32   : > { %v404_v37 = vsel %vm6122_vm2, %v399_v29, %v403_v15  ;;  %v692_v48 = vsel %vm6122_vm2, %v687_v41, %v691_v30  ;;  %v715_v15 = vrot.slane %v713_v10, 5  ;;  %v5829_v29 = vld [vmem:[%s7724_s1 + $0xa8] sm:$0xff]   ;;  %v315_v30 = vld [vmem:[%s6097_s27 + $0x24] sm:$0xf]  ;;  %v351_v41 = vld [vmem:[%s6097_s27 + $0xb4] sm:$0xf] }
  0x33   : > { %v4689_v39 = vcombine.low %v394_v33, %v404_v37  ;;  %v4701_v53 = vcombine.low %v682_v47, %v692_v48  ;;  %v710_v21 = vor.u32 %v709_v13, %v705_v9  ;;  %v317_v33 = vld [vmem:[%s6097_s27 + $0x2c] sm:$0x1]  ;;  %v430_v34 = vshrl.u32 %v315_v30, 16  ;;  %v5834_v6 = vld [vmem:[%s7724_s1 + $0xf8] sm:$0xff]  }
  0x34   : > { %5213 = vmatpush3.bf16.msra.mxu0 %v5807_v50  ;;  %5733 = vmatpush3.bf16.msra.mxu1 %v5807_v50  ;;  %v409_v50 = vshll.u32 %v312_v44, 16  ;;  %v433_v36 = vshll.u32 %v315_v30, 16  ;;  %v449_v40 = vshll.u32 %v317_v33, 16  ;;  %v352_v44 = vld [vmem:[%s6097_s27 + $0xb8] sm:$0xf]  ;;  %v721_v51 = vshll.u32 %v351_v41, 16 }
  0x35   : > { %5310 = vmatprep.subr.bf16.mxu1 %v5810_v54  ;;  %5422 = vmatprep.subr.bf16.mxu0 %v5813_v60  ;;  %v5821_v54 = vld [vmem:[%s7724_s1 + $0x98] sm:$0xff]   ;;  %v711_v26 = vrot.slane %v710_v21, 4  ;;  %v727_v52 = vshll.u32 %v352_v44, 16  ;;  %v821_v33 = vld [vmem:[%s6097_s27] sm:$0xe] }
  0x36   : > { %v411_v60 = vrot.slane %v409_v50, 5  ;;  %v451_v48 = vrot.slane %v449_v40, 5  ;;  %v723_v58 = vrot.slane %v721_v51, 5  ;;  %v5831_v10 = vld [vmem:[%s6097_s27 + $0xb4] sm:$0xff]   ;;  %v323_v51 = vld [vmem:[%s6097_s27 + $0x44] sm:$0x1] }
  0x37   : > { %3761 = vmatmul.mubr.bf16.vlgmr.msra.gmra.mrb[0].mxu0 %v5808_v55  ;;  %3857 = vmatmul.mubr.bf16.vlgmr.msra.gmra.mrb[0].mxu1 %v5809_v56  ;;  %v415_v55 = vshll.u32 %v313_v45, 16  ;;  %v419_v56 = vshrl.u32 %v313_v45, 16  ;;  %v353_v45 = vld [vmem:[%s6097_s27 + $0xbc] sm:$0x1] }
  0x38   : > { %5311 = vmatpush3.bf16.msra.mxu1 %v5811_v59  ;;  %5423 = vmatpush3.bf16.msra.mxu0 %v5815_v4  ;;  %v408_v59 = vrot.slane %v406_v49, 4  ;;  %v696_v4 = vrot.slane %v694_v61, 4  ;;  %v718_v49 = vshrl.u32 %v351_v41, 16  ;;  %v5840_v41 = vld [vmem:[%s7724_s1 + $0x1c0] sm:$0xff]  }
  0x39   : > { %5312 = vmatprep.subr.bf16.mxu1 %v5812_v63  ;;  %3768 = vmatprep.mubr.bf16.mxu0 %v4689_v39  ;;  %v417_v63 = vrot.slane %v415_v55, 5  ;;  %v421_v0 = vrot.slane %v419_v56, 4  ;;  %v737_v56 = vshll.u32 %v353_v45, 16 }
  0x3a   : > { %3864 = vmatprep.mubr.bf16.mxu1 %v4701_v53  ;;  %v412_v3 = vor.u32 %v411_v60, %v408_v59  ;;  %v700_v12 = vor.u32 %v699_v5, %v696_v4  ;;  %v731_v53 = vshrl.u32 %v352_v44, 16  ;;  %v720_v55 = vrot.slane %v718_v49, 4  ;;  %v5839_v44 = vld [vmem:[%s6097_s27 + $0x30] sm:$0xff]  }
  0x3b   : > { %v422_v8 = vor.u32 %v421_v0, %v417_v63  ;;  %v729_v59 = vrot.slane %v727_v52, 5  ;;  %v739_v62 = vrot.slane %v737_v56, 5  ;;  %v5832_v0 = vld [vmem:[%s7724_s1 + $0xf0] sm:$0xff]  }
  0x3c   : > { %5313 = vmatpush3.bf16.msra.mxu1 %v5814_v17  ;;  %v413_v11 = vrot.slane %v412_v3, 4  ;;  %v5825_v17 = vld [vmem:[%s7724_s1 + $0x148] sm:$0xff]   ;;  %v701_v20 = vrot.slane %v700_v12, 4  ;;  %v733_v60 = vrot.slane %v731_v53, 4  ;;  %v724_v3 = vor.u32 %v723_v58, %v720_v55  ;;  %v5836_v12 = vld [vmem:[%s7724_s1 + $0xb8] sm:$0xff]  }
  0x3d   : > { %5314 = vmatprep.subr.bf16.mxu1 %v5818_v32  ;;  %v423_v14 = vrot.slane %v422_v8, 4  ;;  %5424 = vmatprep.subr.bf16.mxu0 %v5825_v17  ;;  %v316_v32 = vld [vmem:[%s6097_s27 + $0x28] sm:$0xf] }
  0x3e   : > { %v418_v19 = vsel %vm6122_vm2, %v413_v11, %v417_v63  ;;  %v706_v25 = vsel %vm6122_vm2, %v701_v20, %v705_v9  ;;  %5425 = vmatpush3.bf16.msra.mxu0 %v5827_v22  ;;  %v443_v39 = vshrl.u32 %v316_v32, 16  ;;  %v5830_v63 = vld [vmem:[%s6097_s27 + $0x24] sm:$0xff]   ;;  %v734_v4 = vor.u32 %v733_v60, %v729_v59  ;;  %v5835_v11 = vld [vmem:[%s7724_s1 + $0x150] sm:$0xff]  }
  0x3f   : > { %3769 = vmatmul.mubr.bf16.gmra.mrb[4].mxu0 %v5816_v31  ;;  %3865 = vmatmul.mubr.bf16.gmra.mrb[4].mxu1 %v5817_v42  ;;  %v428_v23 = vsel %vm6122_vm2, %v423_v14, %v427_v1  ;;  %v716_v31 = vsel %vm6122_vm2, %v711_v26, %v715_v15  ;;  %v432_v42 = vrot.slane %v430_v34, 4  ;;  %v5833_v1 = vld [vmem:[%s7724_s1 + $0xb0] sm:$0xff]   ;;  %v725_v8 = vrot.slane %v724_v3, 4  ;;  %v822_v34 = vld [vmem:[%s6097_s27 + $0x4] sm:$0xf] }
  0x40   : > { %5315 = vmatpush3.bf16.msra.mxu1 %v5819_v38  ;;  %v4690_v24 = vcombine.low %v418_v19, %v428_v23  ;;  %v4702_v37 = vcombine.low %v706_v25, %v716_v31  ;;  %v439_v38 = vshll.u32 %v316_v32, 16  ;;  %v445_v47 = vrot.slane %v443_v39, 4  ;;  %5426 = vmatprep.subr.bf16.mxu0 %v5835_v11  ;;  %v5837_v15 = vld [vmem:[%s7724_s1 + $0x110] sm:$0xff]   ;;  %v320_v19 = vld [vmem:[%s6097_s27 + $0x38] sm:$0x1] }
  0x41   : > { %5316 = vmatprep.subr.bf16.mxu1 %v5820_v43  ;;  %v435_v43 = vrot.slane %v433_v36, 5  ;;  %v735_v9 = vrot.slane %v734_v4, 4  ;;  %v730_v13 = vsel %vm6122_vm2, %v725_v8, %v729_v59  ;;  %v5838_v25 = vld [vmem:[%s6097_s27 + $0xc] sm:$0xff]   ;;  %v823_v36 = vld [vmem:[%s6097_s27 + $0x8] sm:$0x1]  ;;  %v922_v39 = vrot.slane %v822_v34, 5 }
  0x42   : > { %3776 = vmatprep.mubr.bf16.mxu0 %v4690_v24  ;;  %3872 = vmatprep.mubr.bf16.mxu1 %v4702_v37  ;;  %v441_v46 = vrot.slane %v439_v38, 5  ;;  %v473_v24 = vshll.u32 %v320_v19, 16  ;;  %v4704_v38 = vrot.slane %v821_v33, 9  ;;  %v925_v40 = vrot.slane %v823_v36, 5  ;;  %v824_v4 = vld [vmem:[%s6097_s27 + $0xc] sm:$0xe] }
  0x43   : > { %v436_v50 = vor.u32 %v435_v43, %v432_v42  ;;  %v740_v14 = vsel %vm6122_vm2, %v735_v9, %v739_v62  ;;  %5427 = vmatpush3.bf16.msra.mxu0 %v5837_v15  ;;  %v5842_v62 = vld [vmem:[%s6097_s27 + $0x18] sm:$0xff]   ;;  %v4705_v9 = vrot.slane %v824_v4, 9  ;;  %v5846_v33 = vld [vmem:[%s6097_s27 + $0x24] sm:$0xff]  }
  0x44   : > { %5317 = vmatpush3.bf16.msra.mxu1 %v5821_v54  ;;  %v446_v54 = vor.u32 %v445_v47, %v441_v46  ;;  %v4703_v17 = vcombine.low %v730_v13, %v740_v14  ;;  %v475_v30 = vrot.slane %v473_v24, 5  ;;  %v923_v45 = vsel %vm6262_vm5, %v4704_v38, %v922_v39  ;;  %v5841_v47 = vld [vmem:[%s7724_s1 + $0x180] sm:$0xff]   ;;  %v5845_v11 = vld [vmem:[%s7724_s1 + $0x118] sm:$0xff]   ;;  %v5848_v38 = vld [vmem:[%s7724_s1 + $0x1c8] sm:$0xff]  }
  0x45   : > { %5318 = vmatprep.subr.bf16.mxu1 %v5824_v7  ;;  %v437_v57 = vrot.slane %v436_v50, 4  ;;  %v322_v50 = vld [vmem:[%s6097_s27 + $0x40] sm:$0xf] }
  0x46   : > { %v447_v61 = vrot.slane %v446_v54, 4  ;;  %v487_v56 = vshll.u32 %v322_v50, 16  ;;  %v5843_v15 = vld [vmem:[%s6097_s27 + $0x3c] sm:$0xff]  }
  0x47   : > { %3777 = vmatmul.mubr.bf16.gmra.mrb[8].mxu0 %v5822_v16  ;;  %3873 = vmatmul.mubr.bf16.gmra.mrb[8].mxu1 %v5823_v27  ;;  %v442_v2 = vsel %vm6122_vm2, %v437_v57, %v441_v46  ;;  %v318_v16 = vld [vmem:[%s6097_s27 + $0x30] sm:$0xf]  ;;  %v924_v46 = vrot.slane %v922_v39, 4  ;;  %v491_v57 = vshrl.u32 %v322_v50, 16 }
  0x48   : > { %5319 = vmatpush3.bf16.msra.mxu1 %v5826_v18  ;;  %v452_v5 = vsel %vm6122_vm2, %v447_v61, %v451_v48  ;;  %v319_v18 = vld [vmem:[%s6097_s27 + $0x34] sm:$0xf]  ;;  %v454_v20 = vshrl.u32 %v318_v16, 16  ;;  %v457_v21 = vshll.u32 %v318_v16, 16  ;;  %3880 = vmatprep.mubr.bf16.mxu1 %v4703_v17  ;;  %v321_v48 = vld [vmem:[%s6097_s27 + $0x3c] sm:$0xf] }
  0x49   : > { %5320 = vmatprep.subr.bf16.mxu1 %v5828_v28  ;;  %v4691_v7 = vcombine.low %v442_v2, %v452_v5  ;;  %v463_v22 = vshll.u32 %v319_v18, 16  ;;  %v467_v23 = vshrl.u32 %v319_v18, 16  ;;  %v478_v52 = vshrl.u32 %v321_v48, 16  ;;  %v5844_v2 = vld [vmem:[%s7724_s1 + $0x158] sm:$0xff]   ;;  %v825_v5 = vld [vmem:[%s6097_s27 + $0x10] sm:$0xf] }
  0x4a   : > { %v456_v26 = vrot.slane %v454_v20, 4  ;;  %v459_v27 = vrot.slane %v457_v21, 5  ;;  %v481_v53 = vshll.u32 %v321_v48, 16  ;;  %v926_v55 = vsel %vm6262_vm5, %v924_v46, %v925_v40  ;;  %5428 = vmatprep.subr.bf16.mxu0 %v5844_v2  ;;  %v324_v18 = vld [vmem:[%s6097_s27 + $0x48] sm:$0xf] }
  0x4b   : > { %3784 = vmatprep.mubr.bf16.mxu0 %v4691_v7  ;;  %v465_v28 = vrot.slane %v463_v22, 5  ;;  %v4720_v59 = vcombine.low %v923_v45, %v926_v55  ;;  %v480_v60 = vrot.slane %v478_v52, 4  ;;  %5429 = vmatpush3.bf16.msra.mxu0 %v5845_v11  ;;  %v325_v20 = vld [vmem:[%s6097_s27 + $0x4c] sm:$0xf]  ;;  %v326_v21 = vld [vmem:[%s6097_s27 + $0x50] sm:$0x1] }
  0x4c   : > { %5321 = vmatpush3.bf16.msra.mxu1 %v5829_v29  ;;  %v469_v29 = vrot.slane %v467_v23, 4  ;;  %v460_v32 = vor.u32 %v459_v27, %v456_v26  ;;  %v483_v61 = vrot.slane %v481_v53, 5  ;;  %v502_v22 = vshrl.u32 %v324_v18, 16  ;;  %v827_v40 = vld [vmem:[%s6097_s27 + $0x18] sm:$0xe]  ;;  %v5850_v55 = vld [vmem:[%s7724_s1 + $0x160] sm:$0xff]  }
  0x4d   : > { %5322 = vmatprep.subr.bf16.mxu1 %v5832_v0  ;;  %v493_v0 = vrot.slane %v491_v57, 4  ;;  %v505_v23 = vshll.u32 %v324_v18, 16  ;;  %v511_v26 = vshll.u32 %v325_v20, 16  ;;  %v515_v27 = vshrl.u32 %v325_v20, 16  ;;  %5430 = vmatprep.subr.bf16.mxu0 %v5850_v55  ;;  %v5858_v55 = vld [vmem:[%s7724_s1 + $0x128] sm:$0xff]  }
  0x4e   : > { %v470_v37 = vor.u32 %v469_v29, %v465_v28  ;;  %v461_v42 = vrot.slane %v460_v32, 4  ;;  %v484_v3 = vor.u32 %v483_v61, %v480_v60  ;;  %v4706_v45 = vrot.slane %v827_v40, 9 }
  0x4f   : > { %3785 = vmatmul.mubr.bf16.gmra.mrb[12].mxu0 %v5830_v63  ;;  %3881 = vmatmul.mubr.bf16.gmra.mrb[12].mxu1 %v5831_v10  ;;  %v489_v63 = vrot.slane %v487_v56, 5  ;;  %v929_v10 = vrot.slane %v825_v5, 5  ;;  %v507_v32 = vrot.slane %v505_v23, 5  ;;  %v513_v34 = vrot.slane %v511_v26, 5  ;;  %v5852_v5 = vld [vmem:[%s6097_s27 + $0x30] sm:$0xff]  }
  0x50   : > { %5323 = vmatpush3.bf16.msra.mxu1 %v5833_v1  ;;  %3921 = vmatprep.mubr.bf16.mxu1 %v5838_v25  ;;  %v471_v43 = vrot.slane %v470_v37, 4  ;;  %v466_v49 = vsel %vm6122_vm2, %v461_v42, %v465_v28  ;;  %v497_v1 = vshll.u32 %v323_v51, 16  ;;  %v517_v36 = vrot.slane %v515_v27, 4  ;;  %v829_v42 = vld [vmem:[%s6097_s27 + $0x20] sm:$0x1]  ;;  %v5847_v51 = vld [vmem:[%s6097_s27 + $0x48] sm:$0xff]  }
  0x51   : > { %5324 = vmatprep.subr.bf16.mxu1 %v5834_v6  ;;  %v826_v6 = vld [vmem:[%s6097_s27 + $0x14] sm:$0x1]  ;;  %v494_v7 = vor.u32 %v493_v0, %v489_v63  ;;  %v930_v16 = vsel %vm6262_vm5, %v4705_v9, %v929_v10  ;;  %v931_v17 = vrot.slane %v929_v10, 4  ;;  %v521_v37 = vshll.u32 %v326_v21, 16  ;;  %v331_v21 = vld [vmem:[%s6097_s27 + $0x64] sm:$0xf] }
  0x52   : > { %v476_v54 = vsel %vm6122_vm2, %v471_v43, %v475_v30  ;;  %v499_v8 = vrot.slane %v497_v1, 5  ;;  %v932_v13 = vrot.slane %v826_v6, 5  ;;  %v504_v30 = vrot.slane %v502_v22, 4  ;;  %v332_v22 = vld [vmem:[%s6097_s27 + $0x68] sm:$0x1] }
  0x53   : > { %v4692_v58 = vcombine.low %v466_v49, %v476_v54  ;;  %v495_v14 = vrot.slane %v494_v7, 4  ;;  %v518_v43 = vor.u32 %v517_v36, %v513_v34  ;;  %v939_v49 = vrot.slane %v829_v42, 5  ;;  %v5856_v36 = vld [vmem:[%s7724_s1 + $0x168] sm:$0xff]  }
  0x54   : > { %5325 = vmatpush3.bf16.msra.mxu1 %v5836_v12  ;;  %v485_v12 = vrot.slane %v484_v3, 4  ;;  %v933_v25 = vsel %vm6262_vm5, %v931_v17, %v932_v13  ;;  %v508_v39 = vor.u32 %v507_v32, %v504_v30  ;;  %v831_v13 = vld [vmem:[%s6097_s27 + $0x28] sm:$0xf]  ;;  %v569_v40 = vshll.u32 %v332_v22, 16 }
  0x55   : > { %5534 = vmatprep.subr.bf16.mxu1 %v5840_v41  ;;  %3792 = vmatprep.mubr.bf16.mxu0 %v4692_v58  ;;  %v500_v24 = vsel %vm6122_vm2, %v495_v14, %v499_v8  ;;  %v4721_v29 = vcombine.low %v930_v16, %v933_v25  ;;  %v828_v41 = vld [vmem:[%s6097_s27 + $0x1c] sm:$0xf]  ;;  %v519_v50 = vrot.slane %v518_v43, 4  ;;  %v5851_v58 = vld [vmem:[%s7724_s1 + $0x120] sm:$0xff]   ;;  %v832_v14 = vld [vmem:[%s6097_s27 + $0x2c] sm:$0x1] }
  0x56   : > { %v490_v19 = vsel %vm6122_vm2, %v485_v12, %v489_v63  ;;  %v936_v46 = vrot.slane %v828_v41, 5  ;;  %v509_v48 = vrot.slane %v508_v39, 4  ;;  %v329_v63 = vld [vmem:[%s6097_s27 + $0x5c] sm:$0x1]  ;;  %5431 = vmatpush3.bf16.msra.mxu0 %v5851_v58  ;;  %v830_v12 = vld [vmem:[%s6097_s27 + $0x24] sm:$0xe] }
  0x57   : > { %3922 = vmatmul.mubr.bf16.vlgmr.msra.gmra.mrb[16].mxu1 %v4720_v59  ;;  %3793 = vmatmul.mubr.bf16.gmra.mrb[16].mxu0 %v5839_v44  ;;  %v4693_v28 = vcombine.low %v490_v19, %v500_v24  ;;  %v523_v44 = vrot.slane %v521_v37, 5  ;;  %v327_v59 = vld [vmem:[%s6097_s27 + $0x54] sm:$0xf]  ;;  %v545_v4 = vshll.u32 %v329_v63, 16  ;;  %v4707_v16 = vrot.slane %v830_v12, 9 }
  0x58   : > { %5535 = vmatpush3.bf16.msra.mxu1 %v5841_v47  ;;  %3929 = vmatprep.mubr.bf16.mxu1 %v5842_v62  ;;  %v5849_v47 = vld [vmem:[%s7724_s1 + $0x188] sm:$0xff]   ;;  %v937_v52 = vsel %vm6262_vm5, %v4706_v45, %v936_v46  ;;  %v938_v53 = vrot.slane %v936_v46, 4  ;;  %v514_v54 = vsel %vm6122_vm2, %v509_v48, %v513_v34  ;;  %v328_v62 = vld [vmem:[%s6097_s27 + $0x58] sm:$0xf]  ;;  %v526_v0 = vshrl.u32 %v327_v59, 16 }
  0x59   : > { %3800 = vmatprep.mubr.bf16.mxu0 %v4693_v28  ;;  %5536 = vmatprep.subr.bf16.mxu1 %v5848_v38  ;;  %v524_v56 = vsel %vm6122_vm2, %v519_v50, %v523_v44  ;;  %v529_v1 = vshll.u32 %v327_v59, 16  ;;  %v535_v2 = vshll.u32 %v328_v62, 16  ;;  %v539_v3 = vshrl.u32 %v328_v62, 16  ;;  %v330_v19 = vld [vmem:[%s6097_s27 + $0x60] sm:$0xf]  ;;  %v5853_v25 = vld [vmem:[%s6097_s27 + $0x54] sm:$0xff]  }
  0x5a   : > { %v940_v57 = vsel %vm6262_vm5, %v938_v53, %v939_v49  ;;  %v4694_v60 = vcombine.low %v514_v54, %v524_v56  ;;  %v528_v6 = vrot.slane %v526_v0, 4  ;;  %v547_v10 = vrot.slane %v545_v4, 5  ;;  %v833_v45 = vld [vmem:[%s6097_s27 + $0x30] sm:$0xe]  ;;  %v834_v46 = vld [vmem:[%s6097_s27 + $0x34] sm:$0xf]  ;;  %5432 = vmatprep.subr.bf16.mxu0 %v5856_v36 }
  0x5b   : > { %v4722_v61 = vcombine.low %v937_v52, %v940_v57  ;;  %v531_v7 = vrot.slane %v529_v1, 5  ;;  %v537_v8 = vrot.slane %v535_v2, 5  ;;  %v541_v9 = vrot.slane %v539_v3, 4  ;;  %v835_v49 = vld [vmem:[%s6097_s27 + $0x38] sm:$0x1]  ;;  %v5857_v52 = vld [vmem:[%s7724_s1 + $0x1d0] sm:$0xff]   ;;  %5433 = vmatpush3.bf16.msra.mxu0 %v5858_v55 }
  0x5c   : > { %5537 = vmatpush3.bf16.msra.mxu1 %v5849_v47  ;;  %v943_v17 = vrot.slane %v831_v13, 5  ;;  %v946_v18 = vrot.slane %v832_v14, 5  ;;  %v550_v23 = vshrl.u32 %v330_v19, 16  ;;  %v553_v28 = vshll.u32 %v330_v19, 16  ;;  %v5855_v62 = vld [vmem:[%s6097_s27 + $0x60] sm:$0xff]  }
  0x5d   : > { %v532_v11 = vor.u32 %v531_v7, %v528_v6  ;;  %v563_v34 = vshrl.u32 %v331_v21, 16  ;;  %v571_v48 = vrot.slane %v569_v40, 5  ;;  %v4708_v50 = vrot.slane %v833_v45, 9  ;;  %5538 = vmatprep.subr.bf16.mxu1 %v5857_v52  ;;  %v333_v0 = vld [vmem:[%s6097_s27 + $0x6c] sm:$0xf]  ;;  %v5866_v52 = vld [vmem:[%s7724_s1 + $0x1d8] sm:$0xff]  }
  0x5e   : > { %v944_v26 = vsel %vm6262_vm5, %v4707_v16, %v943_v17  ;;  %v945_v27 = vrot.slane %v943_v17, 4  ;;  %v552_v32 = vrot.slane %v550_v23, 4  ;;  %v555_v39 = vrot.slane %v553_v28, 5  ;;  %v334_v3 = vld [vmem:[%s6097_s27 + $0x70] sm:$0xf] }
  0x5f   : > { %3930 = vmatmul.mubr.bf16.gmra.mrb[20].mxu1 %v4721_v29  ;;  %3801 = vmatmul.mubr.bf16.gmra.mrb[20].mxu0 %v5843_v15  ;;  %v542_v15 = vor.u32 %v541_v9, %v537_v8  ;;  %v533_v20 = vrot.slane %v532_v11, 4  ;;  %v5854_v29 = vld [vmem:[%s6097_s27 + $0x3c] sm:$0xff]   ;;  %v565_v44 = vrot.slane %v563_v34, 4  ;;  %v953_v54 = vrot.slane %v835_v49, 5  ;;  %v335_v4 = vld [vmem:[%s6097_s27 + $0x74] sm:$0x1] }
  0x60   : > { %3937 = vmatprep.mubr.bf16.mxu1 %v5846_v33  ;;  %3808 = vmatprep.mubr.bf16.mxu0 %v4694_v60  ;;  %v559_v33 = vshll.u32 %v331_v21, 16  ;;  %v947_v38 = vsel %vm6262_vm5, %v945_v27, %v946_v18  ;;  %v556_v47 = vor.u32 %v555_v39, %v552_v32  ;;  %v5859_v60 = vld [vmem:[%s7724_s1 + $0x190] sm:$0xff]   ;;  %v577_v6 = vshll.u32 %v333_v0, 16  ;;  %v5860_v11 = vld [vmem:[%s6097_s27 + $0x48] sm:$0xff]   ;;  %v836_v18 = vld [vmem:[%s6097_s27 + $0x3c] sm:$0xe] }
  0x61   : > { %v543_v24 = vrot.slane %v542_v15, 4  ;;  %v538_v30 = vsel %vm6122_vm2, %v533_v20, %v537_v8  ;;  %v4723_v42 = vcombine.low %v944_v26, %v947_v38  ;;  %5539 = vmatpush3.bf16.msra.mxu1 %v5859_v60  ;;  %v583_v8 = vshll.u32 %v334_v3, 16  ;;  %v837_v19 = vld [vmem:[%s6097_s27 + $0x40] sm:$0xf]  ;;  %v838_v20 = vld [vmem:[%s6097_s27 + $0x44] sm:$0x1] }
  0x62   : > { %v561_v43 = vrot.slane %v559_v33, 5  ;;  %v557_v56 = vrot.slane %v556_v47, 4  ;;  %v587_v9 = vshrl.u32 %v334_v3, 16  ;;  %v579_v13 = vrot.slane %v577_v6, 5  ;;  %v5863_v27 = vld [vmem:[%s7724_s1 + $0x130] sm:$0xff]   ;;  %5540 = vmatprep.subr.bf16.mxu1 %v5866_v52 }
  0x63   : > { %v548_v37 = vsel %vm6122_vm2, %v543_v24, %v547_v10  ;;  %v593_v10 = vshll.u32 %v335_v4, 16  ;;  %v585_v14 = vrot.slane %v583_v8, 5  ;;  %v4709_v22 = vrot.slane %v836_v18, 9  ;;  %v336_v33 = vld [vmem:[%s6097_s27 + $0x78] sm:$0xf]  ;;  %v5868_v18 = vld [vmem:[%s6097_s27 + $0x60] sm:$0xff]  }
  0x64   : > { %v4695_v41 = vcombine.low %v538_v30, %v548_v37  ;;  %v566_v53 = vor.u32 %v565_v44, %v561_v43  ;;  %v589_v15 = vrot.slane %v587_v9, 4  ;;  %v957_v23 = vrot.slane %v837_v19, 5  ;;  %v337_v36 = vld [vmem:[%s6097_s27 + $0x7c] sm:$0xf]  ;;  %v338_v37 = vld [vmem:[%s6097_s27 + $0x80] sm:$0x1] }
  0x65   : > { %v595_v16 = vrot.slane %v593_v10, 5  ;;  %v960_v24 = vrot.slane %v838_v20, 5  ;;  %v598_v38 = vshrl.u32 %v336_v33, 16  ;;  %v601_v39 = vshll.u32 %v336_v33, 16  ;;  %v840_v55 = vld [vmem:[%s6097_s27 + $0x4c] sm:$0xf] }
  0x66   : > { %v567_v59 = vrot.slane %v566_v53, 4  ;;  %v590_v21 = vor.u32 %v589_v15, %v585_v14  ;;  %v958_v30 = vsel %vm6262_vm5, %v4709_v22, %v957_v23  ;;  %v959_v32 = vrot.slane %v957_v23, 4  ;;  %v339_v4 = vld [vmem:[%s6097_s27 + $0x84] sm:$0xf]  ;;  %v340_v6 = vld [vmem:[%s6097_s27 + $0x88] sm:$0xf] }
  0x67   : > { %3938 = vmatmul.mubr.bf16.gmra.mrb[24].mxu1 %v4722_v61  ;;  %3809 = vmatmul.mubr.bf16.gmra.mrb[24].mxu0 %v5847_v51  ;;  %v950_v51 = vrot.slane %v834_v46, 5  ;;  %v562_v61 = vsel %vm6122_vm2, %v557_v56, %v561_v43  ;;  %v611_v43 = vshrl.u32 %v337_v36, 16  ;;  %v600_v46 = vrot.slane %v598_v38, 4  ;;  %v841_v56 = vld [vmem:[%s6097_s27 + $0x50] sm:$0x1]  ;;  %v5870_v22 = vld [vmem:[%s7724_s1 + $0x178] sm:$0xff]  }
  0x68   : > { %3945 = vmatprep.mubr.bf16.mxu1 %v5852_v5  ;;  %3816 = vmatprep.mubr.bf16.mxu0 %v4695_v41  ;;  %v572_v1 = vsel %vm6122_vm2, %v567_v59, %v571_v48  ;;  %v574_v5 = vshrl.u32 %v333_v0, 16  ;;  %v591_v28 = vrot.slane %v590_v21, 4  ;;  %v961_v41 = vsel %vm6262_vm5, %v959_v32, %v960_v24  ;;  %v5864_v48 = vld [vmem:[%s6097_s27 + $0x54] sm:$0xff]  }
  0x69   : > { %v951_v57 = vsel %vm6262_vm5, %v4708_v50, %v950_v51  ;;  %v952_v58 = vrot.slane %v950_v51, 4  ;;  %v4696_v7 = vcombine.low %v562_v61, %v572_v1  ;;  %v4725_v45 = vcombine.low %v958_v30, %v961_v41  ;;  %v5867_v61 = vld [vmem:[%s7724_s1 + $0x198] sm:$0xff]   ;;  %v842_v24 = vld [vmem:[%s6097_s27 + $0x54] sm:$0xe]  ;;  %v5872_v41 = vld [vmem:[%s6097_s27 + $0x6c] sm:$0xff]  }
  0x6a   : > { %v576_v12 = vrot.slane %v574_v5, 4  ;;  %v596_v40 = vsel %vm6122_vm2, %v591_v28, %v595_v16  ;;  %v603_v47 = vrot.slane %v601_v39, 5  ;;  %v613_v50 = vrot.slane %v611_v43, 4  ;;  %v5865_v1 = vld [vmem:[%s6097_s27 + $0x78] sm:$0xff]   ;;  %5541 = vmatpush3.bf16.msra.mxu1 %v5867_v61 }
  0x6b   : > { %v954_v63 = vsel %vm6262_vm5, %v952_v58, %v953_v54  ;;  %v617_v51 = vshll.u32 %v338_v37, 16  ;;  %v839_v54 = vld [vmem:[%s6097_s27 + $0x48] sm:$0xe]  ;;  %v964_v60 = vrot.slane %v840_v55, 5  ;;  %v622_v8 = vshrl.u32 %v339_v4, 16  ;;  %v5871_v32 = vld [vmem:[%s7724_s1 + $0x138] sm:$0xff]  }
  0x6c   : > { %v4724_v2 = vcombine.low %v951_v57, %v954_v63  ;;  %v580_v17 = vor.u32 %v579_v13, %v576_v12  ;;  %v604_v53 = vor.u32 %v603_v47, %v600_v46  ;;  %v4710_v59 = vrot.slane %v839_v54, 9  ;;  %v5869_v37 = vld [vmem:[%s6097_s27 + $0x84] sm:$0xff]   ;;  %v4850_v46 = vld [vmem:[%s6097_s27 + $0x14] sm:$0x1] }
  0x6d   : > { %v619_v58 = vrot.slane %v617_v51, 5  ;;  %v967_v63 = vrot.slane %v841_v56, 5  ;;  %v966_v3 = vrot.slane %v964_v60, 4  ;;  %v625_v9 = vshll.u32 %v339_v4, 16  ;;  %v846_v54 = vld [vmem:[%s6097_s27 + $0x64] sm:$0xf] }
  0x6e   : > { %v581_v26 = vrot.slane %v580_v17, 4  ;;  %v631_v12 = vshll.u32 %v340_v6, 16  ;;  %v635_v13 = vshrl.u32 %v340_v6, 16  ;;  %v624_v16 = vrot.slane %v622_v8, 4  ;;  %v847_v55 = vld [vmem:[%s6097_s27 + $0x68] sm:$0x1] }
  0x6f   : > { %3946 = vmatmul.mubr.bf16.gmra.mrb[28].mxu1 %v4723_v42  ;;  %3817 = vmatmul.mubr.bf16.gmra.mrb[28].mxu0 %v5853_v25  ;;  %v5862_v25 = vld [vmem:[%s7724_s1 + $0x170] sm:$0xff]   ;;  %v607_v42 = vshll.u32 %v337_v36, 16  ;;  %v627_v17 = vrot.slane %v625_v9, 5  ;;  %v1873_v52 = vrot.slane %v4850_v46, 5  ;;  %v981_v61 = vrot.slane %v847_v55, 5  ;;  %v5874_v4 = vld [vmem:[%s7724_s1 + $0x1a0] sm:$0xff]  }
  0x70   : > { %3953 = vmatprep.mubr.bf16.mxu1 %v5854_v29  ;;  %3824 = vmatprep.mubr.bf16.mxu0 %v4696_v7  ;;  %v5861_v29 = vld [vmem:[%s6097_s27 + $0x6c] sm:$0xff]   ;;  %v586_v34 = vsel %vm6122_vm2, %v581_v26, %v585_v14  ;;  %v633_v19 = vrot.slane %v631_v12, 5  ;;  %v637_v20 = vrot.slane %v635_v13, 4  ;;  %v844_v26 = vld [vmem:[%s6097_s27 + $0x5c] sm:$0x1]  ;;  %v5875_v9 = vld [vmem:[%s7724_s1 + $0x200] sm:$0xff]  }
  0x71   : > { %5434 = vmatprep.subr.bf16.mxu0 %v5862_v25  ;;  %v4697_v44 = vcombine.low %v586_v34, %v596_v40  ;;  %v609_v49 = vrot.slane %v607_v42, 5  ;;  %v341_v7 = vld [vmem:[%s6097_s27 + $0x8c] sm:$0x1]  ;;  %v628_v23 = vor.u32 %v627_v17, %v624_v16  ;;  %v843_v25 = vld [vmem:[%s6097_s27 + $0x58] sm:$0xf]  ;;  %v974_v34 = vrot.slane %v844_v26, 5 }
  0x72   : > { %5435 = vmatpush3.bf16.msra.mxu0 %v5863_v27  ;;  %v641_v21 = vshll.u32 %v341_v7, 16  ;;  %v638_v27 = vor.u32 %v637_v20, %v633_v19  ;;  %v971_v30 = vrot.slane %v843_v25, 5  ;;  %v4848_v42 = vld [vmem:[%s6097_s27 + $0xc] sm:$0xe] }
  0x73   : > { %v614_v57 = vor.u32 %v613_v50, %v609_v49  ;;  %v629_v33 = vrot.slane %v628_v23, 4  ;;  %5436 = vmatprep.subr.bf16.mxu0 %v5870_v22  ;;  %v4896_v47 = vrot.slane %v4848_v42, 9  ;;  %v4852_v22 = vld [vmem:[%s6097_s27 + $0x1c] sm:$0xf]  ;;  %v4853_v23 = vld [vmem:[%s6097_s27 + $0x20] sm:$0x1] }
  0x74   : > { %v643_v28 = vrot.slane %v641_v21, 5  ;;  %v639_v36 = vrot.slane %v638_v27, 4  ;;  %v973_v39 = vrot.slane %v971_v30, 4  ;;  %v4851_v21 = vld [vmem:[%s6097_s27 + $0x18] sm:$0xe]  ;;  %v1877_v26 = vrot.slane %v4852_v22, 5 }
  0x75   : > { %v615_v0 = vrot.slane %v614_v57, 4  ;;  %v634_v40 = vsel %vm6122_vm2, %v629_v33, %v633_v19  ;;  %v978_v57 = vrot.slane %v846_v54, 5  ;;  %v4897_v25 = vrot.slane %v4851_v21, 9 }
  0x76   : > { %5437 = vmatpush3.bf16.msra.mxu0 %v5871_v32  ;;  %v644_v43 = vsel %vm6122_vm2, %v639_v36, %v643_v28  ;;  %v1880_v27 = vrot.slane %v4853_v23, 5  ;;  %v848_v28 = vld [vmem:[%s6097_s27 + $0x6c] sm:$0xe]  ;;  %v850_v32 = vld [vmem:[%s6097_s27 + $0x74] sm:$0x1] }
  0x77   : > { %3954 = vmatmul.mubr.bf16.gmra.mrb[32].mxu1 %v4724_v2  ;;  %3825 = vmatmul.mubr.bf16.gmra.mrb[32].mxu0 %v5855_v62  ;;  %v605_v62 = vrot.slane %v604_v53, 4  ;;  %v965_v2 = vsel %vm6262_vm5, %v4710_v59, %v964_v60  ;;  %v620_v10 = vsel %vm6122_vm2, %v615_v0, %v619_v58  ;;  %v845_v53 = vld [vmem:[%s6097_s27 + $0x60] sm:$0xe]  ;;  %v4784_v58 = vld [vmem:[%s6097_s27 + $0xc] sm:$0xf]  ;;  %v4713_v33 = vrot.slane %v848_v28, 9 }
  0x78   : > { %3961 = vmatprep.mubr.bf16.mxu1 %v5860_v11  ;;  %3832 = vmatprep.mubr.bf16.mxu0 %v4697_v44  ;;  %v968_v11 = vsel %vm6262_vm5, %v966_v3, %v967_v63  ;;  %v975_v44 = vsel %vm6262_vm5, %v973_v39, %v974_v34  ;;  %v4712_v56 = vrot.slane %v845_v53, 9  ;;  %v4786_v63 = vld [vmem:[%s6097_s27 + $0x14] sm:$0x1]  ;;  %v1312_v3 = vshll.u32 %v4784_v58, 16  ;;  %v4787_v39 = vld [vmem:[%s6097_s27 + $0x18] sm:$0xf] }
  0x79   : > { %v610_v5 = vsel %vm6122_vm2, %v605_v62, %v609_v49  ;;  %v4726_v15 = vcombine.low %v965_v2, %v968_v11  ;;  %v4699_v49 = vcombine.low %v634_v40, %v644_v43  ;;  %v4785_v62 = vld [vmem:[%s6097_s27 + $0x10] sm:$0xf]  ;;  %v1309_v2 = vshrl.u32 %v4784_v58, 16  ;;  %5670 = vmatprep.subr.bf16.mxu0 %v5875_v9  ;;  %v4788_v40 = vld [vmem:[%s6097_s27 + $0x1c] sm:$0xf] }
  0x7a   : > { %v4698_v14 = vcombine.low %v610_v5, %v620_v10  ;;  %v979_v0 = vsel %vm6262_vm5, %v4712_v56, %v978_v57  ;;  %v1318_v6 = vshll.u32 %v4785_v62, 16  ;;  %v1322_v7 = vshrl.u32 %v4785_v62, 16  ;;  %v4789_v43 = vld [vmem:[%s6097_s27 + $0x20] sm:$0x1]  ;;  %v4854_v56 = vld [vmem:[%s6097_s27 + $0x24] sm:$0xe] }
  0x7b   : > { %v1328_v8 = vshll.u32 %v4786_v63, 16  ;;  %v1311_v12 = vrot.slane %v1309_v2, 4  ;;  %v1314_v13 = vrot.slane %v1312_v3, 5  ;;  %v1878_v36 = vsel %vm6262_vm5, %v4897_v25, %v1877_v26  ;;  %v4856_v62 = vld [vmem:[%s6097_s27 + $0x2c] sm:$0x1] }
  0x7c   : > { %v1324_v16 = vrot.slane %v1322_v7, 4  ;;  %v988_v42 = vrot.slane %v850_v32, 5  ;;  %v1342_v55 = vshll.u32 %v4788_v40, 16  ;;  %v4898_v2 = vrot.slane %v4854_v56, 9  ;;  %v851_v3 = vld [vmem:[%s6097_s27 + $0x78] sm:$0xe] }
  0x7d   : > { %v1330_v17 = vrot.slane %v1328_v8, 5  ;;  %v1315_v19 = vor.u32 %v1314_v13, %v1311_v12  ;;  %v1887_v8 = vrot.slane %v4856_v62, 5  ;;  %v4714_v12 = vrot.slane %v851_v3, 9  ;;  %v4793_v62 = vld [vmem:[%s6097_s27 + $0x30] sm:$0xf] }
  0x7e   : > { %v1381_v3 = vshrl.u32 %v4793_v62, 16 }
  0x7f   : > { %3962 = vmatmul.mubr.bf16.gmra.mrb[36].mxu1 %v4725_v45  ;;  %3833 = vmatmul.mubr.bf16.gmra.mrb[36].mxu0 %v5861_v29  ;;  %v4711_v29 = vrot.slane %v842_v24, 9  ;;  %v4849_v45 = vld [vmem:[%s6097_s27 + $0x10] sm:$0xf]  ;;  %v1316_v24 = vrot.slane %v1315_v19, 4  ;;  %v4792_v19 = vld [vmem:[%s6097_s27 + $0x2c] sm:$0x1] }
  0x80   : > { %3969 = vmatprep.mubr.bf16.mxu1 %v5864_v48  ;;  %3840 = vmatprep.mubr.bf16.mxu0 %v4698_v14  ;;  %v5873_v48 = vld [vmem:[%s7724_s1 + $0x1e0] sm:$0xff]   ;;  %v1870_v51 = vrot.slane %v4849_v45, 5  ;;  %v1336_v45 = vshll.u32 %v4787_v39, 16 }
  0x81   : > { %v972_v38 = vsel %vm6262_vm5, %v4711_v29, %v971_v30  ;;  %5542 = vmatprep.subr.bf16.mxu1 %v5873_v48  ;;  %v849_v30 = vld [vmem:[%s6097_s27 + $0x70] sm:$0xf] }
  0x82   : > { %v4727_v50 = vcombine.low %v972_v38, %v975_v44  ;;  %v1871_v59 = vsel %vm6262_vm5, %v4896_v47, %v1870_v51  ;;  %v1872_v60 = vrot.slane %v1870_v51, 4  ;;  %5543 = vmatpush3.bf16.msra.mxu1 %v5874_v4  ;;  %v985_v38 = vrot.slane %v849_v30, 5  ;;  %v5878_v51 = vld [vmem:[%s7724_s1 + $0x1e8] sm:$0xff]   ;;  %v852_v4 = vld [vmem:[%s6097_s27 + $0x7c] sm:$0xf] }
  0x83   : > { %v1333_v44 = vshrl.u32 %v4787_v39, 16  ;;  %v1338_v54 = vrot.slane %v1336_v45, 5  ;;  %5544 = vmatprep.subr.bf16.mxu1 %v5878_v51  ;;  %v1376_v39 = vshll.u32 %v4792_v19, 16 }
  0x84   : > { %v1874_v5 = vsel %vm6262_vm5, %v1872_v60, %v1873_v52  ;;  %v986_v48 = vsel %vm6262_vm5, %v4713_v33, %v985_v38  ;;  %v1352_v60 = vshll.u32 %v4789_v43, 16  ;;  %v5881_v43 = vld [vmem:[%s6097_s27 + $0x90] sm:$0xff]  }
  0x85   : > { %v4912_v10 = vcombine.low %v1871_v59, %v1874_v5  ;;  %v1335_v53 = vrot.slane %v1333_v44, 4  ;;  %v1346_v59 = vshrl.u32 %v4788_v40, 16  ;;  %v4857_v44 = vld [vmem:[%s6097_s27 + $0x30] sm:$0xe]  ;;  %v1378_v45 = vrot.slane %v1376_v39, 5 }
  0x87   : > { %3970 = vmatmul.mubr.bf16.gmra.mrb[40].mxu1 %v4726_v15  ;;  %3841 = vmatmul.mubr.bf16.gmra.mrb[40].mxu0 %v5865_v1  ;;  %v980_v1 = vrot.slane %v978_v57, 4  ;;  %v1320_v15 = vrot.slane %v1318_v6, 5  ;;  %v5879_v57 = vld [vmem:[%s7724_s1 + $0x1a8] sm:$0xff]   ;;  %v1348_v5 = vrot.slane %v1346_v59, 4  ;;  %v1354_v6 = vrot.slane %v1352_v60, 5 }
  0x88   : > { %3977 = vmatprep.mubr.bf16.mxu1 %v5868_v18  ;;  %3848 = vmatprep.mubr.bf16.mxu0 %v4699_v49  ;;  %v5876_v18 = vld [vmem:[%s6097_s27 + $0x78] sm:$0xff]   ;;  %v987_v49 = vrot.slane %v985_v38, 4 }
  0x89   : > { %v982_v11 = vsel %vm6262_vm5, %v980_v1, %v981_v61  ;;  %v1325_v20 = vor.u32 %v1324_v16, %v1320_v15  ;;  %v1321_v34 = vsel %vm6122_vm2, %v1316_v24, %v1320_v15  ;;  %v4855_v61 = vld [vmem:[%s6097_s27 + $0x28] sm:$0xf]  ;;  %v1344_v1 = vrot.slane %v1342_v55, 5  ;;  %5545 = vmatpush3.bf16.msra.mxu1 %v5879_v57  ;;  %v856_v55 = vld [vmem:[%s6097_s27 + $0x8c] sm:$0x1]  ;;  %v5883_v57 = vld [vmem:[%s7724_s1 + $0x1f0] sm:$0xff]  }
  0x8a   : > { %v4728_v14 = vcombine.low %v979_v0, %v982_v11  ;;  %v989_v58 = vsel %vm6262_vm5, %v987_v49, %v988_v42  ;;  %v1339_v0 = vor.u32 %v1338_v54, %v1335_v53  ;;  %v1884_v7 = vrot.slane %v4855_v61, 5  ;;  %v854_v53 = vld [vmem:[%s6097_s27 + $0x84] sm:$0xe]  ;;  %v855_v54 = vld [vmem:[%s6097_s27 + $0x88] sm:$0xf]  ;;  %5546 = vmatprep.subr.bf16.mxu1 %v5883_v57 }
  0x8b   : > { %v1326_v29 = vrot.slane %v1325_v20, 4  ;;  %v4729_v63 = vcombine.low %v986_v48, %v989_v58  ;;  %v1349_v15 = vor.u32 %v1348_v5, %v1344_v1  ;;  %v4899_v48 = vrot.slane %v4857_v44, 9 }
  0x8c   : > { %v1340_v11 = vrot.slane %v1339_v0, 4  ;;  %v1885_v16 = vsel %vm6262_vm5, %v4898_v2, %v1884_v7  ;;  %v4715_v56 = vrot.slane %v854_v53, 9  ;;  %v999_v0 = vrot.slane %v855_v54, 5  ;;  %v4795_v2 = vld [vmem:[%s6097_s27 + $0x38] sm:$0x1] }
  0x8d   : > { %v1350_v25 = vrot.slane %v1349_v15, 4  ;;  %v4861_v15 = vld [vmem:[%s6097_s27 + $0x40] sm:$0xf] }
  0x8e   : > { %v1345_v21 = vsel %vm6122_vm2, %v1340_v11, %v1344_v1  ;;  %v1002_v1 = vrot.slane %v856_v55, 5 }
  0x8f   : > { %3978 = vmatmul.mubr.bf16.gmra.mrb[44].mxu1 %v4727_v50  ;;  %3849 = vmatmul.mubr.bf16.gmra.mrb[44].mxu0 %v5869_v37  ;;  %v1879_v37 = vrot.slane %v1877_v26, 4  ;;  %v5877_v50 = vld [vmem:[%s6097_s27 + $0x84] sm:$0xff]  }
  0x90   : > { %3985 = vmatprep.mubr.bf16.mxu1 %v5872_v41  ;;  %4082 = vmatprep.mubr.bf16.mxu0 %v4912_v10  ;;  %v1331_v41 = vsel %vm6122_vm2, %v1326_v29, %v1330_v17  ;;  %v853_v10 = vld [vmem:[%s6097_s27 + $0x80] sm:$0x1]  ;;  %v1886_v17 = vrot.slane %v1884_v7, 4  ;;  %v5880_v29 = vld [vmem:[%s7724_s1 + $0x208] sm:$0xff]  }
  0x91   : > { %v4832_v46 = vcombine.low %v1321_v34, %v1331_v41  ;;  %v1881_v47 = vsel %vm6262_vm5, %v1879_v37, %v1880_v27  ;;  %v995_v13 = vrot.slane %v853_v10, 5 }
  0x92   : > { %v4913_v52 = vcombine.low %v1878_v36, %v1881_v47  ;;  %v1888_v26 = vsel %vm6262_vm5, %v1886_v17, %v1887_v8  ;;  %v1355_v36 = vsel %vm6122_vm2, %v1350_v25, %v1354_v6  ;;  %v4859_v47 = vld [vmem:[%s6097_s27 + $0x38] sm:$0x1]  ;;  %v1383_v17 = vrot.slane %v1381_v3, 4 }
  0x93   : > { %v4914_v30 = vcombine.low %v1885_v16, %v1888_v26  ;;  %v4833_v40 = vcombine.low %v1345_v21, %v1355_v36  ;;  %v5884_v16 = vld [vmem:[%s7724_s1 + $0x1b0] sm:$0xff]   ;;  %v4862_v21 = vld [vmem:[%s6097_s27 + $0x44] sm:$0x1]  ;;  %v1898_v25 = vrot.slane %v4861_v15, 5  ;;  %v860_v15 = vld [vmem:[%s6097_s27 + $0x9c] sm:$0xe] }
  0x94   : > { %v857_v26 = vld [vmem:[%s6097_s27 + $0x90] sm:$0xe]  ;;  %5547 = vmatpush3.bf16.msra.mxu1 %v5884_v16  ;;  %v861_v16 = vld [vmem:[%s6097_s27 + $0xa0] sm:$0xf] }
  0x95   : > { %v4716_v39 = vrot.slane %v857_v26, 9  ;;  %v4800_v26 = vld [vmem:[%s6097_s27 + $0x4c] sm:$0xf] }
  0x97   : > { %3986 = vmatmul.mubr.bf16.gmra.mrb[48].mxu1 %v4728_v14  ;;  %4083 = vmatmul.mubr.bf16.vlgmr.msra.gmra.mrb[48].mxu0 %v4832_v46  ;;  %v4790_v14 = vld [vmem:[%s6097_s27 + $0x24] sm:$0xf]  ;;  %v4858_v46 = vld [vmem:[%s6097_s27 + $0x34] sm:$0xf] }
  0x98   : > { %3993 = vmatprep.mubr.bf16.mxu1 %v5876_v18  ;;  %5671 = vmatpush3.bf16.msra.mxu0 %v5875_v9  ;;  %v992_v9 = vrot.slane %v852_v4, 5  ;;  %v4791_v18 = vld [vmem:[%s6097_s27 + $0x28] sm:$0xf]  ;;  %v1357_v20 = vshrl.u32 %v4790_v14, 16  ;;  %v1360_v24 = vshll.u32 %v4790_v14, 16  ;;  %v1891_v51 = vrot.slane %v4858_v46, 5 }
  0x99   : > { %4090 = vmatprep.mubr.bf16.mxu0 %v4913_v52  ;;  %v1366_v28 = vshll.u32 %v4791_v18, 16  ;;  %v1370_v34 = vshrl.u32 %v4791_v18, 16  ;;  %5672 = vmatprep.subr.bf16.mxu0 %v5880_v29  ;;  %v1894_v52 = vrot.slane %v4859_v47, 5  ;;  %v1384_v4 = vshll.u32 %v4793_v62, 16  ;;  %v4860_v14 = vld [vmem:[%s6097_s27 + $0x3c] sm:$0xe] }
  0x9a   : > { %v993_v22 = vsel %vm6262_vm5, %v4714_v12, %v992_v9  ;;  %v994_v23 = vrot.slane %v992_v9, 4  ;;  %v1359_v27 = vrot.slane %v1357_v20, 4  ;;  %v1362_v33 = vrot.slane %v1360_v24, 5  ;;  %v4798_v47 = vld [vmem:[%s6097_s27 + $0x44] sm:$0x1] }
  0x9b   : > { %v1368_v38 = vrot.slane %v1366_v28, 5  ;;  %v1372_v42 = vrot.slane %v1370_v34, 4  ;;  %v1892_v60 = vsel %vm6262_vm5, %v4899_v48, %v1891_v51  ;;  %v1893_v61 = vrot.slane %v1891_v51, 4  ;;  %v859_v34 = vld [vmem:[%s6097_s27 + $0x98] sm:$0x1] }
  0x9c   : > { %v996_v32 = vsel %vm6262_vm5, %v994_v23, %v995_v13  ;;  %v1363_v41 = vor.u32 %v1362_v33, %v1359_v27  ;;  %5673 = vmatpush3.bf16.msra.mxu0 %v5880_v29  ;;  %v1000_v12 = vsel %vm6262_vm5, %v4715_v56, %v999_v0  ;;  %v1001_v9 = vrot.slane %v999_v0, 4  ;;  %v5882_v13 = vld [vmem:[%s6097_s27 + $0x9c] sm:$0xff]   ;;  %v5885_v27 = vld [vmem:[%s7724_s1 + $0x210] sm:$0xff]  }
  0x9d   : > { %v4730_v37 = vcombine.low %v993_v22, %v996_v32  ;;  %v1895_v6 = vsel %vm6262_vm5, %v1893_v61, %v1894_v52  ;;  %v1386_v18 = vrot.slane %v1384_v4, 5  ;;  %v1400_v23 = vshll.u32 %v4795_v2, 16  ;;  %v858_v33 = vld [vmem:[%s6097_s27 + $0x94] sm:$0xf]  ;;  %5674 = vmatprep.subr.bf16.mxu0 %v5885_v27  ;;  %v5888_v51 = vld [vmem:[%s7724_s1 + $0x1f8] sm:$0xff]  }
  0x9e   : > { %v1364_v49 = vrot.slane %v1363_v41, 4  ;;  %v4915_v11 = vcombine.low %v1892_v60, %v1895_v6  ;;  %v1003_v22 = vsel %vm6262_vm5, %v1001_v9, %v1002_v1  ;;  %v4900_v24 = vrot.slane %v4860_v14, 9  ;;  %v5886_v60 = vld [vmem:[%s6097_s27 + $0xa8] sm:$0xff]   ;;  %5548 = vmatprep.subr.bf16.mxu1 %v5888_v51  ;;  %v5889_v61 = vld [vmem:[%s7724_s1 + $0x1b8] sm:$0xff]  }
  0x9f   : > { %3994 = vmatmul.mubr.bf16.gmra.mrb[52].mxu1 %v4729_v63  ;;  %4091 = vmatmul.mubr.bf16.gmra.mrb[52].mxu0 %v4833_v40  ;;  %v4794_v63 = vld [vmem:[%s6097_s27 + $0x34] sm:$0xf]  ;;  %v4731_v28 = vcombine.low %v1000_v12, %v1003_v22  ;;  %v1387_v29 = vor.u32 %v1386_v18, %v1383_v17  ;;  %v1901_v32 = vrot.slane %v4862_v21, 5  ;;  %v1402_v36 = vrot.slane %v1400_v23, 5  ;;  %v4796_v40 = vld [vmem:[%s6097_s27 + $0x3c] sm:$0xf] }
  0xa0   : > { %4001 = vmatprep.mubr.bf16.mxu1 %v5877_v50  ;;  %v1373_v50 = vor.u32 %v1372_v42, %v1368_v38  ;;  %4098 = vmatprep.mubr.bf16.mxu0 %v4914_v30  ;;  %v1369_v58 = vsel %vm6122_vm2, %v1364_v49, %v1368_v38  ;;  %v1390_v7 = vshll.u32 %v4794_v63, 16  ;;  %v1394_v8 = vshrl.u32 %v4794_v63, 16  ;;  %v5890_v1 = vld [vmem:[%s7724_s1 + $0x218] sm:$0xff]   ;;  %v4863_v6 = vld [vmem:[%s6097_s27 + $0x48] sm:$0xe] }
  0xa1   : > { %v1900_v38 = vrot.slane %v1898_v25, 4  ;;  %v1388_v41 = vrot.slane %v1387_v29, 4  ;;  %v1009_v44 = vrot.slane %v859_v34, 5  ;;  %5675 = vmatpush3.bf16.msra.mxu0 %v5885_v27  ;;  %v1405_v48 = vshrl.u32 %v4796_v40, 16  ;;  %5549 = vmatpush3.bf16.msra.mxu1 %v5889_v61  ;;  %v4799_v22 = vld [vmem:[%s6097_s27 + $0x48] sm:$0xf] }
  0xa2   : > { %v1374_v59 = vrot.slane %v1373_v50, 4  ;;  %v1392_v19 = vrot.slane %v1390_v7, 5  ;;  %v1396_v20 = vrot.slane %v1394_v8, 4  ;;  %v1408_v49 = vshll.u32 %v4796_v40, 16  ;;  %v4864_v7 = vld [vmem:[%s6097_s27 + $0x4c] sm:$0xf]  ;;  %5676 = vmatprep.subr.bf16.mxu0 %v5890_v1 }
  0xa3   : > { %v1902_v46 = vsel %vm6262_vm5, %v1900_v38, %v1901_v32  ;;  %v1424_v0 = vshll.u32 %v4798_v47, 16  ;;  %v1905_v12 = vrot.slane %v4864_v7, 5  ;;  %v4717_v21 = vrot.slane %v860_v15, 9  ;;  %v4801_v29 = vld [vmem:[%s6097_s27 + $0x50] sm:$0x1]  ;;  %v5893_v34 = vld [vmem:[%s7724_s1 + $0x220] sm:$0xff]  }
  0xa4   : > { %v1379_v5 = vsel %vm6122_vm2, %v1374_v59, %v1378_v45  ;;  %v1397_v30 = vor.u32 %v1396_v20, %v1392_v19  ;;  %v4797_v45 = vld [vmem:[%s6097_s27 + $0x40] sm:$0xf]  ;;  %v1393_v52 = vsel %vm6122_vm2, %v1388_v41, %v1392_v19  ;;  %v1410_v59 = vrot.slane %v1408_v49, 5  ;;  %v862_v20 = vld [vmem:[%s6097_s27 + $0xa4] sm:$0x1] }
  0xa5   : > { %v4834_v10 = vcombine.low %v1369_v58, %v1379_v5  ;;  %v1414_v50 = vshll.u32 %v4797_v45, 16  ;;  %v1407_v58 = vrot.slane %v1405_v48, 4  ;;  %v1418_v63 = vshrl.u32 %v4797_v45, 16  ;;  %5677 = vmatpush3.bf16.msra.mxu0 %v5890_v1  ;;  %v4866_v45 = vld [vmem:[%s6097_s27 + $0x54] sm:$0xe] }
  0xa6   : > { %v1398_v42 = vrot.slane %v1397_v30, 4  ;;  %v1907_v19 = vrot.slane %v1905_v12, 4  ;;  %v1429_v27 = vshrl.u32 %v4799_v22, 16  ;;  %v1432_v30 = vshll.u32 %v4799_v22, 16  ;;  %5678 = vmatprep.subr.bf16.mxu0 %v5893_v34  ;;  %v4867_v49 = vld [vmem:[%s6097_s27 + $0x58] sm:$0xf] }
  0xa7   : > { %4002 = vmatmul.mubr.bf16.gmra.mrb[56].mxu1 %v4730_v37  ;;  %4099 = vmatmul.mubr.bf16.gmra.mrb[56].mxu0 %v4834_v10  ;;  %v1899_v37 = vsel %vm6262_vm5, %v4900_v24, %v1898_v25  ;;  %v1416_v62 = vrot.slane %v1414_v50, 5  ;;  %v1411_v3 = vor.u32 %v1410_v59, %v1407_v58  ;;  %v1420_v5 = vrot.slane %v1418_v63, 4  ;;  %v4865_v10 = vld [vmem:[%s6097_s27 + $0x50] sm:$0x1]  ;;  %v4868_v50 = vld [vmem:[%s6097_s27 + $0x5c] sm:$0x1] }
  0xa8   : > { %4009 = vmatprep.mubr.bf16.mxu1 %v5881_v43  ;;  %4106 = vmatprep.mubr.bf16.mxu0 %v4915_v11  ;;  %v1006_v43 = vrot.slane %v858_v33, 5  ;;  %v1403_v53 = vsel %vm6122_vm2, %v1398_v42, %v1402_v36  ;;  %v4916_v54 = vcombine.low %v1899_v37, %v1902_v46  ;;  %v4901_v11 = vrot.slane %v4863_v6, 9  ;;  %v4803_v6 = vld [vmem:[%s6097_s27 + $0x58] sm:$0xf]  ;;  %v4804_v7 = vld [vmem:[%s6097_s27 + $0x5c] sm:$0x1] }
  0xa9   : > { %v4835_v56 = vcombine.low %v1393_v52, %v1403_v53  ;;  %v1412_v8 = vrot.slane %v1411_v3, 4  ;;  %v1421_v9 = vor.u32 %v1420_v5, %v1416_v62  ;;  %v1908_v14 = vrot.slane %v4865_v10, 5  ;;  %5679 = vmatpush3.bf16.msra.mxu0 %v5893_v34  ;;  %v4802_v3 = vld [vmem:[%s6097_s27 + $0x54] sm:$0xf] }
  0xaa   : > { %v1007_v55 = vsel %vm6262_vm5, %v4716_v39, %v1006_v43  ;;  %v1008_v57 = vrot.slane %v1006_v43, 4  ;;  %v1906_v18 = vsel %vm6262_vm5, %v4901_v11, %v1905_v12  ;;  %v1013_v24 = vrot.slane %v861_v16, 5  ;;  %v5891_v16 = vld [vmem:[%s6097_s27 + $0xc0] sm:$0xff]  }
  0xab   : > { %v1417_v17 = vsel %vm6122_vm2, %v1412_v8, %v1416_v62  ;;  %v1422_v23 = vrot.slane %v1421_v9, 4  ;;  %v1016_v25 = vrot.slane %v862_v20, 5  ;;  %v1438_v32 = vshll.u32 %v4800_v26, 16  ;;  %v5896_v62 = vld [vmem:[%s7724_s1 + $0x228] sm:$0xff]  }
  0xac   : > { %v1010_v2 = vsel %vm6262_vm5, %v1008_v57, %v1009_v44  ;;  %v1442_v33 = vshrl.u32 %v4800_v26, 16  ;;  %v1014_v38 = vsel %vm6262_vm5, %v4717_v21, %v1013_v24  ;;  %v1015_v39 = vrot.slane %v1013_v24, 4  ;;  %v5887_v44 = vld [vmem:[%s6097_s27 + $0xb4] sm:$0xff]   ;;  %5680 = vmatprep.subr.bf16.mxu0 %v5896_v62 }
  0xad   : > { %v4732_v4 = vcombine.low %v1007_v55, %v1010_v2  ;;  %v1431_v41 = vrot.slane %v1429_v27, 4  ;;  %v1434_v42 = vrot.slane %v1432_v30, 5  ;;  %v1440_v43 = vrot.slane %v1438_v32, 5  ;;  %v863_v55 = vld [vmem:[%s6097_s27 + $0xa8] sm:$0xe]  ;;  %5681 = vmatpush3.bf16.msra.mxu0 %v5896_v62 }
  0xae   : > { %v1017_v46 = vsel %vm6262_vm5, %v1015_v39, %v1016_v25  ;;  %v1444_v47 = vrot.slane %v1442_v33, 4  ;;  %v1448_v48 = vshll.u32 %v4801_v29, 16  ;;  %v4902_v53 = vrot.slane %v4866_v45, 9  ;;  %v5899_v25 = vld [vmem:[%s7724_s1 + $0x230] sm:$0xff]   ;;  %v4870_v32 = vld [vmem:[%s6097_s27 + $0x64] sm:$0xf] }
  0xaf   : > { %4010 = vmatmul.mubr.bf16.gmra.mrb[60].mxu1 %v4731_v28  ;;  %4107 = vmatmul.mubr.bf16.gmra.mrb[60].mxu0 %v4835_v56  ;;  %v1909_v28 = vsel %vm6262_vm5, %v1907_v19, %v1908_v14  ;;  %v4733_v51 = vcombine.low %v1014_v38, %v1017_v46  ;;  %v1435_v52 = vor.u32 %v1434_v42, %v1431_v41  ;;  %v864_v56 = vld [vmem:[%s6097_s27 + $0xac] sm:$0xf]  ;;  %v1915_v59 = vrot.slane %v4868_v50, 5  ;;  %v4871_v33 = vld [vmem:[%s6097_s27 + $0x68] sm:$0x1] }
  0xb0   : > { %4017 = vmatprep.mubr.bf16.mxu1 %v5882_v13  ;;  %4114 = vmatprep.mubr.bf16.mxu0 %v4916_v54  ;;  %v1426_v13 = vrot.slane %v1424_v0, 5  ;;  %v4917_v37 = vcombine.low %v1906_v18, %v1909_v28  ;;  %v1912_v54 = vrot.slane %v4867_v49, 5  ;;  %v1445_v57 = vor.u32 %v1444_v47, %v1440_v43  ;;  %v4869_v28 = vld [vmem:[%s6097_s27 + $0x60] sm:$0xe]  ;;  %v866_v39 = vld [vmem:[%s6097_s27 + $0xb4] sm:$0xe] }
  0xb1   : > { %v1450_v58 = vrot.slane %v1448_v48, 5  ;;  %v4718_v61 = vrot.slane %v863_v55, 9  ;;  %v1436_v63 = vrot.slane %v1435_v52, 4  ;;  %v1020_v2 = vrot.slane %v864_v56, 5  ;;  %5682 = vmatprep.subr.bf16.mxu0 %v5899_v25  ;;  %v868_v42 = vld [vmem:[%s6097_s27 + $0xbc] sm:$0x1] }
  0xb2   : > { %v1427_v36 = vsel %vm6122_vm2, %v1422_v23, %v1426_v13  ;;  %v1913_v0 = vsel %vm6262_vm5, %v4902_v53, %v1912_v54  ;;  %v1914_v1 = vrot.slane %v1912_v54, 4  ;;  %v1453_v14 = vshrl.u32 %v4802_v3, 16  ;;  %5683 = vmatpush3.bf16.msra.mxu0 %v5899_v25  ;;  %v4805_v49 = vld [vmem:[%s6097_s27 + $0x60] sm:$0xf]  ;;  %v4806_v53 = vld [vmem:[%s6097_s27 + $0x64] sm:$0xf] }
  0xb3   : > { %v4836_v40 = vcombine.low %v1417_v17, %v1427_v36  ;;  %v1441_v8 = vsel %vm6122_vm2, %v1436_v63, %v1440_v43  ;;  %v1021_v11 = vsel %vm6262_vm5, %v4718_v61, %v1020_v2  ;;  %v1022_v12 = vrot.slane %v1020_v2, 4  ;;  %v4807_v54 = vld [vmem:[%s6097_s27 + $0x68] sm:$0x1]  ;;  %v4873_v61 = vld [vmem:[%s6097_s27 + $0x70] sm:$0xf] }
  0xb4   : > { %v1916_v10 = vsel %vm6262_vm5, %v1914_v1, %v1915_v59  ;;  %v1456_v15 = vshll.u32 %v4802_v3, 16  ;;  %v1462_v19 = vshll.u32 %v4803_v6, 16  ;;  %v1466_v20 = vshrl.u32 %v4803_v6, 16  ;;  %v4874_v2 = vld [vmem:[%s6097_s27 + $0x74] sm:$0x1] }
  0xb5   : > { %v4918_v13 = vcombine.low %v1913_v0, %v1916_v10  ;;  %v1455_v22 = vrot.slane %v1453_v14, 4  ;;  %v1472_v24 = vshll.u32 %v4804_v7, 16  ;;  %v4903_v34 = vrot.slane %v4869_v28, 9  ;;  %v4976_v3 = vld [vmem:[%s6097_s27 + $0x18] sm:$0xf] }
  0xb6   : > { %v1458_v23 = vrot.slane %v1456_v15, 5  ;;  %v1464_v26 = vrot.slane %v1462_v19, 5  ;;  %v1468_v27 = vrot.slane %v1466_v20, 4  ;;  %v1922_v38 = vrot.slane %v4871_v33, 5  ;;  %v4977_v10 = vld [vmem:[%s6097_s27 + $0x1c] sm:$0xf] }
  0xb7   : > { %4018 = vmatmul.mubr.bf16.gmra.mrb[64].mxu1 %v4732_v4  ;;  %4115 = vmatmul.mubr.bf16.gmra.mrb[64].mxu0 %v4836_v40  ;;  %v1446_v4 = vrot.slane %v1445_v57, 4  ;;  %v1474_v30 = vrot.slane %v1472_v24, 5  ;;  %v867_v40 = vld [vmem:[%s6097_s27 + $0xb8] sm:$0xf]  ;;  %v4719_v43 = vrot.slane %v866_v39, 9  ;;  %v1030_v48 = vrot.slane %v868_v42, 5 }
  0xb8   : > { %4025 = vmatprep.mubr.bf16.mxu1 %v5886_v60  ;;  %4122 = vmatprep.mubr.bf16.mxu0 %v4917_v37  ;;  %v865_v60 = vld [vmem:[%s6097_s27 + $0xb0] sm:$0x1]  ;;  %v1459_v29 = vor.u32 %v1458_v23, %v1455_v22  ;;  %v1469_v36 = vor.u32 %v1468_v27, %v1464_v26  ;;  %v1919_v37 = vrot.slane %v4870_v32, 5  ;;  %v1477_v55 = vshrl.u32 %v4805_v49, 16  ;;  %v4808_v23 = vld [vmem:[%s6097_s27 + $0x6c] sm:$0xf] }
  0xb9   : > { %v1023_v5 = vrot.slane %v865_v60, 5  ;;  %v1451_v9 = vsel %vm6122_vm2, %v1446_v4, %v1450_v58  ;;  %v1480_v58 = vshll.u32 %v4805_v49, 16  ;;  %v1486_v59 = vshll.u32 %v4806_v53, 16  ;;  %v4872_v60 = vld [vmem:[%s6097_s27 + $0x6c] sm:$0xe]  ;;  %v5902_v4 = vld [vmem:[%s7724_s1 + $0x238] sm:$0xff]  }
  0xba   : > { %v4837_v17 = vcombine.low %v1441_v8, %v1451_v9  ;;  %v1460_v41 = vrot.slane %v1459_v29, 4  ;;  %v1470_v45 = vrot.slane %v1469_v36, 4  ;;  %v1920_v46 = vsel %vm6262_vm5, %v4903_v34, %v1919_v37  ;;  %5684 = vmatprep.subr.bf16.mxu0 %v5902_v4  ;;  %v4809_v28 = vld [vmem:[%s6097_s27 + $0x70] sm:$0xf]  ;;  %v4810_v34 = vld [vmem:[%s6097_s27 + $0x74] sm:$0x1] }
  0xbb   : > { %v1024_v18 = vsel %vm6262_vm5, %v1022_v12, %v1023_v5  ;;  %v1921_v47 = vrot.slane %v1919_v37, 4  ;;  %v1479_v1 = vrot.slane %v1477_v55, 4  ;;  %v1482_v6 = vrot.slane %v1480_v58, 5  ;;  %5685 = vmatpush3.bf16.msra.mxu0 %v5902_v4  ;;  %v4980_v4 = vld [vmem:[%s6097_s27 + $0x28] sm:$0xf] }
  0xbc   : > { %v4734_v21 = vcombine.low %v1021_v11, %v1024_v18  ;;  %v1465_v50 = vsel %vm6122_vm2, %v1460_v41, %v1464_v26  ;;  %v1475_v56 = vsel %vm6122_vm2, %v1470_v45, %v1474_v30  ;;  %v1488_v7 = vrot.slane %v1486_v59, 5  ;;  %v4979_v59 = vld [vmem:[%s6097_s27 + $0x24] sm:$0xf] }
  0xbd   : > { %v1923_v57 = vsel %vm6262_vm5, %v1921_v47, %v1922_v38  ;;  %v4838_v62 = vcombine.low %v1465_v50, %v1475_v56  ;;  %v1490_v8 = vshrl.u32 %v4806_v53, 16  ;;  %v1496_v11 = vshll.u32 %v4807_v54, 16  ;;  %v4876_v53 = vld [vmem:[%s6097_s27 + $0x7c] sm:$0xf]  ;;  %v4877_v54 = vld [vmem:[%s6097_s27 + $0x80] sm:$0x1] }
  0xbe   : > { %v4919_v63 = vcombine.low %v1920_v46, %v1923_v57  ;;  %v4904_v12 = vrot.slane %v4872_v60, 9  ;;  %v1926_v9 = vrot.slane %v4873_v61, 5  ;;  %v1483_v14 = vor.u32 %v1482_v6, %v1479_v1 }
  0xbf   : > { %4026 = vmatmul.mubr.bf16.gmra.mrb[68].mxu1 %v4733_v51  ;;  %4123 = vmatmul.mubr.bf16.gmra.mrb[68].mxu0 %v4837_v17  ;;  %v1492_v15 = vrot.slane %v1490_v8, 4  ;;  %v2257_v17 = vshrl.u32 %v4976_v3, 16  ;;  %v2260_v18 = vshll.u32 %v4976_v3, 16  ;;  %v1498_v19 = vrot.slane %v1496_v11, 5  ;;  %v4981_v11 = vld [vmem:[%s6097_s27 + $0x2c] sm:$0x1] }
  0xc0   : > { %4033 = vmatprep.mubr.bf16.mxu1 %v5887_v44  ;;  %4130 = vmatprep.mubr.bf16.mxu0 %v4918_v13  ;;  %v1027_v44 = vrot.slane %v867_v40, 5  ;;  %v1929_v13 = vrot.slane %v4874_v2, 5  ;;  %v1927_v20 = vsel %vm6262_vm5, %v4904_v12, %v1926_v9  ;;  %v2266_v22 = vshll.u32 %v4977_v10, 16  ;;  %v5892_v2 = vld [vmem:[%s6097_s27 + $0x18] sm:$0xff]  }
  0xc1   : > { %v1484_v24 = vrot.slane %v1483_v14, 4  ;;  %v1493_v25 = vor.u32 %v1492_v15, %v1488_v7  ;;  %v2259_v26 = vrot.slane %v2257_v17, 4  ;;  %v2262_v27 = vrot.slane %v2260_v18, 5  ;;  %v4811_v12 = vld [vmem:[%s6097_s27 + $0x78] sm:$0xf] }
  0xc2   : > { %v1028_v51 = vsel %vm6262_vm5, %v4719_v43, %v1027_v44  ;;  %v1029_v52 = vrot.slane %v1027_v44, 4  ;;  %v2268_v30 = vrot.slane %v2266_v22, 5  ;;  %v2270_v32 = vshrl.u32 %v4977_v10, 16 }
  0xc3   : > { %v1489_v36 = vsel %vm6122_vm2, %v1484_v24, %v1488_v7  ;;  %v1494_v37 = vrot.slane %v1493_v25, 4  ;;  %v2263_v39 = vor.u32 %v2262_v27, %v2259_v26  ;;  %v1501_v42 = vshrl.u32 %v4808_v23, 16  ;;  %v4813_v25 = vld [vmem:[%s6097_s27 + $0x80] sm:$0x1]  ;;  %v4878_v26 = vld [vmem:[%s6097_s27 + $0x84] sm:$0xe] }
  0xc4   : > { %v1031_v0 = vsel %vm6262_vm5, %v1029_v52, %v1030_v48  ;;  %v2272_v40 = vrot.slane %v2270_v32, 4  ;;  %v1504_v43 = vshll.u32 %v4808_v23, 16  ;;  %v1510_v46 = vshll.u32 %v4809_v28, 16  ;;  %v4875_v48 = vld [vmem:[%s6097_s27 + $0x78] sm:$0xe] }
  0xc5   : > { %v4735_v5 = vcombine.low %v1028_v51, %v1031_v0  ;;  %v1499_v44 = vsel %vm6122_vm2, %v1494_v37, %v1498_v19  ;;  %v2264_v45 = vrot.slane %v2263_v39, 4  ;;  %v1514_v47 = vshrl.u32 %v4809_v28, 16  ;;  %v4879_v32 = vld [vmem:[%s6097_s27 + $0x88] sm:$0xf] }
  0xc6   : > { %v4839_v49 = vcombine.low %v1489_v36, %v1499_v44  ;;  %v2273_v50 = vor.u32 %v2272_v40, %v2268_v30  ;;  %v1503_v51 = vrot.slane %v1501_v42, 4  ;;  %v1506_v52 = vrot.slane %v1504_v43, 5  ;;  %v4982_v43 = vld [vmem:[%s6097_s27 + $0x30] sm:$0xf] }
  0xc7   : > { %4034 = vmatmul.mubr.bf16.gmra.mrb[72].mxu1 %v4734_v21  ;;  %4131 = vmatmul.mubr.bf16.gmra.mrb[72].mxu0 %v4838_v62  ;;  %v1928_v21 = vrot.slane %v1926_v9, 4  ;;  %v2269_v55 = vsel %vm6122_vm2, %v2264_v45, %v2268_v30  ;;  %v1512_v56 = vrot.slane %v1510_v46, 5  ;;  %v1516_v57 = vrot.slane %v1514_v47, 4 }
  0xc8   : > { %4041 = vmatprep.mubr.bf16.mxu1 %v5891_v16  ;;  %4138 = vmatprep.mubr.bf16.mxu0 %v4919_v63  ;;  %v4978_v16 = vld [vmem:[%s6097_s27 + $0x20] sm:$0x1]  ;;  %v1520_v58 = vshll.u32 %v4810_v34, 16  ;;  %v2274_v60 = vrot.slane %v2273_v50, 4  ;;  %v1507_v61 = vor.u32 %v1506_v52, %v1503_v51  ;;  %v4905_v62 = vrot.slane %v4875_v48, 9 }
  0xc9   : > { %v1930_v29 = vsel %vm6262_vm5, %v1928_v21, %v1929_v13  ;;  %v2276_v33 = vshll.u32 %v4978_v16, 16  ;;  %v1933_v63 = vrot.slane %v4876_v53, 5  ;;  %v1517_v0 = vor.u32 %v1516_v57, %v1512_v56  ;;  %v4812_v16 = vld [vmem:[%s6097_s27 + $0x7c] sm:$0xf]  ;;  %v4983_v52 = vld [vmem:[%s6097_s27 + $0x34] sm:$0xf] }
  0xca   : > { %v4920_v38 = vcombine.low %v1927_v20, %v1930_v29  ;;  %v1522_v1 = vrot.slane %v1520_v58, 5  ;;  %v1936_v3 = vrot.slane %v4877_v54, 5  ;;  %v1508_v7 = vrot.slane %v1507_v61, 4  ;;  %v4814_v58 = vld [vmem:[%s6097_s27 + $0x84] sm:$0xf] }
  0xcb   : > { %v2278_v41 = vrot.slane %v2276_v33, 5  ;;  %v1934_v8 = vsel %vm6262_vm5, %v4905_v62, %v1933_v63  ;;  %v1935_v10 = vrot.slane %v1933_v63, 4  ;;  %v1518_v13 = vrot.slane %v1517_v0, 4  ;;  %v5894_v61 = vld [vmem:[%s6097_s27 + $0x24] sm:$0xff]  }
  0xcc   : > { %v2284_v15 = vshll.u32 %v4979_v59, 16  ;;  %v1513_v17 = vsel %vm6122_vm2, %v1508_v7, %v1512_v56  ;;  %v2290_v19 = vshll.u32 %v4980_v4, 16  ;;  %v2294_v20 = vshrl.u32 %v4980_v4, 16  ;;  %v4984_v56 = vld [vmem:[%s6097_s27 + $0x38] sm:$0x1] }
  0xcd   : > { %v2279_v6 = vsel %vm6122_vm2, %v2274_v60, %v2278_v41  ;;  %v1937_v18 = vsel %vm6262_vm5, %v1935_v10, %v1936_v3  ;;  %v1523_v21 = vsel %vm6122_vm2, %v1518_v13, %v1522_v1  ;;  %v2300_v24 = vshll.u32 %v4981_v11, 16  ;;  %v4816_v13 = vld [vmem:[%s6097_s27 + $0x8c] sm:$0x1] }
  0xce   : > { %v5024_v9 = vcombine.low %v2269_v55, %v2279_v6  ;;  %v4921_v22 = vcombine.low %v1934_v8, %v1937_v18  ;;  %v2286_v23 = vrot.slane %v2284_v15, 5  ;;  %v4840_v27 = vcombine.low %v1513_v17, %v1523_v21  ;;  %v4881_v18 = vld [vmem:[%s6097_s27 + $0x90] sm:$0xe] }
  0xcf   : > { %4042 = vmatmul.mubr.bf16.gmra.mrb[76].mxu1 %v4735_v5  ;;  %4139 = vmatmul.mubr.bf16.gmra.mrb[76].mxu0 %v4839_v49  ;;  %v2281_v5 = vshrl.u32 %v4979_v59, 16  ;;  %v2292_v28 = vrot.slane %v2290_v19, 5  ;;  %v2296_v29 = vrot.slane %v2294_v20, 4  ;;  %v1525_v30 = vshrl.u32 %v4811_v12, 16 }
  0xd0   : > { %4146 = vmatprep.mubr.bf16.mxu0 %v4920_v38  ;;  %4243 = vmatprep.mubr.bf16.mxu1 %v5024_v9  ;;  %v2302_v34 = vrot.slane %v2300_v24, 5  ;;  %v1528_v36 = vshll.u32 %v4811_v12, 16  ;;  %v1534_v37 = vshll.u32 %v4812_v16, 16  ;;  %v4880_v38 = vld [vmem:[%s6097_s27 + $0x8c] sm:$0x1]  ;;  %v1538_v41 = vshrl.u32 %v4812_v16, 16 }
  0xd1   : > { %v2283_v14 = vrot.slane %v2281_v5, 4  ;;  %v2297_v39 = vor.u32 %v2296_v29, %v2292_v28  ;;  %v1527_v40 = vrot.slane %v1525_v30, 4  ;;  %v1544_v42 = vshll.u32 %v4813_v25, 16  ;;  %v4815_v9 = vld [vmem:[%s6097_s27 + $0x88] sm:$0xf] }
  0xd2   : > { %v1530_v45 = vrot.slane %v1528_v36, 5  ;;  %v1536_v46 = vrot.slane %v1534_v37, 5  ;;  %v4906_v47 = vrot.slane %v4878_v26, 9  ;;  %v1540_v49 = vrot.slane %v1538_v41, 4 }
  0xd3   : > { %v2287_v33 = vor.u32 %v2286_v23, %v2283_v14  ;;  %v2298_v48 = vrot.slane %v2297_v39, 4  ;;  %v1546_v50 = vrot.slane %v1544_v42, 5  ;;  %v1940_v51 = vrot.slane %v4879_v32, 5  ;;  %v4882_v23 = vld [vmem:[%s6097_s27 + $0x94] sm:$0xf] }
  0xd4   : > { %v1531_v54 = vor.u32 %v1530_v45, %v1527_v40  ;;  %v1943_v55 = vrot.slane %v4880_v38, 5  ;;  %v2305_v57 = vshrl.u32 %v4982_v43, 16  ;;  %v1541_v60 = vor.u32 %v1540_v49, %v1536_v46  ;;  %v4985_v39 = vld [vmem:[%s6097_s27 + $0x3c] sm:$0xf] }
  0xd5   : > { %v2288_v44 = vrot.slane %v2287_v33, 4  ;;  %v2303_v59 = vsel %vm6122_vm2, %v2298_v48, %v2302_v34  ;;  %v1941_v62 = vsel %vm6262_vm5, %v4906_v47, %v1940_v51  ;;  %v1942_v63 = vrot.slane %v1940_v51, 4  ;;  %v5895_v47 = vld [vmem:[%s6097_s27 + $0x30] sm:$0xff]  }
  0xd6   : > { %v1532_v1 = vrot.slane %v1531_v54, 4  ;;  %v2308_v3 = vshll.u32 %v4982_v43, 16  ;;  %v1542_v4 = vrot.slane %v1541_v60, 4  ;;  %v2314_v6 = vshll.u32 %v4983_v52, 16 }
  0xd7   : > { %4244 = vmatmul.mubr.bf16.vlgmr.msra.gmra.mrb[80].mxu1 %v5892_v2  ;;  %4147 = vmatmul.mubr.bf16.gmra.mrb[80].mxu0 %v4840_v27  ;;  %v2293_v53 = vsel %vm6122_vm2, %v2288_v44, %v2292_v28  ;;  %v2307_v2 = vrot.slane %v2305_v57, 4  ;;  %v1944_v5 = vsel %vm6262_vm5, %v1942_v63, %v1943_v55  ;;  %v2318_v7 = vshrl.u32 %v4983_v52, 16  ;;  %v4883_v28 = vld [vmem:[%s6097_s27 + $0x98] sm:$0x1]  ;;  %v4986_v44 = vld [vmem:[%s6097_s27 + $0x40] sm:$0xf] }
  0xd8   : > { %4154 = vmatprep.mubr.bf16.mxu0 %v4921_v22  ;;  %v5025_v0 = vcombine.low %v2293_v53, %v2303_v59  ;;  %v1537_v8 = vsel %vm6122_vm2, %v1532_v1, %v1536_v46  ;;  %v4922_v10 = vcombine.low %v1941_v62, %v1944_v5  ;;  %v2310_v11 = vrot.slane %v2308_v3, 5  ;;  %v4987_v52 = vld [vmem:[%s6097_s27 + $0x44] sm:$0x1]  ;;  %v4817_v59 = vld [vmem:[%s6097_s27 + $0x90] sm:$0xf] }
  0xd9   : > { %v2324_v12 = vshll.u32 %v4984_v56, 16  ;;  %v1547_v14 = vsel %vm6122_vm2, %v1542_v4, %v1546_v50  ;;  %v2316_v15 = vrot.slane %v2314_v6, 5  ;;  %v2320_v16 = vrot.slane %v2318_v7, 4  ;;  %v4819_v1 = vld [vmem:[%s6097_s27 + $0x98] sm:$0x1] }
  0xda   : > { %4251 = vmatprep.mubr.bf16.mxu1 %v5025_v0  ;;  %v1549_v17 = vshrl.u32 %v4814_v58, 16  ;;  %v4841_v19 = vcombine.low %v1537_v8, %v1547_v14  ;;  %v2311_v20 = vor.u32 %v2310_v11, %v2307_v2  ;;  %v1552_v22 = vshll.u32 %v4814_v58, 16  ;;  %v4818_v0 = vld [vmem:[%s6097_s27 + $0x94] sm:$0xf]  ;;  %v4884_v6 = vld [vmem:[%s6097_s27 + $0x9c] sm:$0xe] }
  0xdb   : > { %v2326_v21 = vrot.slane %v2324_v12, 5  ;;  %v2321_v24 = vor.u32 %v2320_v16, %v2316_v15  ;;  %v1558_v26 = vshll.u32 %v4815_v9, 16  ;;  %v1562_v27 = vshrl.u32 %v4815_v9, 16  ;;  %v4885_v12 = vld [vmem:[%s6097_s27 + $0xa0] sm:$0xf] }
  0xdc   : > { %v1551_v25 = vrot.slane %v1549_v17, 4  ;;  %v2312_v29 = vrot.slane %v2311_v20, 4  ;;  %v1554_v30 = vrot.slane %v1552_v22, 5  ;;  %v1568_v32 = vshll.u32 %v4816_v13, 16  ;;  %v4886_v9 = vld [vmem:[%s6097_s27 + $0xa4] sm:$0x1] }
  0xdd   : > { %v4907_v33 = vrot.slane %v4881_v18, 9  ;;  %v2322_v34 = vrot.slane %v2321_v24, 4  ;;  %v1560_v36 = vrot.slane %v1558_v26, 5  ;;  %v1564_v37 = vrot.slane %v1562_v27, 4  ;;  %v4988_v17 = vld [vmem:[%s6097_s27 + $0x48] sm:$0xf] }
  0xde   : > { %v1947_v38 = vrot.slane %v4882_v23, 5  ;;  %v2317_v40 = vsel %vm6122_vm2, %v2312_v29, %v2316_v15  ;;  %v1555_v41 = vor.u32 %v1554_v30, %v1551_v25  ;;  %v1570_v42 = vrot.slane %v1568_v32, 5  ;;  %v4989_v22 = vld [vmem:[%s6097_s27 + $0x4c] sm:$0xf] }
  0xdf   : > { %4252 = vmatmul.mubr.bf16.gmra.mrb[84].mxu1 %v5894_v61  ;;  %4155 = vmatmul.mubr.bf16.gmra.mrb[84].mxu0 %v4841_v19  ;;  %v1950_v43 = vrot.slane %v4883_v28, 5  ;;  %v2327_v45 = vsel %vm6122_vm2, %v2322_v34, %v2326_v21  ;;  %v1565_v46 = vor.u32 %v1564_v37, %v1560_v36  ;;  %v2329_v53 = vshrl.u32 %v4985_v39, 16  ;;  %v5897_v34 = vld [vmem:[%s6097_s27 + $0x3c] sm:$0xff]   ;;  %v4990_v37 = vld [vmem:[%s6097_s27 + $0x50] sm:$0x1] }
  0xe0   : > { %4162 = vmatprep.mubr.bf16.mxu0 %v4922_v10  ;;  %v1948_v48 = vsel %vm6262_vm5, %v4907_v33, %v1947_v38  ;;  %v1949_v49 = vrot.slane %v1947_v38, 4  ;;  %v5026_v50 = vcombine.low %v2317_v40, %v2327_v45  ;;  %v1556_v51 = vrot.slane %v1555_v41, 4 }
  0xe1   : > { %v2332_v54 = vshll.u32 %v4985_v39, 16  ;;  %v1566_v55 = vrot.slane %v1565_v46, 4  ;;  %v2338_v57 = vshll.u32 %v4986_v44, 16  ;;  %v2342_v58 = vshrl.u32 %v4986_v44, 16 }
  0xe2   : > { %v1951_v56 = vsel %vm6262_vm5, %v1949_v49, %v1950_v43  ;;  %4259 = vmatprep.mubr.bf16.mxu1 %v5026_v50  ;;  %v1561_v60 = vsel %vm6122_vm2, %v1556_v51, %v1560_v36  ;;  %v2331_v62 = vrot.slane %v2329_v53, 4  ;;  %v2348_v5 = vshll.u32 %v4987_v52, 16  ;;  %v4820_v43 = vld [vmem:[%s6097_s27 + $0x9c] sm:$0xf]  ;;  %v4822_v53 = vld [vmem:[%s6097_s27 + $0xa4] sm:$0x1] }
  0xe3   : > { %v4923_v61 = vcombine.low %v1948_v48, %v1951_v56  ;;  %v2334_v63 = vrot.slane %v2332_v54, 5  ;;  %v1571_v2 = vsel %vm6122_vm2, %v1566_v55, %v1570_v42  ;;  %v2340_v3 = vrot.slane %v2338_v57, 5  ;;  %v4821_v48 = vld [vmem:[%s6097_s27 + $0xa0] sm:$0xf]  ;;  %v4887_v54 = vld [vmem:[%s6097_s27 + $0xa8] sm:$0xe] }
  0xe4   : > { %v2344_v4 = vrot.slane %v2342_v58, 4  ;;  %v4842_v7 = vcombine.low %v1561_v60, %v1571_v2  ;;  %v1573_v10 = vshrl.u32 %v4817_v59, 16  ;;  %v1576_v11 = vshll.u32 %v4817_v59, 16  ;;  %v4888_v59 = vld [vmem:[%s6097_s27 + $0xac] sm:$0xf] }
  0xe5   : > { %v2335_v8 = vor.u32 %v2334_v63, %v2331_v62  ;;  %v2350_v14 = vrot.slane %v2348_v5, 5  ;;  %v1582_v15 = vshll.u32 %v4818_v0, 16  ;;  %v1586_v16 = vshrl.u32 %v4818_v0, 16  ;;  %v4889_v60 = vld [vmem:[%s6097_s27 + $0xb0] sm:$0x1] }
  0xe6   : > { %v2345_v13 = vor.u32 %v2344_v4, %v2340_v3  ;;  %v1575_v19 = vrot.slane %v1573_v10, 4  ;;  %v1578_v20 = vrot.slane %v1576_v11, 5  ;;  %v1592_v21 = vshll.u32 %v4819_v1, 16 }
  0xe7   : > { %4260 = vmatmul.mubr.bf16.gmra.mrb[88].mxu1 %v5895_v47  ;;  %4163 = vmatmul.mubr.bf16.gmra.mrb[88].mxu0 %v4842_v7  ;;  %v2336_v18 = vrot.slane %v2335_v8, 4  ;;  %v1584_v24 = vrot.slane %v1582_v15, 5  ;;  %v1588_v25 = vrot.slane %v1586_v16, 4  ;;  %v4908_v26 = vrot.slane %v4884_v6, 9 }
  0xe8   : > { %4170 = vmatprep.mubr.bf16.mxu0 %v4923_v61  ;;  %v2346_v23 = vrot.slane %v2345_v13, 4  ;;  %v1579_v28 = vor.u32 %v1578_v20, %v1575_v19  ;;  %v1594_v29 = vrot.slane %v1592_v21, 5  ;;  %v1954_v30 = vrot.slane %v4885_v12, 5  ;;  %v4991_v12 = vld [vmem:[%s6097_s27 + $0x54] sm:$0xf]  ;;  %v5898_v19 = vld [vmem:[%s6097_s27 + $0x48] sm:$0xff]  }
  0xe9   : > { %v2341_v27 = vsel %vm6122_vm2, %v2336_v18, %v2340_v3  ;;  %v1589_v33 = vor.u32 %v1588_v25, %v1584_v24  ;;  %v1957_v36 = vrot.slane %v4886_v9, 5  ;;  %v2353_v38 = vshrl.u32 %v4988_v17, 16  ;;  %v4992_v25 = vld [vmem:[%s6097_s27 + $0x58] sm:$0xf] }
  0xea   : > { %v2351_v32 = vsel %vm6122_vm2, %v2346_v23, %v2350_v14  ;;  %v1580_v40 = vrot.slane %v1579_v28, 4  ;;  %v1955_v41 = vsel %vm6262_vm5, %v4908_v26, %v1954_v30  ;;  %v1956_v42 = vrot.slane %v1954_v30, 4  ;;  %v4993_v26 = vld [vmem:[%s6097_s27 + $0x5c] sm:$0x1] }
  0xeb   : > { %v5027_v39 = vcombine.low %v2341_v27, %v2351_v32  ;;  %v1590_v44 = vrot.slane %v1589_v33, 4  ;;  %v2355_v45 = vrot.slane %v2353_v38, 4  ;;  %v2356_v46 = vshll.u32 %v4988_v17, 16 }
  0xec   : > { %v2362_v47 = vshll.u32 %v4989_v22, 16  ;;  %v1585_v49 = vsel %vm6122_vm2, %v1580_v40, %v1584_v24  ;;  %v1958_v50 = vsel %vm6262_vm5, %v1956_v42, %v1957_v36  ;;  %v2366_v51 = vshrl.u32 %v4989_v22, 16  ;;  %v4824_v36 = vld [vmem:[%s6097_s27 + $0xac] sm:$0xf] }
  0xed   : > { %4267 = vmatprep.mubr.bf16.mxu1 %v5027_v39  ;;  %v2372_v52 = vshll.u32 %v4990_v37, 16  ;;  %v1595_v55 = vsel %vm6122_vm2, %v1590_v44, %v1594_v29  ;;  %v4924_v56 = vcombine.low %v1955_v41, %v1958_v50  ;;  %v2358_v57 = vrot.slane %v2356_v46, 5  ;;  %v4825_v41 = vld [vmem:[%s6097_s27 + $0xb0] sm:$0x1] }
  0xee   : > { %v2364_v58 = vrot.slane %v2362_v47, 5  ;;  %v4843_v61 = vcombine.low %v1585_v49, %v1595_v55  ;;  %v2368_v62 = vrot.slane %v2366_v51, 4  ;;  %v1597_v0 = vshrl.u32 %v4820_v43, 16  ;;  %v4890_v47 = vld [vmem:[%s6097_s27 + $0xb4] sm:$0xe] }
  0xef   : > { %4268 = vmatmul.mubr.bf16.gmra.mrb[92].mxu1 %v5897_v34  ;;  %v2374_v63 = vrot.slane %v2372_v52, 5  ;;  %v2359_v2 = vor.u32 %v2358_v57, %v2355_v45  ;;  %v1600_v3 = vshll.u32 %v4820_v43, 16  ;;  %v1606_v4 = vshll.u32 %v4821_v48, 16  ;;  %v4823_v34 = vld [vmem:[%s6097_s27 + $0xa8] sm:$0xf] }
  0xf0   : > { %v1610_v5 = vshrl.u32 %v4821_v48, 16  ;;  %4171 = vmatmul.mubr.bf16.gmra.mrb[92].mxu0 %v4843_v61  ;;  %v2369_v7 = vor.u32 %v2368_v62, %v2364_v58  ;;  %v1599_v8 = vrot.slane %v1597_v0, 4  ;;  %v1616_v10 = vshll.u32 %v4822_v53, 16 }
  0xf1   : > { %v4909_v11 = vrot.slane %v4887_v54, 9  ;;  %4178 = vmatprep.mubr.bf16.mxu0 %v4924_v56  ;;  %v2360_v13 = vrot.slane %v2359_v2, 4  ;;  %v1602_v14 = vrot.slane %v1600_v3, 5  ;;  %v1608_v15 = vrot.slane %v1606_v4, 5 }
  0xf2   : > { %v1612_v16 = vrot.slane %v1610_v5, 4  ;;  %v2370_v17 = vrot.slane %v2369_v7, 4  ;;  %v1618_v18 = vrot.slane %v1616_v10, 5  ;;  %v1961_v20 = vrot.slane %v4888_v59, 5  ;;  %v4994_v5 = vld [vmem:[%s6097_s27 + $0x60] sm:$0xf] }
  0xf3   : > { %v1964_v21 = vrot.slane %v4889_v60, 5  ;;  %v2365_v22 = vsel %vm6122_vm2, %v2360_v13, %v2364_v58  ;;  %v1603_v23 = vor.u32 %v1602_v14, %v1599_v8  ;;  %v2377_v27 = vshrl.u32 %v4991_v12, 16  ;;  %v4891_v58 = vld [vmem:[%s6097_s27 + $0xb8] sm:$0xf]  ;;  %v4995_v13 = vld [vmem:[%s6097_s27 + $0x64] sm:$0xf] }
  0xf4   : > { %v1613_v24 = vor.u32 %v1612_v16, %v1608_v15  ;;  %v2375_v29 = vsel %vm6122_vm2, %v2370_v17, %v2374_v63  ;;  %v1962_v30 = vsel %vm6262_vm5, %v4909_v11, %v1961_v20  ;;  %v1963_v32 = vrot.slane %v1961_v20, 4  ;;  %v4892_v63 = vld [vmem:[%s6097_s27 + $0xbc] sm:$0x1] }
  0xf5   : > { %v2380_v33 = vshll.u32 %v4991_v12, 16  ;;  %v5028_v37 = vcombine.low %v2365_v22, %v2375_v29  ;;  %v1604_v38 = vrot.slane %v1603_v23, 4  ;;  %v2379_v40 = vrot.slane %v2377_v27, 4  ;;  %v4996_v27 = vld [vmem:[%s6097_s27 + $0x68] sm:$0x1] }
  0xf6   : > { %v1614_v39 = vrot.slane %v1613_v24, 4  ;;  %v1965_v43 = vsel %vm6262_vm5, %v1963_v32, %v1964_v21  ;;  %v2386_v45 = vshll.u32 %v4992_v25, 16  ;;  %v2390_v46 = vshrl.u32 %v4992_v25, 16 }
  0xf7   : > { %v2382_v44 = vrot.slane %v2380_v33, 5  ;;  %4275 = vmatprep.mubr.bf16.mxu1 %v5028_v37  ;;  %v1609_v49 = vsel %vm6122_vm2, %v1604_v38, %v1608_v15  ;;  %v4925_v51 = vcombine.low %v1962_v30, %v1965_v43  ;;  %v2396_v52 = vshll.u32 %v4993_v26, 16  ;;  %v5900_v26 = vld [vmem:[%s6097_s27 + $0x54] sm:$0xff]  }
  0xf8   : > { %v1619_v50 = vsel %vm6122_vm2, %v1614_v39, %v1618_v18  ;;  %4276 = vmatmul.mubr.bf16.gmra.mrb[96].mxu1 %v5898_v19  ;;  %v2388_v56 = vrot.slane %v2386_v45, 5  ;;  %v2392_v57 = vrot.slane %v2390_v46, 4  ;;  %v1621_v60 = vshrl.u32 %v4823_v34, 16  ;;  %v4826_v37 = vld [vmem:[%s6097_s27 + $0xb4] sm:$0xf] }
  0xf9   : > { %v4844_v54 = vcombine.low %v1609_v49, %v1619_v50  ;;  %v2383_v55 = vor.u32 %v2382_v44, %v2379_v40  ;;  %v2398_v59 = vrot.slane %v2396_v52, 5  ;;  %v1624_v61 = vshll.u32 %v4823_v34, 16  ;;  %v4827_v38 = vld [vmem:[%s6097_s27 + $0xb8] sm:$0xf] }
  0xfa   : > { %v1630_v62 = vshll.u32 %v4824_v36, 16  ;;  %v2393_v2 = vor.u32 %v2392_v57, %v2388_v56  ;;  %v1634_v3 = vshrl.u32 %v4824_v36, 16  ;;  %v1640_v4 = vshll.u32 %v4825_v41, 16 }
  0xfb   : > { %4179 = vmatmul.mubr.bf16.gmra.mrb[96].mxu0 %v4844_v54  ;;  %v2384_v0 = vrot.slane %v2383_v55, 4  ;;  %v1623_v8 = vrot.slane %v1621_v60, 4  ;;  %v1626_v10 = vrot.slane %v1624_v61, 5  ;;  %v4910_v12 = vrot.slane %v4890_v47, 9  ;;  %v4828_v55 = vld [vmem:[%s6097_s27 + $0xbc] sm:$0x1] }
  0xfc   : > { %4186 = vmatprep.mubr.bf16.mxu0 %v4925_v51  ;;  %v1632_v11 = vrot.slane %v1630_v62, 5  ;;  %v2394_v15 = vrot.slane %v2393_v2, 4  ;;  %v1636_v16 = vrot.slane %v1634_v3, 4  ;;  %v1642_v17 = vrot.slane %v1640_v4, 5 }
  0xfd   : > { %v2389_v14 = vsel %vm6122_vm2, %v2384_v0, %v2388_v56  ;;  %v1627_v19 = vor.u32 %v1626_v10, %v1623_v8  ;;  %v1968_v20 = vrot.slane %v4891_v58, 5  ;;  %v1971_v21 = vrot.slane %v4892_v63, 5 }
  0xfe   : > { %v2401_v22 = vshrl.u32 %v4994_v5, 16  ;;  %v2399_v24 = vsel %vm6122_vm2, %v2394_v15, %v2398_v59  ;;  %v1637_v25 = vor.u32 %v1636_v16, %v1632_v11  ;;  %v2404_v29 = vshll.u32 %v4994_v5, 16  ;;  %v4893_v5 = vld [vmem:[%s6097_s27 + $0xc0] sm:$0xe] }
  0xff   : > { %v2410_v30 = vshll.u32 %v4995_v13, 16  ;;  %v5029_v32 = vcombine.low %v2389_v14, %v2399_v24  ;;  %v1628_v33 = vrot.slane %v1627_v19, 4  ;;  %v1969_v34 = vsel %vm6262_vm5, %v4910_v12, %v1968_v20  ;;  %v4895_v14 = vld [vmem:[%s6097_s27 + $0xc8] sm:$0x1] }
 0x100   : > { %v1970_v36 = vrot.slane %v1968_v20, 4  ;;  %v1638_v39 = vrot.slane %v1637_v25, 4  ;;  %v2403_v40 = vrot.slane %v2401_v22, 4  ;;  %v2406_v41 = vrot.slane %v2404_v29, 5  ;;  %v4997_v20 = vld [vmem:[%s6097_s27 + $0x6c] sm:$0xf] }
 0x101   : > { %v2412_v43 = vrot.slane %v2410_v30, 5  ;;  %4283 = vmatprep.mubr.bf16.mxu1 %v5029_v32  ;;  %v1633_v44 = vsel %vm6122_vm2, %v1628_v33, %v1632_v11  ;;  %v2414_v46 = vshrl.u32 %v4995_v13, 16  ;;  %v2420_v47 = vshll.u32 %v4996_v27, 16  ;;  %v4894_v13 = vld [vmem:[%s6097_s27 + $0xc4] sm:$0xf] }
 0x102   : > { %v1972_v45 = vsel %vm6262_vm5, %v1970_v36, %v1971_v21  ;;  %v1643_v51 = vsel %vm6122_vm2, %v1638_v39, %v1642_v17  ;;  %4284 = vmatmul.mubr.bf16.gmra.mrb[100].mxu1 %v5900_v26  ;;  %v2407_v54 = vor.u32 %v2406_v41, %v2403_v40  ;;  %v1645_v56 = vshrl.u32 %v4826_v37, 16  ;;  %v5901_v25 = vld [vmem:[%s6097_s27 + $0x60] sm:$0xff]   ;;  %v4999_v36 = vld [vmem:[%s6097_s27 + $0x74] sm:$0x1] }
 0x103   : > { %v4926_v52 = vcombine.low %v1969_v34, %v1972_v45  ;;  %v4845_v59 = vcombine.low %v1633_v44, %v1643_v51  ;;  %v2416_v60 = vrot.slane %v2414_v46, 4  ;;  %v2422_v61 = vrot.slane %v2420_v47, 5 }
 0x104   : > { %v1648_v62 = vshll.u32 %v4826_v37, 16  ;;  %v2408_v0 = vrot.slane %v2407_v54, 4  ;;  %v1647_v2 = vrot.slane %v1645_v56, 4  ;;  %v1654_v3 = vshll.u32 %v4827_v38, 16 }
 0x105   : > { %v1658_v4 = vshrl.u32 %v4827_v38, 16  ;;  %4187 = vmatmul.mubr.bf16.gmra.mrb[100].mxu0 %v4845_v59  ;;  %v2417_v8 = vor.u32 %v2416_v60, %v2412_v43  ;;  %v1664_v11 = vshll.u32 %v4828_v55, 16  ;;  %v4911_v29 = vrot.slane %v4893_v5, 9  ;;  %v4831_v5 = vld [vmem:[%s6097_s27 + $0xc8] sm:$0x1] }
 0x106   : > { %v1650_v10 = vrot.slane %v1648_v62, 5  ;;  %4194 = vmatprep.mubr.bf16.mxu0 %v4926_v52  ;;  %v2413_v15 = vsel %vm6122_vm2, %v2408_v0, %v2412_v43  ;;  %v1656_v16 = vrot.slane %v1654_v3, 5  ;;  %v1975_v30 = vrot.slane %v4894_v13, 5  ;;  %v4829_v43 = vld [vmem:[%s6097_s27 + $0xc0] sm:$0xf] }
 0x107   : > { %v1660_v17 = vrot.slane %v1658_v4, 4  ;;  %v1666_v24 = vrot.slane %v1664_v11, 5  ;;  %v2425_v37 = vshrl.u32 %v4997_v20, 16  ;;  %v2428_v38 = vshll.u32 %v4997_v20, 16  ;;  %v4830_v62 = vld [vmem:[%s6097_s27 + $0xc4] sm:$0xf] }
 0x108   : > { %v1977_v41 = vrot.slane %v1975_v30, 4  ;;  %v1672_v20 = vshll.u32 %v4829_v43, 16 }
 0x109   : > { %v1661_v27 = vor.u32 %v1660_v17, %v1656_v16  ;;  %v2427_v47 = vrot.slane %v2425_v37, 4  ;;  %v2430_v51 = vrot.slane %v2428_v38, 5 }
 0x10a   : > { %v6772_v1 = vpop.f32.mrb[0].mxu1  ;;  %v6777_v9 = vpop.f32.mrb[0].mxu0 }
 0x10b   : > { %v6774_v6 = vpop.f32.mrb[1].mxu1  ;;  %v6793_v42 = vpop.f32.mrb[1].mxu0  ;;  %v2431_v3 = vor.u32 %v2430_v51, %v2427_v47 }
 0x10c   : > { %v6784_v28 = vpop.f32.mrb[2].mxu1  ;;  %v6804_v53 = vpop.f32.mrb[2].mxu0  ;;  %v6846_v12 = vadd.f32 %v6774_v6, %v6772_v1  ;;  %v6854_v19 = vadd.f32 %v6793_v42, %v6777_v9  ;;  %v2418_v1 = vrot.slane %v2417_v8, 4  ;;  %v1651_v6 = vor.u32 %v1650_v10, %v1647_v2  ;;  %v4998_v42 = vld [vmem:[%s6097_s27 + $0x70] sm:$0xf] }
 0x10d   : > { %v6798_v48 = vpop.f32.mrb[3].mxu1  ;;  %v6809_v7 = vpop.f32.mrb[3].mxu0  ;;  %v1978_v9 = vrot.slane %v4895_v14, 5  ;;  %v2434_v52 = vshll.u32 %v4998_v42, 16  ;;  %v2438_v60 = vshrl.u32 %v4998_v42, 16  ;;  %v1669_v14 = vshrl.u32 %v4829_v43, 16 }
 0x10e   : > { %7732 = vst [vmem:[#allocation6_spill] sm:$0xff] %v6846_v12  ;;  %v6864_v26 = vadd.f32 %v6798_v48, %v6784_v28  ;;  %v2423_v33 = vsel %vm6122_vm2, %v2418_v1, %v2422_v61  ;;  %v1652_v34 = vrot.slane %v1651_v6, 4  ;;  %v1662_v28 = vrot.slane %v1661_v27, 4  ;;  %v5041_v43 = vld [vmem:[%s6097_s27 + $0x1c] sm:$0xf] }
 0x10f   : > { %v5030_v40 = vcombine.low %v2413_v15, %v2423_v33  ;;  %v1976_v48 = vsel %vm6262_vm5, %v4911_v29, %v1975_v30  ;;  %v1979_v59 = vsel %vm6262_vm5, %v1977_v41, %v1978_v9  ;;  %v2444_v61 = vshll.u32 %v4999_v36, 16  ;;  %v5000_v15 = vld [vmem:[%s6097_s27 + $0x78] sm:$0xf]  ;;  %v5002_v33 = vld [vmem:[%s6097_s27 + $0x80] sm:$0x1] }
 0x110   : > { %7733 = vst [vmem:[#allocation7_spill] sm:$0xff] %v6864_v26  ;;  %v1657_v46 = vsel %vm6122_vm2, %v1652_v34, %v1656_v16  ;;  %v1667_v56 = vsel %vm6122_vm2, %v1662_v28, %v1666_v24  ;;  %v4927_v2 = vcombine.low %v1976_v48, %v1979_v59  ;;  %v2436_v4 = vrot.slane %v2434_v52, 5  ;;  %v5001_v24 = vld [vmem:[%s6097_s27 + $0x7c] sm:$0xf]  ;;  %v5075_v26 = vld [vmem:[%s6097_s27 + $0xa4] sm:$0x1] }
 0x111   : > { %4291 = vmatprep.mubr.bf16.mxu1 %v5030_v40  ;;  %v4846_v0 = vcombine.low %v1657_v46, %v1667_v56  ;;  %v2440_v10 = vrot.slane %v2438_v60, 4  ;;  %v2446_v11 = vrot.slane %v2444_v61, 5  ;;  %v6897_v13 = vadd.f32 %v6809_v7, %v6804_v53 }
 0x112   : > { %v6814_v18 = vpop.f32.mrb[4].mxu1  ;;  %v6830_v49 = vpop.f32.mrb[4].mxu0  ;;  %4292 = vmatmul.mubr.bf16.gmra.mrb[104].mxu1 %v5901_v25  ;;  %v2432_v17 = vrot.slane %v2431_v3, 4  ;;  %v1678_v1 = vshll.u32 %v4830_v62, 16  ;;  %v1682_v6 = vshrl.u32 %v4830_v62, 16  ;;  %v1671_v27 = vrot.slane %v1669_v14, 4 }
 0x113   : > { %v6816_v23 = vpop.f32.mrb[5].mxu1  ;;  %v6837_v57 = vpop.f32.mrb[5].mxu0  ;;  %4195 = vmatmul.mubr.bf16.gmra.mrb[104].mxu0 %v4846_v0  ;;  %v2441_v25 = vor.u32 %v2440_v10, %v2436_v4  ;;  %v1688_v29 = vshll.u32 %v4831_v5, 16  ;;  %v1674_v30 = vrot.slane %v1672_v20, 5  ;;  %v2449_v48 = vshrl.u32 %v5000_v15, 16 }
 0x114   : > { %v6832_v50 = vpop.f32.mrb[6].mxu1  ;;  %v6841_v63 = vpop.f32.mrb[6].mxu0  ;;  %4202 = vmatprep.mubr.bf16.mxu0 %v4927_v2  ;;  %v6905_v53 = vadd.f32 %v6816_v23, %v6814_v18  ;;  %v2437_v7 = vsel %vm6122_vm2, %v2432_v17, %v2436_v4  ;;  %v1680_v9 = vrot.slane %v1678_v1, 5  ;;  %v1684_v42 = vrot.slane %v1682_v6, 4  ;;  %v5040_v23 = vld [vmem:[%s6097_s27 + $0x18] sm:$0xe] }
 0x115   : > { %v6839_v58 = vpop.f32.mrb[7].mxu1  ;;  %v6857_v21 = vpop.f32.mrb[7].mxu0  ;;  %v2442_v36 = vrot.slane %v2441_v25, 4  ;;  %v1690_v37 = vrot.slane %v1688_v29, 5  ;;  %v6914_v38 = vadd.f32 %v6837_v57, %v6830_v49  ;;  %v1675_v40 = vor.u32 %v1674_v30, %v1671_v27  ;;  %v5903_v49 = vld [vmem:[%s6097_s27 + $0x6c] sm:$0xff]  }
 0x116   : > { %7734 = vst [vmem:[#allocation8_spill] sm:$0xff] %v6905_v53  ;;  %v6918_v18 = vadd.f32 %v6839_v58, %v6832_v50  ;;  %v1685_v28 = vor.u32 %v1684_v42, %v1680_v9  ;;  %v2452_v41 = vshll.u32 %v5000_v15, 16  ;;  %v2458_v57 = vshll.u32 %v5001_v24, 16  ;;  %v5042_v0 = vld [vmem:[%s6097_s27 + $0x20] sm:$0x1] }
 0x117   : > { %v2447_v51 = vsel %vm6122_vm2, %v2442_v36, %v2446_v11  ;;  %v2462_v52 = vshrl.u32 %v5001_v24, 16  ;;  %v2468_v50 = vshll.u32 %v5002_v33, 16  ;;  %v1676_v60 = vrot.slane %v1675_v40, 4  ;;  %v5043_v11 = vld [vmem:[%s6097_s27 + $0x24] sm:$0xe]  ;;  %v5904_v40 = vld [vmem:[%s6097_s27 + $0x78] sm:$0xff]  }
 0x118   : > { %7735 = vst [vmem:[#allocation9_spill] sm:$0xff] %v6918_v18  ;;  %v5031_v59 = vcombine.low %v2437_v7, %v2447_v51  ;;  %v1686_v61 = vrot.slane %v1685_v28, 4  ;;  %v2451_v62 = vrot.slane %v2449_v48, 4  ;;  %v2454_v3 = vrot.slane %v2452_v41, 5  ;;  %v5044_v1 = vld [vmem:[%s6097_s27 + $0x28] sm:$0xf] }
 0x119   : > { %v2460_v4 = vrot.slane %v2458_v57, 5  ;;  %v2464_v5 = vrot.slane %v2462_v52, 4  ;;  %v2470_v10 = vrot.slane %v2468_v50, 5  ;;  %v1681_v14 = vsel %vm6122_vm2, %v1676_v60, %v1680_v9  ;;  %v5045_v6 = vld [vmem:[%s6097_s27 + $0x2c] sm:$0x1] }
 0x11a   : > { %v6859_v22 = vpop.f32.mrb[8].mxu1  ;;  %v6872_v39 = vpop.f32.mrb[8].mxu0  ;;  %4299 = vmatprep.mubr.bf16.mxu1 %v5031_v59  ;;  %v1691_v15 = vsel %vm6122_vm2, %v1686_v61, %v1690_v37  ;;  %v5088_v17 = vrot.slane %v5040_v23, 9  ;;  %v2818_v20 = vrot.slane %v5041_v43, 5  ;;  %v2455_v25 = vor.u32 %v2454_v3, %v2451_v62  ;;  %v5003_v36 = vld [vmem:[%s6097_s27 + $0x84] sm:$0xf] }
 0x11b   : > { %v6867_v32 = vpop.f32.mrb[9].mxu1  ;;  %v6879_v45 = vpop.f32.mrb[9].mxu0  ;;  %v4847_v24 = vcombine.low %v1681_v14, %v1691_v15  ;;  %4300 = vmatmul.mubr.bf16.gmra.mrb[108].mxu1 %v5903_v49  ;;  %v2465_v27 = vor.u32 %v2464_v5, %v2460_v4  ;;  %v2821_v29 = vrot.slane %v5042_v0, 5  ;;  %v6949_v42 = vadd.f32 %v6857_v21, %v6841_v63  ;;  %v5004_v41 = vld [vmem:[%s6097_s27 + $0x88] sm:$0xf] }
 0x11c   : > { %v6877_v44 = vpop.f32.mrb[10].mxu1  ;;  %v6885_v55 = vpop.f32.mrb[10].mxu0  ;;  %v2819_v30 = vsel %vm6262_vm5, %v5088_v17, %v2818_v20  ;;  %v2820_v9 = vrot.slane %v2818_v20, 4  ;;  %v5089_v33 = vrot.slane %v5043_v11, 9  ;;  %v2456_v37 = vrot.slane %v2455_v25, 4 }
 0x11d   : > { %v6883_v54 = vpop.f32.mrb[11].mxu1  ;;  %v6893_v8 = vpop.f32.mrb[11].mxu0  ;;  %4203 = vmatmul.mubr.bf16.gmra.mrb[108].mxu0 %v4847_v24  ;;  %v2466_v23 = vrot.slane %v2465_v27, 4  ;;  %v2825_v28 = vrot.slane %v5044_v1, 5  ;;  %v2828_v48 = vrot.slane %v5045_v6, 5  ;;  %v6958_v51 = vadd.f32 %v6867_v32, %v6859_v22 }
 0x11e   : > { %v2822_v43 = vsel %vm6262_vm5, %v2820_v9, %v2821_v29  ;;  %v6962_v63 = vadd.f32 %v6879_v45, %v6872_v39  ;;  %v6966_v21 = vadd.f32 %v6883_v54, %v6877_v44  ;;  %v5005_v49 = vld [vmem:[%s6097_s27 + $0x8c] sm:$0x1]  ;;  %v5046_v57 = vld [vmem:[%s6097_s27 + $0x30] sm:$0xe]  ;;  %v2461_v59 = vsel %vm6122_vm2, %v2456_v37, %v2460_v4  ;;  %v5047_v45 = vld [vmem:[%s6097_s27 + $0x34] sm:$0xf] }
 0x11f   : > { %7736 = vst [vmem:[#allocation10_spill] sm:$0xff] %v6958_v51  ;;  %v2471_v22 = vsel %vm6122_vm2, %v2466_v23, %v2470_v10  ;;  %v5104_v32 = vcombine.low %v2819_v30, %v2822_v43  ;;  %v2826_v39 = vsel %vm6262_vm5, %v5089_v33, %v2825_v28  ;;  %v5048_v44 = vld [vmem:[%s6097_s27 + $0x38] sm:$0x1]  ;;  %v2827_v62 = vrot.slane %v2825_v28, 4  ;;  %v5049_v5 = vld [vmem:[%s6097_s27 + $0x3c] sm:$0xe] }
 0x120   : > { %7737 = vst [vmem:[#allocation11_spill] sm:$0xff] %v6966_v21  ;;  %v5032_v61 = vcombine.low %v2461_v59, %v2471_v22  ;;  %v2473_v0 = vshrl.u32 %v5003_v36, 16  ;;  %v2476_v3 = vshll.u32 %v5003_v36, 16  ;;  %v2482_v10 = vshll.u32 %v5004_v41, 16  ;;  %v5050_v29 = vld [vmem:[%s6097_s27 + $0x40] sm:$0xf] }
 0x121   : > { %5686 = vmatprep.mubr.bf16.mxu0 %v5104_v32  ;;  %v2486_v14 = vshrl.u32 %v5004_v41, 16  ;;  %v2492_v15 = vshll.u32 %v5005_v49, 16  ;;  %v5090_v17 = vrot.slane %v5046_v57, 9  ;;  %v2829_v6 = vsel %vm6262_vm5, %v2827_v62, %v2828_v48  ;;  %v5051_v23 = vld [vmem:[%s6097_s27 + $0x44] sm:$0x1] }
 0x122   : > { %v6900_v16 = vpop.f32.mrb[12].mxu1  ;;  %v6922_v46 = vpop.f32.mrb[12].mxu0  ;;  %4307 = vmatprep.mubr.bf16.mxu1 %v5032_v61  ;;  %v2475_v24 = vrot.slane %v2473_v0, 4  ;;  %v2478_v25 = vrot.slane %v2476_v3, 5  ;;  %v2832_v27 = vrot.slane %v5047_v45, 5  ;;  %v5105_v9 = vcombine.low %v2826_v39, %v2829_v6  ;;  %v5905_v6 = vld [vmem:[%s6097_s27 + $0x84] sm:$0xff]  }
 0x123   : > { %v6910_v34 = vpop.f32.mrb[13].mxu1  ;;  %v6929_v58 = vpop.f32.mrb[13].mxu0  ;;  %4308 = vmatmul.mubr.bf16.gmra.mrb[112].mxu1 %v5904_v40  ;;  %v2484_v33 = vrot.slane %v2482_v10, 5  ;;  %v2488_v36 = vrot.slane %v2486_v14, 4  ;;  %v2494_v37 = vrot.slane %v2492_v15, 5  ;;  %v2835_v49 = vrot.slane %v5048_v44, 5 }
 0x124   : > { %v6924_v47 = vpop.f32.mrb[14].mxu1  ;;  %v6934_v2 = vpop.f32.mrb[14].mxu0  ;;  %v2479_v41 = vor.u32 %v2478_v25, %v2475_v24  ;;  %v2833_v48 = vsel %vm6262_vm5, %v5090_v17, %v2832_v27  ;;  %v2834_v43 = vrot.slane %v2832_v27, 4  ;;  %v7007_v40 = vadd.f32 %v6893_v8, %v6885_v55  ;;  %v5006_v32 = vld [vmem:[%s6097_s27 + $0x90] sm:$0xf] }
 0x125   : > { %v6931_v56 = vpop.f32.mrb[15].mxu1  ;;  %v6943_v7 = vpop.f32.mrb[15].mxu0  ;;  %5687 = vmatmul.mubr.bf16.vlgmr.msra.gmra.mrb[112].mxu0 %v5105_v9  ;;  %v2489_v57 = vor.u32 %v2488_v36, %v2484_v33  ;;  %v5091_v59 = vrot.slane %v5049_v5, 9  ;;  %v2839_v22 = vrot.slane %v5050_v29, 5  ;;  %v2842_v61 = vrot.slane %v5051_v23, 5 }
 0x126   : > { %v2480_v39 = vrot.slane %v2479_v41, 4  ;;  %v2836_v45 = vsel %vm6262_vm5, %v2834_v43, %v2835_v49  ;;  %v7014_v44 = vadd.f32 %v6910_v34, %v6900_v16  ;;  %v5007_v62 = vld [vmem:[%s6097_s27 + $0x94] sm:$0xf]  ;;  %v5008_v0 = vld [vmem:[%s6097_s27 + $0x98] sm:$0x1]  ;;  %v7030_v16 = vadd.f32 %v6929_v58, %v6922_v46 }
 0x127   : > { %v2490_v3 = vrot.slane %v2489_v57, 4  ;;  %v5106_v10 = vcombine.low %v2833_v48, %v2836_v45  ;;  %v2840_v55 = vsel %vm6262_vm5, %v5091_v59, %v2839_v22  ;;  %v2841_v8 = vrot.slane %v2839_v22, 4  ;;  %v5052_v5 = vld [vmem:[%s6097_s27 + $0x48] sm:$0xe]  ;;  %v5053_v25 = vld [vmem:[%s6097_s27 + $0x4c] sm:$0xf] }
 0x128   : > { %7738 = vst [vmem:[#allocation12_spill] sm:$0xff] %v7014_v44  ;;  %v2485_v17 = vsel %vm6122_vm2, %v2480_v39, %v2484_v33  ;;  %v7034_v34 = vadd.f32 %v6931_v56, %v6924_v47  ;;  %v2497_v24 = vshrl.u32 %v5006_v32, 16  ;;  %v2500_v58 = vshll.u32 %v5006_v32, 16  ;;  %v5054_v47 = vld [vmem:[%s6097_s27 + $0x50] sm:$0x1] }
 0x129   : > { %v2495_v9 = vsel %vm6122_vm2, %v2490_v3, %v2494_v37  ;;  %5690 = vmatprep.mubr.bf16.mxu0 %v5106_v10  ;;  %v2843_v46 = vsel %vm6262_vm5, %v2841_v8, %v2842_v61  ;;  %v2506_v33 = vshll.u32 %v5007_v62, 16  ;;  %v2510_v43 = vshrl.u32 %v5007_v62, 16  ;;  %v5055_v49 = vld [vmem:[%s6097_s27 + $0x54] sm:$0xe]  ;;  %v5056_v57 = vld [vmem:[%s6097_s27 + $0x58] sm:$0xf] }
 0x12a   : > { %v6970_v52 = vpop.f32.mrb[16].mxu1  ;;  %v6972_v50 = vpop.f32.mrb[16].mxu0  ;;  %7739 = vst [vmem:[#allocation13_spill] sm:$0xff] %v7034_v34  ;;  %v5033_v23 = vcombine.low %v2485_v17, %v2495_v9  ;;  %v5107_v41 = vcombine.low %v2840_v55, %v2843_v46  ;;  %v2499_v48 = vrot.slane %v2497_v24, 4  ;;  %v2502_v59 = vrot.slane %v2500_v58, 5 }
 0x12b   : > { %v6982_v54 = vpop.f32.mrb[17].mxu1  ;;  %v6984_v60 = vpop.f32.mrb[17].mxu0  ;;  %v2508_v37 = vrot.slane %v2506_v33, 5  ;;  %v2516_v22 = vshll.u32 %v5008_v0, 16  ;;  %v5092_v39 = vrot.slane %v5052_v5, 9  ;;  %v2512_v61 = vrot.slane %v2510_v43, 4 }
 0x12c   : > { %v6987_v4 = vpop.f32.mrb[18].mxu1  ;;  %v6989_v11 = vpop.f32.mrb[18].mxu0  ;;  %v5057_v45 = vld [vmem:[%s6097_s27 + $0x5c] sm:$0x1]  ;;  %4315 = vmatprep.mubr.bf16.mxu1 %v5033_v23  ;;  %v2846_v32 = vrot.slane %v5053_v25, 5  ;;  %v2849_v3 = vrot.slane %v5054_v47, 5  ;;  %v7055_v10 = vadd.f32 %v6943_v7, %v6934_v2  ;;  %v2503_v62 = vor.u32 %v2502_v59, %v2499_v48 }
 0x12d   : > { %v6991_v20 = vpop.f32.mrb[19].mxu1  ;;  %v6993_v1 = vpop.f32.mrb[19].mxu0  ;;  %4316 = vmatmul.mubr.bf16.gmra.mrb[116].mxu1 %v5905_v6  ;;  %5691 = vmatmul.mubr.bf16.gmra.mrb[116].mxu0 %v5107_v41  ;;  %v2518_v8 = vrot.slane %v2516_v22, 5  ;;  %v5093_v0 = vrot.slane %v5055_v49, 9  ;;  %v2853_v5 = vrot.slane %v5056_v57, 5  ;;  %v2513_v24 = vor.u32 %v2512_v61, %v2508_v37  ;;  %v5906_v61 = vld [vmem:[%s6097_s27 + $0x90] sm:$0xff]  }
 0x12e   : > { %v2847_v25 = vsel %vm6262_vm5, %v5092_v39, %v2846_v32  ;;  %v2848_v9 = vrot.slane %v2846_v32, 4  ;;  %v2856_v46 = vrot.slane %v5057_v45, 5  ;;  %v5009_v2 = vld [vmem:[%s6097_s27 + $0x9c] sm:$0xf]  ;;  %v5010_v7 = vld [vmem:[%s6097_s27 + $0xa0] sm:$0xf]  ;;  %v5328_v47 = vadd.f32 %v6982_v54, %v6970_v52 }
 0x12f   : > { %v2504_v58 = vrot.slane %v2503_v62, 4  ;;  %v2854_v6 = vsel %vm6262_vm5, %v5093_v0, %v2853_v5  ;;  %v2855_v33 = vrot.slane %v2853_v5, 4  ;;  %v5011_v23 = vld [vmem:[%s6097_s27 + $0xa4] sm:$0x1]  ;;  %v2514_v43 = vrot.slane %v2513_v24, 4 }
 0x130   : > { %v2850_v49 = vsel %vm6262_vm5, %v2848_v9, %v2849_v3  ;;  %v7078_v57 = vadd.f32 %v6984_v60, %v6972_v50  ;;  %v5331_v59 = vadd.f32 %v6991_v20, %v6987_v4  ;;  %v5058_v52 = vld [vmem:[%s6097_s27 + $0x60] sm:$0xe]  ;;  %v7093_v50 = vadd.f32 %v5328_v47, %v6854_v19  ;;  %v5059_v60 = vld [vmem:[%s6097_s27 + $0x64] sm:$0xf]  ;;  %v5060_v4 = vld [vmem:[%s6097_s27 + $0x68] sm:$0x1] }
 0x131   : > { %v2509_v39 = vsel %vm6122_vm2, %v2504_v58, %v2508_v37  ;;  %v5108_v45 = vcombine.low %v2847_v25, %v2850_v49  ;;  %v2857_v32 = vsel %vm6262_vm5, %v2855_v33, %v2856_v46  ;;  %v2519_v3 = vsel %vm6122_vm2, %v2514_v43, %v2518_v8  ;;  %v5061_v5 = vld [vmem:[%s6097_s27 + $0x6c] sm:$0xe]  ;;  %v5062_v24 = vld [vmem:[%s6097_s27 + $0x70] sm:$0xf]  ;;  %v5063_v33 = vld [vmem:[%s6097_s27 + $0x74] sm:$0x1] }
 0x132   : > { %v6998_v30 = vpop.f32.mrb[20].mxu1  ;;  %v7021_v14 = vpop.f32.mrb[20].mxu0  ;;  %7740 = vst [vmem:[#allocation14_spill] sm:$0xff] %v7093_v50  ;;  %v5109_v62 = vcombine.low %v2854_v6, %v2857_v32  ;;  %v7102_v0 = vadd.f32 %v5331_v59, %v6897_v13  ;;  %v2521_v37 = vshrl.u32 %v5009_v2, 16  ;;  %v5034_v9 = vcombine.low %v2509_v39, %v2519_v3  ;;  %v5069_v51 = vld [vmem:[%s6097_s27 + $0x8c] sm:$0x1] }
 0x133   : > { %v7001_v28 = vpop.f32.mrb[21].mxu1  ;;  %v7037_v27 = vpop.f32.mrb[21].mxu0  ;;  %5694 = vmatprep.mubr.bf16.mxu0 %v5108_v45  ;;  %v2524_v19 = vshll.u32 %v5009_v2, 16  ;;  %v2530_v46 = vshll.u32 %v5010_v7, 16  ;;  %v2534_v58 = vshrl.u32 %v5010_v7, 16  ;;  %v2540_v34 = vshll.u32 %v5011_v23, 16 }
 0x134   : > { %v7023_v15 = vpop.f32.mrb[22].mxu1  ;;  %v7046_v56 = vpop.f32.mrb[22].mxu0  ;;  %7741 = vst [vmem:[#allocation15_spill] sm:$0xff] %v7102_v0  ;;  %v2523_v49 = vrot.slane %v2521_v37, 4  ;;  %v5094_v8 = vrot.slane %v5058_v52, 9  ;;  %v2860_v6 = vrot.slane %v5059_v60, 5  ;;  %4323 = vmatprep.mubr.bf16.mxu1 %v5034_v9  ;;  %v7115_v45 = vadd.f32 %v6993_v1, %v6989_v11 }
 0x135   : > { %v7039_v29 = vpop.f32.mrb[23].mxu1  ;;  %v7057_v55 = vpop.f32.mrb[23].mxu0  ;;  %5695 = vmatmul.mubr.bf16.gmra.mrb[120].mxu0 %v5109_v62  ;;  %v2526_v13 = vrot.slane %v2524_v19, 5  ;;  %v2532_v43 = vrot.slane %v2530_v46, 5  ;;  %v2536_v59 = vrot.slane %v2534_v58, 4  ;;  %v2863_v32 = vrot.slane %v5060_v4, 5  ;;  %4324 = vmatmul.mubr.bf16.gmra.mrb[120].mxu1 %v5906_v61 }
 0x136   : > { %v2542_v39 = vrot.slane %v2540_v34, 5  ;;  %v2861_v2 = vsel %vm6262_vm5, %v5094_v8, %v2860_v6  ;;  %v2862_v7 = vrot.slane %v2860_v6, 4  ;;  %v5095_v60 = vrot.slane %v5061_v5, 9  ;;  %v5012_v62 = vld [vmem:[%s6097_s27 + $0xa8] sm:$0xf] }
 0x137   : > { %v2527_v23 = vor.u32 %v2526_v13, %v2523_v49  ;;  %v2537_v52 = vor.u32 %v2536_v59, %v2532_v43  ;;  %v2867_v3 = vrot.slane %v5062_v24, 5  ;;  %v2870_v4 = vrot.slane %v5063_v33, 5  ;;  %v5013_v1 = vld [vmem:[%s6097_s27 + $0xac] sm:$0xf]  ;;  %v5907_v49 = vld [vmem:[%s6097_s27 + $0x9c] sm:$0xff]  }
 0x138   : > { %v2864_v34 = vsel %vm6262_vm5, %v2862_v7, %v2863_v32  ;;  %v5334_v9 = vadd.f32 %v7001_v28, %v6998_v30  ;;  %v7128_v11 = vadd.f32 %v7037_v27, %v7021_v14  ;;  %v5014_v30 = vld [vmem:[%s6097_s27 + $0xb0] sm:$0x1]  ;;  %v5337_v6 = vadd.f32 %v7039_v29, %v7023_v15  ;;  %v5064_v59 = vld [vmem:[%s6097_s27 + $0x78] sm:$0xe]  ;;  %v5065_v32 = vld [vmem:[%s6097_s27 + $0x7c] sm:$0xf] }
 0x139   : > { %v2528_v19 = vrot.slane %v2527_v23, 4  ;;  %v2538_v46 = vrot.slane %v2537_v52, 4  ;;  %v5110_v58 = vcombine.low %v2861_v2, %v2864_v34  ;;  %v2868_v33 = vsel %vm6262_vm5, %v5095_v60, %v2867_v3  ;;  %v5066_v60 = vld [vmem:[%s6097_s27 + $0x80] sm:$0x1]  ;;  %v5087_v50 = vld [vmem:[%s6097_s27 + $0xd4] sm:$0x1] }
 0x13a   : > { %v7048_v36 = vpop.f32.mrb[24].mxu1  ;;  %v7070_v41 = vpop.f32.mrb[24].mxu0  ;;  %v2869_v27 = vrot.slane %v2867_v3, 4  ;;  %v7144_v8 = vadd.f32 %v5334_v9, %v6914_v38  ;;  %v2545_v13 = vshrl.u32 %v5012_v62, 16  ;;  %v2548_v23 = vshll.u32 %v5012_v62, 16 }
 0x13b   : > { %v7059_v17 = vpop.f32.mrb[25].mxu1  ;;  %v7083_v54 = vpop.f32.mrb[25].mxu0  ;;  %v2533_v2 = vsel %vm6122_vm2, %v2528_v19, %v2532_v43  ;;  %v2543_v7 = vsel %vm6122_vm2, %v2538_v46, %v2542_v39  ;;  %5698 = vmatprep.mubr.bf16.mxu0 %v5110_v58  ;;  %v2554_v52 = vshll.u32 %v5013_v1, 16  ;;  %v5067_v3 = vld [vmem:[%s6097_s27 + $0x84] sm:$0xe]  ;;  %v7159_v29 = vadd.f32 %v5337_v6, %v6949_v42 }
 0x13c   : > { %v7072_v48 = vpop.f32.mrb[26].mxu1  ;;  %v7097_v20 = vpop.f32.mrb[26].mxu0  ;;  %7742 = vst [vmem:[#allocation16_spill] sm:$0xff] %v7144_v8  ;;  %v5035_v38 = vcombine.low %v2533_v2, %v2543_v7  ;;  %v2871_v15 = vsel %vm6262_vm5, %v2869_v27, %v2870_v4  ;;  %v2547_v34 = vrot.slane %v2545_v13, 4  ;;  %v2550_v19 = vrot.slane %v2548_v23, 5 }
 0x13d   : > { %v7085_v22 = vpop.f32.mrb[27].mxu1  ;;  %v7106_v25 = vpop.f32.mrb[27].mxu0  ;;  %7743 = vst [vmem:[#allocation17_spill] sm:$0xff] %v7159_v29  ;;  %v5111_v43 = vcombine.low %v2868_v33, %v2871_v15  ;;  %v2556_v44 = vrot.slane %v2554_v52, 5  ;;  %v2558_v39 = vshrl.u32 %v5013_v1, 16  ;;  %v2564_v58 = vshll.u32 %v5014_v30, 16 }
 0x13e   : > { %v5068_v46 = vld [vmem:[%s6097_s27 + $0x88] sm:$0xf]  ;;  %4331 = vmatprep.mubr.bf16.mxu1 %v5035_v38  ;;  %v5096_v2 = vrot.slane %v5064_v59, 9  ;;  %v2874_v7 = vrot.slane %v5065_v32, 5  ;;  %v2877_v21 = vrot.slane %v5066_v60, 5  ;;  %v2551_v42 = vor.u32 %v2550_v19, %v2547_v34 }
 0x13f   : > { %4332 = vmatmul.mubr.bf16.gmra.mrb[124].mxu1 %v5907_v49  ;;  %5699 = vmatmul.mubr.bf16.gmra.mrb[124].mxu0 %v5111_v43  ;;  %v2560_v4 = vrot.slane %v2558_v39, 4  ;;  %v7169_v33 = vadd.f32 %v7057_v55, %v7046_v56  ;;  %v5097_v27 = vrot.slane %v5067_v3, 9  ;;  %v2566_v13 = vrot.slane %v2564_v58, 5  ;;  %v5015_v3 = vld [vmem:[%s6097_s27 + $0xb4] sm:$0xf] }
 0x140   : > { %v2875_v30 = vsel %vm6262_vm5, %v5096_v2, %v2874_v7  ;;  %v2876_v59 = vrot.slane %v2874_v7, 4  ;;  %v2881_v49 = vrot.slane %v5068_v46, 5  ;;  %v2552_v52 = vrot.slane %v2551_v42, 4  ;;  %v5070_v42 = vld [vmem:[%s6097_s27 + $0x90] sm:$0xe] }
 0x141   : > { %v2561_v56 = vor.u32 %v2560_v4, %v2556_v44  ;;  %v2884_v55 = vrot.slane %v5069_v51, 5  ;;  %v5340_v60 = vadd.f32 %v7059_v17, %v7048_v36  ;;  %v7194_v51 = vadd.f32 %v7083_v54, %v7070_v41  ;;  %v5016_v36 = vld [vmem:[%s6097_s27 + $0xb8] sm:$0xf]  ;;  %v5017_v17 = vld [vmem:[%s6097_s27 + $0xbc] sm:$0x1] }
 0x142   : > { %v7109_v47 = vpop.f32.mrb[28].mxu1  ;;  %v7120_v61 = vpop.f32.mrb[28].mxu0  ;;  %v2878_v34 = vsel %vm6262_vm5, %v2876_v59, %v2877_v21  ;;  %v2882_v43 = vsel %vm6262_vm5, %v5097_v27, %v2881_v49  ;;  %v2883_v19 = vrot.slane %v2881_v49, 4  ;;  %v2557_v46 = vsel %vm6122_vm2, %v2552_v52, %v2556_v44  ;;  %v5908_v21 = vld [vmem:[%s6097_s27 + $0xa8] sm:$0xff]   ;;  %v5071_v4 = vld [vmem:[%s6097_s27 + $0x94] sm:$0xf] }
 0x143   : > { %v7118_v37 = vpop.f32.mrb[29].mxu1  ;;  %v7133_v24 = vpop.f32.mrb[29].mxu0  ;;  %v2562_v58 = vrot.slane %v2561_v56, 4  ;;  %v5112_v2 = vcombine.low %v2875_v30, %v2878_v34  ;;  %v7204_v7 = vadd.f32 %v5340_v60, %v6962_v63  ;;  %v5343_v54 = vadd.f32 %v7085_v22, %v7072_v48  ;;  %v5072_v30 = vld [vmem:[%s6097_s27 + $0x98] sm:$0x1] }
 0x144   : > { %v7131_v5 = vpop.f32.mrb[30].mxu1  ;;  %v7141_v14 = vpop.f32.mrb[30].mxu0  ;;  %v2885_v41 = vsel %vm6262_vm5, %v2883_v19, %v2884_v55  ;;  %v2569_v44 = vshrl.u32 %v5015_v3, 16  ;;  %v2572_v59 = vshll.u32 %v5015_v3, 16  ;;  %v2578_v52 = vshll.u32 %v5016_v36, 16 }
 0x145   : > { %v7139_v28 = vpop.f32.mrb[31].mxu1  ;;  %v7161_v9 = vpop.f32.mrb[31].mxu0  ;;  %7744 = vst [vmem:[#allocation18_spill] sm:$0xff] %v7204_v7  ;;  %v2567_v49 = vsel %vm6122_vm2, %v2562_v58, %v2566_v13  ;;  %5702 = vmatprep.mubr.bf16.mxu0 %v5112_v2  ;;  %v5113_v63 = vcombine.low %v2882_v43, %v2885_v41  ;;  %v2582_v56 = vshrl.u32 %v5016_v36, 16  ;;  %v5073_v60 = vld [vmem:[%s6097_s27 + $0x9c] sm:$0xe]  ;;  %v7219_v18 = vadd.f32 %v5343_v54, %v7007_v40 }
 0x146   : > { %v5036_v34 = vcombine.low %v2557_v46, %v2567_v49  ;;  %v2571_v55 = vrot.slane %v2569_v44, 4  ;;  %v2574_v19 = vrot.slane %v2572_v59, 5  ;;  %v5074_v53 = vld [vmem:[%s6097_s27 + $0xa0] sm:$0xf]  ;;  %v2580_v48 = vrot.slane %v2578_v52, 5 }
 0x147   : > { %7745 = vst [vmem:[#allocation19_spill] sm:$0xff] %v7219_v18  ;;  %5703 = vmatmul.mubr.bf16.gmra.mrb[128].mxu0 %v5113_v63  ;;  %v2584_v22 = vrot.slane %v2582_v56, 4  ;;  %v2588_v3 = vshll.u32 %v5017_v17, 16  ;;  %v5098_v12 = vrot.slane %v5070_v42, 9  ;;  %v2888_v46 = vrot.slane %v5071_v4, 5 }
 0x148   : > { %4339 = vmatprep.mubr.bf16.mxu1 %v5036_v34  ;;  %v2575_v36 = vor.u32 %v2574_v19, %v2571_v55  ;;  %v2891_v58 = vrot.slane %v5072_v30, 5  ;;  %v7229_v40 = vadd.f32 %v7106_v25, %v7097_v20  ;;  %v5099_v54 = vrot.slane %v5073_v60, 9  ;;  %v5018_v59 = vld [vmem:[%s6097_s27 + $0xc0] sm:$0xf]  ;;  %v5019_v52 = vld [vmem:[%s6097_s27 + $0xc4] sm:$0xf] }
 0x149   : > { %4340 = vmatmul.mubr.bf16.gmra.mrb[128].mxu1 %v5908_v21  ;;  %v2585_v17 = vor.u32 %v2584_v22, %v2580_v48  ;;  %v2590_v42 = vrot.slane %v2588_v3, 5  ;;  %v2895_v44 = vrot.slane %v5074_v53, 5  ;;  %v2889_v20 = vsel %vm6262_vm5, %v5098_v12, %v2888_v46  ;;  %v5909_v60 = vld [vmem:[%s6097_s27 + $0xb4] sm:$0xff]   ;;  %v5020_v19 = vld [vmem:[%s6097_s27 + $0xc8] sm:$0x1] }
 0x14a   : > { %v7164_v62 = vpop.f32.mrb[32].mxu1  ;;  %v7173_v6 = vpop.f32.mrb[32].mxu0  ;;  %v2576_v30 = vrot.slane %v2575_v36, 4  ;;  %v2890_v25 = vrot.slane %v2888_v46, 4  ;;  %v2898_v63 = vrot.slane %v5075_v26, 5  ;;  %v5346_v55 = vadd.f32 %v7118_v37, %v7109_v47 }
 0x14b   : > { %v7171_v1 = vpop.f32.mrb[33].mxu1  ;;  %v7179_v23 = vpop.f32.mrb[33].mxu0  ;;  %v2586_v56 = vrot.slane %v2585_v17, 4  ;;  %v2896_v53 = vsel %vm6262_vm5, %v5099_v54, %v2895_v44  ;;  %v2897_v34 = vrot.slane %v2895_v44, 4  ;;  %v7259_v3 = vadd.f32 %v7133_v24, %v7120_v61  ;;  %v5076_v46 = vld [vmem:[%s6097_s27 + $0xa8] sm:$0xe] }
 0x14c   : > { %v7177_v32 = vpop.f32.mrb[34].mxu1  ;;  %v7186_v15 = vpop.f32.mrb[34].mxu0  ;;  %v2581_v26 = vsel %vm6122_vm2, %v2576_v30, %v2580_v48  ;;  %v2892_v22 = vsel %vm6262_vm5, %v2890_v25, %v2891_v58  ;;  %v5349_v36 = vadd.f32 %v7139_v28, %v7131_v5  ;;  %v5077_v47 = vld [vmem:[%s6097_s27 + $0xac] sm:$0xf]  ;;  %v7274_v61 = vadd.f32 %v5346_v55, %v7030_v16  ;;  %v5078_v24 = vld [vmem:[%s6097_s27 + $0xb0] sm:$0x1] }
 0x14d   : > { %v7184_v38 = vpop.f32.mrb[35].mxu1  ;;  %v7198_v39 = vpop.f32.mrb[35].mxu0  ;;  %v2591_v48 = vsel %vm6122_vm2, %v2586_v56, %v2590_v42  ;;  %v5114_v54 = vcombine.low %v2889_v20, %v2892_v22  ;;  %v2899_v58 = vsel %vm6262_vm5, %v2897_v34, %v2898_v63  ;;  %v5079_v44 = vld [vmem:[%s6097_s27 + $0xb4] sm:$0xe]  ;;  %v2593_v7 = vshrl.u32 %v5018_v59, 16 }
 0x14e   : > { %7746 = vst [vmem:[#allocation20_spill] sm:$0xff] %v7274_v61  ;;  %v5037_v30 = vcombine.low %v2581_v26, %v2591_v48  ;;  %v5115_v25 = vcombine.low %v2896_v53, %v2899_v58  ;;  %v7283_v18 = vadd.f32 %v5349_v36, %v7055_v10  ;;  %v5080_v42 = vld [vmem:[%s6097_s27 + $0xb8] sm:$0xf]  ;;  %v2596_v16 = vshll.u32 %v5018_v59, 16  ;;  %v5081_v48 = vld [vmem:[%s6097_s27 + $0xbc] sm:$0x1] }
 0x14f   : > { %5706 = vmatprep.mubr.bf16.mxu0 %v5114_v54  ;;  %v2602_v56 = vshll.u32 %v5019_v52, 16  ;;  %v2606_v34 = vshrl.u32 %v5019_v52, 16  ;;  %v2612_v55 = vshll.u32 %v5020_v19, 16  ;;  %v2595_v53 = vrot.slane %v2593_v7, 4 }
 0x150   : > { %7747 = vst [vmem:[#allocation21_spill] sm:$0xff] %v7283_v18  ;;  %4347 = vmatprep.mubr.bf16.mxu1 %v5037_v30  ;;  %5707 = vmatmul.mubr.bf16.gmra.mrb[132].mxu0 %v5115_v25  ;;  %v5100_v26 = vrot.slane %v5076_v46, 9  ;;  %v2902_v10 = vrot.slane %v5077_v47, 5  ;;  %v2905_v36 = vrot.slane %v5078_v24, 5  ;;  %v2598_v58 = vrot.slane %v2596_v16, 5 }
 0x151   : > { %4348 = vmatmul.mubr.bf16.gmra.mrb[132].mxu1 %v5909_v60  ;;  %v2604_v18 = vrot.slane %v2602_v56, 5  ;;  %v2608_v61 = vrot.slane %v2606_v34, 4  ;;  %v2614_v54 = vrot.slane %v2612_v55, 5  ;;  %v7297_v19 = vadd.f32 %v7161_v9, %v7141_v14  ;;  %v5021_v30 = vld [vmem:[%s6097_s27 + $0xcc] sm:$0xf] }
 0x152   : > { %v7208_v27 = vpop.f32.mrb[36].mxu1  ;;  %v7225_v43 = vpop.f32.mrb[36].mxu0  ;;  %v2903_v59 = vsel %vm6262_vm5, %v5100_v26, %v2902_v10  ;;  %v2904_v52 = vrot.slane %v2902_v10, 4  ;;  %v5101_v7 = vrot.slane %v5079_v44, 9  ;;  %v2599_v46 = vor.u32 %v2598_v58, %v2595_v53  ;;  %v5022_v9 = vld [vmem:[%s6097_s27 + $0xd0] sm:$0xf] }
 0x153   : > { %v7223_v13 = vpop.f32.mrb[37].mxu1  ;;  %v7233_v41 = vpop.f32.mrb[37].mxu0  ;;  %v2609_v47 = vor.u32 %v2608_v61, %v2604_v18  ;;  %v2909_v24 = vrot.slane %v5080_v42, 5  ;;  %v2912_v60 = vrot.slane %v5081_v48, 5  ;;  %v5352_v56 = vadd.f32 %v7171_v1, %v7164_v62  ;;  %v5023_v61 = vld [vmem:[%s6097_s27 + $0xd4] sm:$0x1] }
 0x154   : > { %v7231_v2 = vpop.f32.mrb[38].mxu1  ;;  %v7238_v4 = vpop.f32.mrb[38].mxu0  ;;  %v2906_v16 = vsel %vm6262_vm5, %v2904_v52, %v2905_v36  ;;  %v7308_v34 = vadd.f32 %v7179_v23, %v7173_v6  ;;  %v5355_v14 = vadd.f32 %v7184_v38, %v7177_v32  ;;  %v2600_v55 = vrot.slane %v2599_v46, 4  ;;  %v5082_v1 = vld [vmem:[%s6097_s27 + $0xc0] sm:$0xe] }
 0x155   : > { %v7236_v49 = vpop.f32.mrb[39].mxu1  ;;  %v7243_v21 = vpop.f32.mrb[39].mxu0  ;;  %v2610_v53 = vrot.slane %v2609_v47, 4  ;;  %v5116_v26 = vcombine.low %v2903_v59, %v2906_v16  ;;  %v2910_v62 = vsel %vm6262_vm5, %v5101_v7, %v2909_v24  ;;  %v2911_v32 = vrot.slane %v2909_v24, 4  ;;  %v5083_v48 = vld [vmem:[%s6097_s27 + $0xc4] sm:$0xf] }
 0x156   : > { %v7326_v38 = vadd.f32 %v5352_v56, %v7078_v57  ;;  %v7329_v10 = vadd.f32 %v5355_v14, %v7115_v45  ;;  %v2617_v36 = vshrl.u32 %v5021_v30, 16  ;;  %v2605_v52 = vsel %vm6122_vm2, %v2600_v55, %v2604_v18  ;;  %v5910_v57 = vld [vmem:[%s6097_s27 + $0xc0] sm:$0xff]   ;;  %v5084_v45 = vld [vmem:[%s6097_s27 + $0xc8] sm:$0x1] }
 0x157   : > { %v2615_v7 = vsel %vm6122_vm2, %v2610_v53, %v2614_v54  ;;  %5710 = vmatprep.mubr.bf16.mxu0 %v5116_v26  ;;  %v2620_v46 = vshll.u32 %v5021_v30, 16  ;;  %v2626_v47 = vshll.u32 %v5022_v9, 16  ;;  %v2913_v56 = vsel %vm6262_vm5, %v2911_v32, %v2912_v60  ;;  %v5086_v53 = vld [vmem:[%s6097_s27 + $0xd0] sm:$0xf] }
 0x158   : > { %7748 = vst [vmem:[#allocation22_spill] sm:$0xff] %v7326_v38  ;;  %7749 = vst [vmem:[#allocation23_spill] sm:$0xff] %v7329_v10  ;;  %v5038_v16 = vcombine.low %v2605_v52, %v2615_v7  ;;  %v2619_v14 = vrot.slane %v2617_v36, 4  ;;  %v2630_v10 = vshrl.u32 %v5022_v9, 16  ;;  %v5085_v38 = vld [vmem:[%s6097_s27 + $0xcc] sm:$0xe]  ;;  %v5117_v18 = vcombine.low %v2910_v62, %v2913_v56 }
 0x159   : > { %v2622_v55 = vrot.slane %v2620_v46, 5  ;;  %v2628_v29 = vrot.slane %v2626_v47, 5  ;;  %v2636_v54 = vshll.u32 %v5023_v61, 16  ;;  %v5102_v30 = vrot.slane %v5082_v1, 9 }
 0x15a   : > { %v7251_v12 = vpop.f32.mrb[40].mxu1  ;;  %v7267_v17 = vpop.f32.mrb[40].mxu0  ;;  %4355 = vmatprep.mubr.bf16.mxu1 %v5038_v16  ;;  %v2632_v26 = vrot.slane %v2630_v10, 4  ;;  %v2916_v8 = vrot.slane %v5083_v48, 5  ;;  %v2919_v0 = vrot.slane %v5084_v45, 5  ;;  %5711 = vmatmul.mubr.bf16.gmra.mrb[136].mxu0 %v5117_v18  ;;  %v5267_v60 = vadd.f32 %v7198_v39, %v7186_v15 }
 0x15b   : > { %v7265_v37 = vpop.f32.mrb[41].mxu1  ;;  %v7280_v28 = vpop.f32.mrb[41].mxu0  ;;  %4356 = vmatmul.mubr.bf16.gmra.mrb[136].mxu1 %v5910_v57  ;;  %v2623_v52 = vor.u32 %v2622_v55, %v2619_v14  ;;  %v2638_v7 = vrot.slane %v2636_v54, 5  ;;  %v5103_v9 = vrot.slane %v5085_v38, 9  ;;  %v2923_v46 = vrot.slane %v5086_v53, 5 }
 0x15c   : > { %v7278_v5 = vpop.f32.mrb[42].mxu1  ;;  %v7288_v63 = vpop.f32.mrb[42].mxu0  ;;  %v2633_v62 = vor.u32 %v2632_v26, %v2628_v29  ;;  %v2917_v61 = vsel %vm6262_vm5, %v5102_v30, %v2916_v8  ;;  %v2918_v36 = vrot.slane %v2916_v8, 4  ;;  %v2926_v48 = vrot.slane %v5087_v50, 5 }
 0x15d   : > { %v7286_v20 = vpop.f32.mrb[43].mxu1  ;;  %v7290_v22 = vpop.f32.mrb[43].mxu0  ;;  %v2624_v1 = vrot.slane %v2623_v52, 4  ;;  %v5358_v57 = vadd.f32 %v7223_v13, %v7208_v27  ;;  %v5270_v47 = vadd.f32 %v7233_v41, %v7225_v43  ;;  %v2924_v38 = vsel %vm6262_vm5, %v5103_v9, %v2923_v46  ;;  %v5911_v43 = vld [vmem:[%s6097_s27 + $0xcc] sm:$0xff]   ;;  %s148_s27 = sand.u32 1, %s5974_s10  }
 0x15e   : > { %v2634_v15 = vrot.slane %v2633_v62, 4  ;;  %v2920_v39 = vsel %vm6262_vm5, %v2918_v36, %v2919_v0  ;;  %v2925_v8 = vrot.slane %v2923_v46, 4  ;;  %v5361_v27 = vadd.f32 %v7236_v49, %v7231_v2  ;;  %s4670_s7 = sshll.u32 %s148_s27, 8  ;;  %s7677_s12 = scalar_lea.sflag [#allocation4], %s148_s27 }
 0x15f   : > { %v2629_v56 = vsel %vm6122_vm2, %v2624_v1, %v2628_v29  ;;  %v5118_v50 = vcombine.low %v2917_v61, %v2920_v39  ;;  %v7364_v14 = vadd.f32 %v5358_v57, %v7128_v11  ;;  %v5273_v41 = vadd.f32 %v7243_v21, %v7238_v4  ;;  %v7753_v39 = vld [vmem:[#allocation17_spill] sm:$0xff]  ;;  %s7599_s8 = scalar_lea.vmem [#allocation3], %s4670_s7 }
 0x160   : > { %v2639_v13 = vsel %vm6122_vm2, %v2634_v15, %v2638_v7  ;;  %v2927_v0 = vsel %vm6262_vm5, %v2925_v8, %v2926_v48  ;;  %v5364_v29 = vadd.f32 %v7265_v37, %v7251_v12  ;;  %v7378_v54 = vadd.f32 %v5361_v27, %v7169_v33  ;;  %s4582_s16 = sshll.u32 %s7599_s8, 4  ;;  %s7671_s16 = int_to_ptr.vmem [resolvable:$true] %s4582_s16 }
 0x161   : > { %v5039_v55 = vcombine.low %v2629_v56, %v2639_v13  ;;  %5714 = vmatprep.mubr.bf16.mxu0 %v5118_v50  ;;  %v5119_v11 = vcombine.low %v2924_v38, %v2927_v0  ;;  %v5276_v35 = vadd.f32 %v7280_v28, %v7267_v17  ;;  %v5367_v49 = vadd.f32 %v7286_v20, %v7278_v5  ;;  %s5912_s24 = scalar_lea.vmem %s7671_s16, 4096  ;;  %p5919_p1 = scmp.lt.s32.totalorder %s7671_s16, %s5917_s26 }
 0x162   : > { %v7300_v25 = vpop.f32.mrb[44].mxu1  ;;  %v7316_v42 = vpop.f32.mrb[44].mxu0  ;;  %v7383_v31 = vadd.f32 %v5364_v29, %v7194_v51  ;;  %v5279_v4 = vadd.f32 %v7290_v22, %v7288_v63  ;;  %p5913_p12 = scmp.ne.s32.totalorder %s7671_s16, %s5912_s24  ;;  %p5920_p2 = scmp.lt.s32.totalorder %s5918_s28, %s5912_s24 }
 0x163   : > { %v7314_v44 = vpop.f32.mrb[45].mxu1  ;;  %v7323_v23 = vpop.f32.mrb[45].mxu0  ;;  %4363 = vmatprep.mubr.bf16.mxu1 %v5039_v55  ;;  %5715 = vmatmul.mubr.bf16.gmra.mrb[140].mxu0 %v5119_v11  ;;  %v7398_v28 = vadd.f32 %v5367_v49, %v7229_v40 }
 0x164   : > { %v7321_v6 = vpop.f32.mrb[46].mxu1  ;;  %v7334_v59 = vpop.f32.mrb[46].mxu0  ;;  %v5370_v21 = vadd.f32 %v7314_v44, %v7300_v25  ;;  %v5282_v33 = vadd.f32 %v7323_v23, %v7316_v42  ;;  %4364 = vmatmul.mubr.bf16.gmra.mrb[140].mxu1 %v5911_v43  ;;  %p5914_p13 = pnand %p5913_p12, %p6050_p4  ;;  %p5921_p3 = por %p5920_p2, %p5919_p1 }
 0x165   : > { %v7332_v58 = vpop.f32.mrb[47].mxu1  ;;  %v7342_v24 = vpop.f32.mrb[47].mxu0 }
 0x166   : > { %v5373_v37 = vadd.f32 %v7332_v58, %v7321_v6  ;;  %v5285_v51 = vadd.f32 %v7342_v24, %v7334_v59  ;;  %v7401_v20 = vadd.f32 %v5370_v21, %v7259_v3  ;;  %v7750_v24 = vld [vmem:[#allocation14_spill] sm:$0xff]  ;;  %v7751_v3 = vld [vmem:[#allocation15_spill] sm:$0xff]  ;;  %p5915_p0 = pneg %p5914_p13 }
 0x168   : > { %v7404_v44 = vadd.f32 %v5373_v37, %v7297_v19  ;;  %p5922_p5 = pnand %p5921_p3, %p5915_p0 }
 0x16a   : > { %v5374_v32 = vpop.f32.mrb[48].mxu1  ;;  %v5438_v18 = vpop.f32.mrb[48].mxu0 }
 0x16b   : > { %v5375_v10 = vpop.f32.mrb[49].mxu1  ;;  %v5439_v2 = vpop.f32.mrb[49].mxu0 }
 0x16c   : > { %v5377_v45 = vpop.f32.mrb[50].mxu1  ;;  %v5441_v12 = vpop.f32.mrb[50].mxu0  ;;  %v5376_v63 = vadd.f32 %v5375_v10, %v5374_v32  ;;  %v5440_v22 = vadd.f32 %v5439_v2, %v5438_v18  ;;  %v7755_v2 = vld [vmem:[#allocation19_spill] sm:$0xff] }
 0x16d   : > { %v5378_v16 = vpop.f32.mrb[51].mxu1  ;;  %v5442_v17 = vpop.f32.mrb[51].mxu0 }
 0x16e   : > { %v5379_v42 = vadd.f32 %v5378_v16, %v5377_v45  ;;  %v5443_v6 = vadd.f32 %v5442_v17, %v5441_v12  ;;  %v7407_v59 = vadd.f32 %v5376_v63, %v7308_v34  ;;  %v7410_v53 = vadd.f32 %v5440_v22, %v7750_v24 }
 0x170   : > { %v7412_v26 = vadd.f32 %v5379_v42, %v5267_v60  ;;  %v7415_v30 = vadd.f32 %v5443_v6, %v7751_v3  ;;  %v7752_v60 = vld [vmem:[#allocation16_spill] sm:$0xff] }
 0x171   : > { %v7756_v6 = vld [vmem:[#allocation20_spill] sm:$0xff] }
 0x172   : > { %v5380_v5 = vpop.f32.mrb[52].mxu1  ;;  %v5444_v9 = vpop.f32.mrb[52].mxu0 }
 0x173   : > { %v5381_v25 = vpop.f32.mrb[53].mxu1  ;;  %v5445_v62 = vpop.f32.mrb[53].mxu0 }
 0x174   : > { %v5382_v23 = vadd.f32 %v5381_v25, %v5380_v5  ;;  %v5383_v58 = vpop.f32.mrb[54].mxu1  ;;  %v5446_v34 = vadd.f32 %v5445_v62, %v5444_v9  ;;  %v5447_v36 = vpop.f32.mrb[54].mxu0  ;;  %v7758_v9 = vld [vmem:[#allocation6_spill] sm:$0xff]  ;;  %v7759_v62 = vld [vmem:[#allocation7_spill] sm:$0xff] }
 0x175   : > { %v5384_v40 = vpop.f32.mrb[55].mxu1  ;;  %v5448_v1 = vpop.f32.mrb[55].mxu0 }
 0x176   : > { %v7417_v52 = vadd.f32 %v5382_v23, %v5270_v47  ;;  %v5385_v19 = vadd.f32 %v5384_v40, %v5383_v58  ;;  %v7422_v57 = vadd.f32 %v5446_v34, %v7752_v60  ;;  %v5449_v45 = vadd.f32 %v5448_v1, %v5447_v36 }
 0x178   : > { %v7419_v7 = vadd.f32 %v5385_v19, %v5273_v41  ;;  %v7427_v38 = vadd.f32 %v5449_v45, %v7753_v39  ;;  %v7754_v41 = vld [vmem:[#allocation18_spill] sm:$0xff]  ;;  %v7757_v19 = vld [vmem:[#allocation21_spill] sm:$0xff] }
 0x179   : > { %v7760_v45 = vld [vmem:[#allocation22_spill] sm:$0xff] }
 0x17a   : > { %v5386_v32 = vpop.f32.mrb[56].mxu1  ;;  %v5450_v16 = vpop.f32.mrb[56].mxu0 }
 0x17b   : > { %v5387_v61 = vpop.f32.mrb[57].mxu1  ;;  %v5451_v56 = vpop.f32.mrb[57].mxu0 }
 0x17c   : > { %v5388_v46 = vadd.f32 %v5387_v61, %v5386_v32  ;;  %v5389_v10 = vpop.f32.mrb[58].mxu1  ;;  %v5452_v50 = vadd.f32 %v5451_v56, %v5450_v16  ;;  %v5453_v27 = vpop.f32.mrb[58].mxu0 }
 0x17d   : > { %v5390_v48 = vpop.f32.mrb[59].mxu1  ;;  %v5454_v43 = vpop.f32.mrb[59].mxu0 }
 0x17e   : > { %v7424_v15 = vadd.f32 %v5388_v46, %v5276_v35  ;;  %v5391_v47 = vadd.f32 %v5390_v48, %v5389_v10  ;;  %v7432_v29 = vadd.f32 %v5452_v50, %v7754_v41  ;;  %v5455_v18 = vadd.f32 %v5454_v43, %v5453_v27  ;;  %v7761_v27 = vld [vmem:[#allocation23_spill] sm:$0xff]  ;;  %v7762_v43 = vld [vmem:[#allocation8_spill] sm:$0xff] }
 0x180   : > { %v7429_v8 = vadd.f32 %v5391_v47, %v5279_v4  ;;  %v7435_v49 = vadd.f32 %v5455_v18, %v7755_v2 }
 0x182   : > { %v5392_v13 = vpop.f32.mrb[60].mxu1  ;;  %v5456_v12 = vpop.f32.mrb[60].mxu0 }
 0x183   : > { %v5393_v0 = vpop.f32.mrb[61].mxu1  ;;  %v5457_v17 = vpop.f32.mrb[61].mxu0 }
 0x184   : > { %v5394_v55 = vadd.f32 %v5393_v0, %v5392_v13  ;;  %v5395_v11 = vpop.f32.mrb[62].mxu1  ;;  %v5458_v5 = vadd.f32 %v5457_v17, %v5456_v12  ;;  %v5459_v63 = vpop.f32.mrb[62].mxu0 }
 0x185   : > { %v5396_v35 = vpop.f32.mrb[63].mxu1  ;;  %v5460_v25 = vpop.f32.mrb[63].mxu0 }
 0x186   : > { %v7437_v21 = vadd.f32 %v5394_v55, %v5282_v33  ;;  %v5397_v4 = vadd.f32 %v5396_v35, %v5395_v11  ;;  %v7442_v23 = vadd.f32 %v5458_v5, %v7756_v6  ;;  %v5461_v58 = vadd.f32 %v5460_v25, %v5459_v63  ;;  %v7763_v55 = vld [vmem:[#allocation9_spill] sm:$0xff] }
 0x188   : > { %v7439_v37 = vadd.f32 %v5397_v4, %v5285_v51  ;;  %v7445_v33 = vadd.f32 %v5461_v58, %v7757_v19  ;;  %v7765_v19 = vld [vmem:[#allocation11_spill] sm:$0xff] }
 0x18a   : > { %v5398_v22 = vpop.f32.mrb[64].mxu1  ;;  %v5462_v34 = vpop.f32.mrb[64].mxu0 }
 0x18b   : > { %v5399_v42 = vpop.f32.mrb[65].mxu1  ;;  %v5463_v36 = vpop.f32.mrb[65].mxu0 }
 0x18c   : > { %v5400_v24 = vadd.f32 %v5399_v42, %v5398_v22  ;;  %v5401_v40 = vpop.f32.mrb[66].mxu1  ;;  %v5464_v46 = vadd.f32 %v5463_v36, %v5462_v34  ;;  %v5465_v10 = vpop.f32.mrb[66].mxu0 }
 0x18d   : > { %v5402_v3 = vpop.f32.mrb[67].mxu1  ;;  %v5466_v48 = vpop.f32.mrb[67].mxu0 }
 0x18e   : > { %v7448_v32 = vadd.f32 %v5400_v24, %v7758_v9  ;;  %v5403_v51 = vadd.f32 %v5402_v3, %v5401_v40  ;;  %v7454_v47 = vadd.f32 %v5464_v46, %v7760_v45  ;;  %v5467_v39 = vadd.f32 %v5466_v48, %v5465_v10  ;;  %v7764_v24 = vld [vmem:[#allocation10_spill] sm:$0xff] }
 0x190   : > { %v7451_v61 = vadd.f32 %v5403_v51, %v7759_v62  ;;  %v7457_v13 = vadd.f32 %v5467_v39, %v7761_v27  ;;  %v7766_v39 = vld [vmem:[#allocation12_spill] sm:$0xff]  ;;  %v7767_v27 = vld [vmem:[#allocation13_spill] sm:$0xff] }
 0x192   : > { %v5404_v1 = vpop.f32.mrb[68].mxu1  ;;  %v5468_v18 = vpop.f32.mrb[68].mxu0 }
 0x193   : > { %v5405_v60 = vpop.f32.mrb[69].mxu1  ;;  %v5469_v35 = vpop.f32.mrb[69].mxu0 }
 0x194   : > { %v5406_v16 = vadd.f32 %v5405_v60, %v5404_v1  ;;  %v5407_v56 = vpop.f32.mrb[70].mxu1  ;;  %v5470_v2 = vadd.f32 %v5469_v35, %v5468_v18  ;;  %v5471_v4 = vpop.f32.mrb[70].mxu0 }
 0x195   : > { %v5408_v50 = vpop.f32.mrb[71].mxu1  ;;  %v5472_v17 = vpop.f32.mrb[71].mxu0 }
 0x196   : > { %v7460_v0 = vadd.f32 %v5406_v16, %v7762_v43  ;;  %v5409_v41 = vadd.f32 %v5408_v50, %v5407_v56  ;;  %v7466_v63 = vadd.f32 %v5470_v2, %v7364_v14  ;;  %v5473_v22 = vadd.f32 %v5472_v17, %v5471_v4 }
 0x198   : > { %v7463_v11 = vadd.f32 %v5409_v41, %v7763_v55  ;;  %v7469_v58 = vadd.f32 %v5473_v22, %v7378_v54 }
 0x19a   : > { %v5410_v12 = vpop.f32.mrb[72].mxu1  ;;  %v5474_v51 = vpop.f32.mrb[72].mxu0 }
 0x19b   : > { %v5411_v5 = vpop.f32.mrb[73].mxu1  ;;  %v5475_v62 = vpop.f32.mrb[73].mxu0 }
 0x19c   : > { %v5412_v25 = vadd.f32 %v5411_v5, %v5410_v12  ;;  %v5413_v42 = vpop.f32.mrb[74].mxu1  ;;  %v5476_v36 = vadd.f32 %v5475_v62, %v5474_v51  ;;  %v5477_v14 = vpop.f32.mrb[74].mxu0 }
 0x19d   : > { %v5414_v6 = vpop.f32.mrb[75].mxu1  ;;  %v5478_v10 = vpop.f32.mrb[75].mxu0 }
 0x19e   : > { %v7472_v40 = vadd.f32 %v5412_v25, %v7764_v24  ;;  %v5415_v3 = vadd.f32 %v5414_v6, %v5413_v42  ;;  %v7478_v60 = vadd.f32 %v5476_v36, %v7383_v31  ;;  %v5479_v54 = vadd.f32 %v5478_v10, %v5477_v14 }
 0x1a0   : > { %v7475_v9 = vadd.f32 %v5415_v3, %v7765_v19  ;;  %v7484_v50 = vadd.f32 %v5479_v54, %v7398_v28 }
 0x1a2   : > { %v5416_v34 = vpop.f32.mrb[76].mxu1  ;;  %v5480_v41 = vpop.f32.mrb[76].mxu0 }
 0x1a3   : > { %v5417_v46 = vpop.f32.mrb[77].mxu1  ;;  %v5481_v18 = vpop.f32.mrb[77].mxu0 }
 0x1a4   : > { %v5418_v1 = vadd.f32 %v5417_v46, %v5416_v34  ;;  %v5419_v48 = vpop.f32.mrb[78].mxu1  ;;  %v5482_v55 = vadd.f32 %v5481_v18, %v5480_v41  ;;  %v5483_v35 = vpop.f32.mrb[78].mxu0 }
 0x1a5   : > { %v5420_v45 = vpop.f32.mrb[79].mxu1  ;;  %v5484_v2 = vpop.f32.mrb[79].mxu0 }
 0x1a6   : > { %v7481_v16 = vadd.f32 %v5418_v1, %v7766_v39  ;;  %v5421_v56 = vadd.f32 %v5420_v45, %v5419_v48  ;;  %v7490_v31 = vadd.f32 %v5482_v55, %v7401_v20  ;;  %v5485_v4 = vadd.f32 %v5484_v2, %v5483_v35 }
 0x1a8   : > { %v7487_v43 = vadd.f32 %v5421_v56, %v7767_v27  ;;  %v7493_v12 = vadd.f32 %v5485_v4, %v7404_v44 }
 0x1aa   : > { %v5550_v17 = vpop.f32.mrb[80].mxu1  ;;  %v5486_v22 = vpop.f32.mrb[80].mxu0 }
 0x1ab   : > { %v5551_v5 = vpop.f32.mrb[81].mxu1  ;;  %v5487_v42 = vpop.f32.mrb[81].mxu0 }
 0x1ac   : > { %v5552_v28 = vadd.f32 %v5551_v5, %v5550_v17  ;;  %v5553_v25 = vpop.f32.mrb[82].mxu1  ;;  %v5488_v24 = vadd.f32 %v5487_v42, %v5486_v22  ;;  %v5489_v3 = vpop.f32.mrb[82].mxu0 }
 0x1ad   : > { %v5554_v6 = vpop.f32.mrb[83].mxu1  ;;  %v5490_v62 = vpop.f32.mrb[83].mxu0 }
 0x1ae   : > { %v5555_v19 = vadd.f32 %v5554_v6, %v5553_v25  ;;  %v7496_v51 = vadd.f32 %v5552_v28, %v7410_v53  ;;  %v7499_v20 = vadd.f32 %v5488_v24, %v7407_v59  ;;  %v5491_v34 = vadd.f32 %v5490_v62, %v5489_v3 }
 0x1b0   : > { %v7502_v44 = vadd.f32 %v5555_v19, %v7415_v30  ;;  %v7505_v36 = vadd.f32 %v5491_v34, %v7412_v26 }
 0x1b2   : > { %v5556_v14 = vpop.f32.mrb[84].mxu1  ;;  %v5492_v48 = vpop.f32.mrb[84].mxu0 }
 0x1b3   : > { %v5557_v46 = vpop.f32.mrb[85].mxu1  ;;  %v5493_v45 = vpop.f32.mrb[85].mxu0 }
 0x1b4   : > { %v5558_v10 = vadd.f32 %v5557_v46, %v5556_v14  ;;  %v5559_v1 = vpop.f32.mrb[86].mxu1  ;;  %v5494_v59 = vadd.f32 %v5493_v45, %v5492_v48  ;;  %v5495_v56 = vpop.f32.mrb[86].mxu0 }
 0x1b5   : > { %v5560_v54 = vpop.f32.mrb[87].mxu1  ;;  %v5496_v27 = vpop.f32.mrb[87].mxu0 }
 0x1b6   : > { %v5561_v53 = vadd.f32 %v5560_v54, %v5559_v1  ;;  %v7508_v39 = vadd.f32 %v5558_v10, %v7422_v57  ;;  %v7514_v26 = vadd.f32 %v5494_v59, %v7417_v52  ;;  %v5497_v41 = vadd.f32 %v5496_v27, %v5495_v56 }
 0x1b8   : > { %v7511_v30 = vadd.f32 %v5561_v53, %v7427_v38  ;;  %v7517_v18 = vadd.f32 %v5497_v41, %v7419_v7 }
 0x1ba   : > { %v5562_v55 = vpop.f32.mrb[88].mxu1  ;;  %v5498_v17 = vpop.f32.mrb[88].mxu0 }
 0x1bb   : > { %v5563_v35 = vpop.f32.mrb[89].mxu1  ;;  %v5499_v5 = vpop.f32.mrb[89].mxu0 }
 0x1bc   : > { %v5564_v2 = vadd.f32 %v5563_v35, %v5562_v55  ;;  %v5565_v4 = vpop.f32.mrb[90].mxu1  ;;  %v5500_v38 = vadd.f32 %v5499_v5, %v5498_v17  ;;  %v5501_v25 = vpop.f32.mrb[90].mxu0 }
 0x1bd   : > { %v5566_v57 = vpop.f32.mrb[91].mxu1  ;;  %v5502_v42 = vpop.f32.mrb[91].mxu0 }
 0x1be   : > { %v5567_v22 = vadd.f32 %v5566_v57, %v5565_v4  ;;  %v7520_v28 = vadd.f32 %v5564_v2, %v7432_v29  ;;  %v7526_v7 = vadd.f32 %v5500_v38, %v7424_v15  ;;  %v5503_v6 = vadd.f32 %v5502_v42, %v5501_v25 }
 0x1c0   : > { %v7523_v52 = vadd.f32 %v5567_v22, %v7435_v49  ;;  %v7529_v24 = vadd.f32 %v5503_v6, %v7429_v8 }
 0x1c2   : > { %v5568_v3 = vpop.f32.mrb[92].mxu1 }
 0x1c3   : > { %v5569_v19 = vpop.f32.mrb[93].mxu1  ;;  %v5504_v14 = vpop.f32.mrb[92].mxu0 }
 0x1c4   : > { %v5570_v62 = vadd.f32 %v5569_v19, %v5568_v3  ;;  %v5571_v34 = vpop.f32.mrb[94].mxu1  ;;  %v5505_v46 = vpop.f32.mrb[93].mxu0 }
 0x1c5   : > { %v5572_v29 = vpop.f32.mrb[95].mxu1  ;;  %v5506_v49 = vadd.f32 %v5505_v46, %v5504_v14  ;;  %v5507_v48 = vpop.f32.mrb[94].mxu0 }
 0x1c6   : > { %v5573_v10 = vadd.f32 %v5572_v29, %v5571_v34  ;;  %v7532_v1 = vadd.f32 %v5570_v62, %v7442_v23  ;;  %v5508_v54 = vpop.f32.mrb[95].mxu0 }
 0x1c7   : > { %v7538_v8 = vadd.f32 %v5506_v49, %v7437_v21  ;;  %v5509_v45 = vadd.f32 %v5508_v54, %v5507_v48 }
 0x1c8   : > { %v7535_v15 = vadd.f32 %v5573_v10, %v7445_v33 }
 0x1c9   : > { %v7541_v53 = vadd.f32 %v5509_v45, %v7439_v37 }
 0x1cb   : > { %v5574_v59 = vpop.f32.mrb[96].mxu1 }
 0x1cc   : > { %v5575_v56 = vpop.f32.mrb[97].mxu1 }
 0x1cd   : > { %v5576_v41 = vadd.f32 %v5575_v56, %v5574_v59  ;;  %v5577_v55 = vpop.f32.mrb[98].mxu1 }
 0x1ce   : > { %v5510_v27 = vpop.f32.mrb[96].mxu0  ;;  %v5578_v35 = vpop.f32.mrb[99].mxu1 }
 0x1cf   : > { %v5511_v23 = vpop.f32.mrb[97].mxu0  ;;  %v5579_v17 = vadd.f32 %v5578_v35, %v5577_v55  ;;  %v7544_v33 = vadd.f32 %v5576_v41, %v7454_v47 }
 0x1d0   : > { %v5512_v2 = vadd.f32 %v5511_v23, %v5510_v27  ;;  %v5513_v4 = vpop.f32.mrb[98].mxu0 }
 0x1d1   : > { %v5514_v57 = vpop.f32.mrb[99].mxu0  ;;  %v7550_v37 = vadd.f32 %v5579_v17, %v7457_v13 }
 0x1d2   : > { %v7547_v21 = vadd.f32 %v5512_v2, %v7448_v32  ;;  %v5515_v5 = vadd.f32 %v5514_v57, %v5513_v4 }
 0x1d4   : > { %v7553_v22 = vadd.f32 %v5515_v5, %v7451_v61 }
 0x1d5   : > { %v5580_v38 = vpop.f32.mrb[100].mxu1 }
 0x1d6   : > { %v5581_v25 = vpop.f32.mrb[101].mxu1 }
 0x1d7   : > { %v5582_v42 = vadd.f32 %v5581_v25, %v5580_v38  ;;  %v5583_v6 = vpop.f32.mrb[102].mxu1 }
 0x1d8   : > { %v5516_v3 = vpop.f32.mrb[100].mxu0  ;;  %v5584_v19 = vpop.f32.mrb[103].mxu1 }
 0x1d9   : > { %v5517_v62 = vpop.f32.mrb[101].mxu0  ;;  %v5585_v47 = vadd.f32 %v5584_v19, %v5583_v6  ;;  %v7556_v34 = vadd.f32 %v5582_v42, %v7466_v63 }
 0x1da   : > { %v5518_v32 = vadd.f32 %v5517_v62, %v5516_v3  ;;  %v5519_v14 = vpop.f32.mrb[102].mxu0 }
 0x1db   : > { %v5520_v29 = vpop.f32.mrb[103].mxu0  ;;  %v7559_v13 = vadd.f32 %v5585_v47, %v7469_v58 }
 0x1dc   : > { %v7562_v61 = vadd.f32 %v5518_v32, %v7460_v0  ;;  %v5521_v46 = vadd.f32 %v5520_v29, %v5519_v14 }
 0x1de   : > { %v7565_v10 = vadd.f32 %v5521_v46, %v7463_v11 }
 0x1e5   : > { %v5586_v49 = vpop.f32.mrb[104].mxu1 }
 0x1e6   : > { %v5587_v48 = vpop.f32.mrb[105].mxu1  ;;  %v5522_v54 = vpop.f32.mrb[104].mxu0 }
 0x1e7   : > { %v5588_v45 = vadd.f32 %v5587_v48, %v5586_v49  ;;  %v5589_v59 = vpop.f32.mrb[106].mxu1  ;;  %v5523_v63 = vpop.f32.mrb[105].mxu0 }
 0x1e8   : > { %v5590_v56 = vpop.f32.mrb[107].mxu1  ;;  %v5524_v27 = vadd.f32 %v5523_v63, %v5522_v54  ;;  %v5525_v41 = vpop.f32.mrb[106].mxu0 }
 0x1e9   : > { %v5591_v55 = vadd.f32 %v5590_v56, %v5589_v59  ;;  %v7568_v58 = vadd.f32 %v5588_v45, %v7478_v60  ;;  %v5526_v0 = vpop.f32.mrb[107].mxu0 }
 0x1ea   : > { %v7571_v23 = vadd.f32 %v5524_v27, %v7472_v40  ;;  %v5527_v11 = vadd.f32 %v5526_v0, %v5525_v41 }
 0x1eb   : > { %v7574_v35 = vadd.f32 %v5591_v55, %v7484_v50 }
 0x1ec   : > { %v7577_v2 = vadd.f32 %v5527_v11, %v7475_v9 }
 0x1ee   : > { %v5592_v4 = vpop.f32.mrb[108].mxu1 }
 0x1ef   : > { %v5593_v17 = vpop.f32.mrb[109].mxu1 }
 0x1f0   : > { %v5528_v57 = vpop.f32.mrb[108].mxu0  ;;  %v5594_v5 = vadd.f32 %v5593_v17, %v5592_v4  ;;  %v5595_v38 = vpop.f32.mrb[110].mxu1 }
 0x1f1   : > { %v5529_v60 = vpop.f32.mrb[109].mxu0  ;;  %v5596_v25 = vpop.f32.mrb[111].mxu1 }
 0x1f2   : > { %v5530_v42 = vadd.f32 %v5529_v60, %v5528_v57  ;;  %v5531_v6 = vpop.f32.mrb[110].mxu0  ;;  %v5597_v3 = vadd.f32 %v5596_v25, %v5595_v38  ;;  %v7581_v40 = vadd.f32 %v5594_v5, %v7490_v31 }
 0x1f3   : > { %v5532_v50 = vpop.f32.mrb[111].mxu0 }
 0x1f4   : > { %v7584_v19 = vadd.f32 %v5530_v42, %v7481_v16  ;;  %v5533_v9 = vadd.f32 %v5532_v50, %v5531_v6  ;;  %v7587_v62 = vadd.f32 %v5597_v3, %v7493_v12 }
 0x1f6   : > { %v7592_v47 = vadd.f32 %v5533_v9, %v7487_v43  ;;  %v5598_v32 = vpop.f32.mrb[112].mxu1 }
 0x1f7   : > { %v5599_v14 = vpop.f32.mrb[113].mxu1 }
 0x1f8   : > { %v5688_v29 = vpop.f32.mrb[112].mxu0  ;;  %v5600_v46 = vadd.f32 %v5599_v14, %v5598_v32  ;;  %v5601_v49 = vpop.f32.mrb[114].mxu1 }
 0x1f9   : > { %v4415_v31 = vadd.f32 %v5688_v29, %v7508_v39  ;;  %v4406_v48 = vpop.f32.mrb[113].mxu0  ;;  %v5602_v54 = vpop.f32.mrb[115].mxu1 }
 0x1fa   : > { %v4407_v16 = vadd.f32 %v4406_v48, %v7496_v51  ;;  %v5689_v45 = vpop.f32.mrb[114].mxu0  ;;  %v5603_v59 = vadd.f32 %v5602_v54, %v5601_v49  ;;  %v7597_v12 = vadd.f32 %v5600_v46, %v7499_v20 }
 0x1fb   : > { %4535 = vst [vmem:[%s7599_s8 + $0x10] sm:$0xff] %v4415_v31  ;;  %v4418_v43 = vadd.f32 %v5689_v45, %v7511_v30  ;;  %v4409_v39 = vpop.f32.mrb[115].mxu0 }
 0x1fc   : > { %4533 = vst [vmem:[%s7599_s8] sm:$0xff] %v4407_v16  ;;  %v4410_v63 = vadd.f32 %v4409_v39, %v7502_v44  ;;  %v7606_v51 = vadd.f32 %v5603_v59, %v7505_v36 }
 0x1fd   : > { %4536 = vst [vmem:[%s7599_s8 + $0x18] sm:$0xff] %v4418_v43 }
 0x1fe   : > { %4534 = vst [vmem:[%s7599_s8 + $0x8] sm:$0xff] %v4410_v63 }
 0x200   : > { %v5604_v20 = vpop.f32.mrb[116].mxu1  ;;  %v5692_v56 = vpop.f32.mrb[116].mxu0 }
 0x201   : > { %v4431_v27 = vadd.f32 %v5692_v56, %v7532_v1  ;;  %v5605_v41 = vpop.f32.mrb[117].mxu1  ;;  %v4422_v55 = vpop.f32.mrb[117].mxu0 }
 0x202   : > { %v5606_v30 = vadd.f32 %v5605_v41, %v5604_v20  ;;  %v4423_v0 = vadd.f32 %v4422_v55, %v7520_v28  ;;  %v5607_v11 = vpop.f32.mrb[118].mxu1  ;;  %v5693_v4 = vpop.f32.mrb[118].mxu0 }
 0x203   : > { %4539 = vst [vmem:[%s7599_s8 + $0x30] sm:$0xff] %v4431_v27  ;;  %v4434_v44 = vadd.f32 %v5693_v4, %v7535_v15  ;;  %v5608_v36 = vpop.f32.mrb[119].mxu1  ;;  %v4425_v17 = vpop.f32.mrb[119].mxu0 }
 0x204   : > { %4537 = vst [vmem:[%s7599_s8 + $0x20] sm:$0xff] %v4423_v0  ;;  %v5609_v57 = vadd.f32 %v5608_v36, %v5607_v11  ;;  %v4426_v5 = vadd.f32 %v4425_v17, %v7523_v52  ;;  %v4318_v1 = vadd.f32 %v5606_v30, %v7514_v26 }
 0x205   : > { %4540 = vst [vmem:[%s7599_s8 + $0x38] sm:$0xff] %v4434_v44 }
 0x206   : > { %4538 = vst [vmem:[%s7599_s8 + $0x28] sm:$0xff] %v4426_v5  ;;  %v4321_v38 = vadd.f32 %v5609_v57, %v7517_v18 }
 0x208   : > { %v5696_v28 = vpop.f32.mrb[120].mxu0  ;;  %v5610_v60 = vpop.f32.mrb[120].mxu1 }
 0x209   : > { %v4447_v25 = vadd.f32 %v5696_v28, %v7556_v34  ;;  %v4438_v15 = vpop.f32.mrb[121].mxu0  ;;  %v5611_v42 = vpop.f32.mrb[121].mxu1 }
 0x20a   : > { %v4439_v6 = vadd.f32 %v4438_v15, %v7544_v33  ;;  %v5697_v3 = vpop.f32.mrb[122].mxu0  ;;  %v5612_v52 = vadd.f32 %v5611_v42, %v5610_v60  ;;  %v5613_v50 = vpop.f32.mrb[122].mxu1 }
 0x20b   : > { %4543 = vst [vmem:[%s7599_s8 + $0x50] sm:$0xff] %v4447_v25  ;;  %v4450_v26 = vadd.f32 %v5697_v3, %v7559_v13  ;;  %v4441_v9 = vpop.f32.mrb[123].mxu0  ;;  %v5614_v32 = vpop.f32.mrb[123].mxu1 }
 0x20c   : > { %4541 = vst [vmem:[%s7599_s8 + $0x40] sm:$0xff] %v4439_v6  ;;  %v4442_v18 = vadd.f32 %v4441_v9, %v7550_v37  ;;  %v5615_v14 = vadd.f32 %v5614_v32, %v5613_v50  ;;  %v4326_v34 = vadd.f32 %v5612_v52, %v7526_v7 }
 0x20d   : > { %4544 = vst [vmem:[%s7599_s8 + $0x58] sm:$0xff] %v4450_v26 }
 0x20e   : > { %4542 = vst [vmem:[%s7599_s8 + $0x48] sm:$0xff] %v4442_v18  ;;  %v4329_v33 = vadd.f32 %v5615_v14, %v7529_v24 }
 0x212   : > { %v5616_v29 = vpop.f32.mrb[124].mxu1  ;;  %v5700_v46 = vpop.f32.mrb[124].mxu0 }
 0x213   : > { %v4463_v49 = vadd.f32 %v5700_v46, %v7581_v40  ;;  %v5617_v13 = vpop.f32.mrb[125].mxu1  ;;  %v4454_v31 = vpop.f32.mrb[125].mxu0 }
 0x214   : > { %v5618_v48 = vadd.f32 %v5617_v13, %v5616_v29  ;;  %v4455_v54 = vadd.f32 %v4454_v31, %v7568_v58  ;;  %v5619_v37 = vpop.f32.mrb[126].mxu1  ;;  %v5701_v16 = vpop.f32.mrb[126].mxu0 }
 0x215   : > { %4547 = vst [vmem:[%s7599_s8 + $0x70] sm:$0xff] %v4463_v49  ;;  %v4466_v7 = vadd.f32 %v5701_v16, %v7587_v62  ;;  %v5620_v45 = vpop.f32.mrb[127].mxu1  ;;  %v4457_v59 = vpop.f32.mrb[127].mxu0 }
 0x216   : > { %4545 = vst [vmem:[%s7599_s8 + $0x60] sm:$0xff] %v4455_v54  ;;  %v5621_v24 = vadd.f32 %v5620_v45, %v5619_v37  ;;  %v4458_v43 = vadd.f32 %v4457_v59, %v7574_v35  ;;  %v4334_v40 = vadd.f32 %v5618_v48, %v7538_v8 }
 0x217   : > { %4548 = vst [vmem:[%s7599_s8 + $0x78] sm:$0xff] %v4466_v7 }
 0x218   : > { %4546 = vst [vmem:[%s7599_s8 + $0x68] sm:$0xff] %v4458_v43  ;;  %v4337_v58 = vadd.f32 %v5621_v24, %v7541_v53 }
 0x21a   : > { %v5704_v39 = vpop.f32.mrb[128].mxu0 }
 0x21b   : > { %v4479_v63 = vadd.f32 %v5704_v39, %v4318_v1  ;;  %v4470_v20 = vpop.f32.mrb[129].mxu0 }
 0x21c   : > { %v5622_v62 = vpop.f32.mrb[128].mxu1  ;;  %v4471_v56 = vadd.f32 %v4470_v20, %v7597_v12  ;;  %v5705_v27 = vpop.f32.mrb[130].mxu0 }
 0x21d   : > { %4551 = vst [vmem:[%s7599_s8 + $0x90] sm:$0xff] %v4479_v63  ;;  %v5623_v41 = vpop.f32.mrb[129].mxu1  ;;  %v4482_v55 = vadd.f32 %v5705_v27, %v4321_v38  ;;  %v4473_v35 = vpop.f32.mrb[131].mxu0 }
 0x21e   : > { %v5624_v30 = vadd.f32 %v5623_v41, %v5622_v62  ;;  %4549 = vst [vmem:[%s7599_s8 + $0x80] sm:$0xff] %v4471_v56  ;;  %v5625_v8 = vpop.f32.mrb[130].mxu1  ;;  %v4474_v0 = vadd.f32 %v4473_v35, %v7606_v51 }
 0x21f   : > { %4552 = vst [vmem:[%s7599_s8 + $0x98] sm:$0xff] %v4482_v55  ;;  %v5626_v53 = vpop.f32.mrb[131].mxu1 }
 0x220   : > { %v5627_v11 = vadd.f32 %v5626_v53, %v5625_v8  ;;  %4550 = vst [vmem:[%s7599_s8 + $0x88] sm:$0xff] %v4474_v0  ;;  %v4342_v4 = vadd.f32 %v5624_v30, %v7547_v21 }
 0x222   : > { %v4345_v12 = vadd.f32 %v5627_v11, %v7553_v22 }
 0x223   : > { %v5708_v44 = vpop.f32.mrb[132].mxu0 }
 0x224   : > { %v5628_v36 = vpop.f32.mrb[132].mxu1  ;;  %v4495_v17 = vadd.f32 %v5708_v44, %v4334_v40  ;;  %v4486_v57 = vpop.f32.mrb[133].mxu0 }
 0x225   : > { %v5629_v5 = vpop.f32.mrb[133].mxu1  ;;  %v4487_v1 = vadd.f32 %v4486_v57, %v4326_v34  ;;  %v5709_v38 = vpop.f32.mrb[134].mxu0 }
 0x226   : > { %4555 = vst [vmem:[%s7599_s8 + $0xb0] sm:$0xff] %v4495_v17  ;;  %v5630_v51 = vadd.f32 %v5629_v5, %v5628_v36  ;;  %v5631_v28 = vpop.f32.mrb[134].mxu1  ;;  %v4498_v60 = vadd.f32 %v5709_v38, %v4337_v58  ;;  %v4489_v25 = vpop.f32.mrb[135].mxu0 }
 0x227   : > { %4553 = vst [vmem:[%s7599_s8 + $0xa0] sm:$0xff] %v4487_v1  ;;  %v5632_v15 = vpop.f32.mrb[135].mxu1  ;;  %v4490_v21 = vadd.f32 %v4489_v25, %v4329_v33 }
 0x228   : > { %4556 = vst [vmem:[%s7599_s8 + $0xb8] sm:$0xff] %v4498_v60  ;;  %v5633_v22 = vadd.f32 %v5632_v15, %v5631_v28  ;;  %v4350_v42 = vadd.f32 %v5630_v51, %v7562_v61 }
 0x229   : > { %4554 = vst [vmem:[%s7599_s8 + $0xa8] sm:$0xff] %v4490_v21 }
 0x22a   : > { %v4353_v6 = vadd.f32 %v5633_v22, %v7565_v10 }
 0x22d   : > { %v5712_v52 = vpop.f32.mrb[136].mxu0 }
 0x22e   : > { %v5634_v3 = vpop.f32.mrb[136].mxu1  ;;  %v4511_v50 = vadd.f32 %v5712_v52, %v4350_v42  ;;  %v4502_v9 = vpop.f32.mrb[137].mxu0 }
 0x22f   : > { %v5635_v26 = vpop.f32.mrb[137].mxu1  ;;  %v4503_v18 = vadd.f32 %v4502_v9, %v4342_v4  ;;  %v5713_v34 = vpop.f32.mrb[138].mxu0 }
 0x230   : > { %v5636_v32 = vadd.f32 %v5635_v26, %v5634_v3  ;;  %v5637_v14 = vpop.f32.mrb[138].mxu1  ;;  %4559 = vst [vmem:[%s7599_s8 + $0xd0] sm:$0xff] %v4511_v50  ;;  %v4514_v33 = vadd.f32 %v5713_v34, %v4353_v6  ;;  %v4505_v46 = vpop.f32.mrb[139].mxu0 }
 0x231   : > { %v5638_v29 = vpop.f32.mrb[139].mxu1  ;;  %4557 = vst [vmem:[%s7599_s8 + $0xc0] sm:$0xff] %v4503_v18  ;;  %v4506_v49 = vadd.f32 %v4505_v46, %v4345_v12 }
 0x232   : > { %v5639_v61 = vadd.f32 %v5638_v29, %v5637_v14  ;;  %v4358_v10 = vadd.f32 %v5636_v32, %v7571_v23  ;;  %4560 = vst [vmem:[%s7599_s8 + $0xd8] sm:$0xff] %v4514_v33 }
 0x233   : > { %4558 = vst [vmem:[%s7599_s8 + $0xc8] sm:$0xff] %v4506_v49 }
 0x234   : > { %v4361_v13 = vadd.f32 %v5639_v61, %v7577_v2 }
 0x236   : > { %v5716_v31 = vpop.f32.mrb[140].mxu0 }
 0x237   : > { %v5640_v48 = vpop.f32.mrb[140].mxu1  ;;  %v4518_v54 = vpop.f32.mrb[141].mxu0 }
 0x238   : > { %v5641_v37 = vpop.f32.mrb[141].mxu1  ;;  %v4519_v16 = vadd.f32 %v4518_v54, %v4358_v10  ;;  %v5717_v7 = vpop.f32.mrb[142].mxu0 }
 0x239   : > { %v5642_v45 = vadd.f32 %v5641_v37, %v5640_v48  ;;  %v5643_v59 = vpop.f32.mrb[142].mxu1  ;;  %v4521_v24 = vpop.f32.mrb[143].mxu0 }
 0x23a   : > { %4561 = vst [vmem:[%s7599_s8 + $0xe0] sm:$0xff] %v4519_v16  ;;  %v5644_v23 = vpop.f32.mrb[143].mxu1  ;;  %v4522_v43 = vadd.f32 %v4521_v24, %v4361_v13 }
 0x23b   : > { %v4366_v2 = vadd.f32 %v5642_v45, %v7584_v19  ;;  %v5645_v40 = vadd.f32 %v5644_v23, %v5643_v59 }
 0x23c   : > { %4562 = vst [vmem:[%s7599_s8 + $0xe8] sm:$0xff] %v4522_v43 }
 0x23d   : > { %v4527_v58 = vadd.f32 %v5716_v31, %v4366_v2  ;;  %v4369_v39 = vadd.f32 %v5645_v40, %v7592_v47 }
 0x23f   : > { %4563 = vst [vmem:[%s7599_s8 + $0xf0] sm:$0xff] %v4527_v58  ;;  %v4530_v63 = vadd.f32 %v5717_v7, %v4369_v39 }
 0x241   : > { %4564 = vst [vmem:[%s7599_s8 + $0xf8] sm:$0xff] %v4530_v63 }
 0x242   : > { %5925 = shalt.err (!%p5922_p5)
}
 0x243   : > { %s5926_s29 = scalar_lea.hbm %s7669_s23, 4096  ;;  %s5930_s4 = scalar_lea.hbm %s7725_s2, 8192 }
 0x244   : > { %p5927_p6 = scmp.ne.s32.totalorder %s7669_s23, %s5926_s29  ;;  %p5931_p10 = scmp.lt.u32.totalorder %s7669_s23, %s7725_s2 }
 0x245   : > { %p5932_p11 = scmp.lt.u32.totalorder %s5930_s4, %s5926_s29  ;;  %p5934_p13 = scmp.lt.u32.totalorder %s5926_s29, %s7669_s23 }
 0x246   : > { %p5928_p7 = pnand %p5927_p6, %p6050_p4 }
 0x247   : > { %p5933_p12 = por %p5932_p11, %p5931_p10 }
 0x248   : > { %p5929_p9 = pneg %p5928_p7 }
 0x249   : > { %p5935_p0 = por %p5934_p13, %p5933_p12 }
 0x24b   : > { %p5936_p1 = pnand %p5935_p0, %p5929_p9 }
 0x24d   : > { %5939 = shalt.err (!%p5936_p1)
}
 0x24e   : > { %s5993_s27 = smov 128   ;;  %s5994_s7 = smov 8  }
 0x24f   : > { %5735 = dma.vmem_to_hbm [thread:$0]  (%p6050_p4), %s7671_s16, 4096, %s7669_s23, %s7677_s12, %s5993_s27, %s5993_s27, %s5994_s7  }
 0x250 PF: > { %p5741_p2 = scmp.ge.s32.totalorder %s5990_s14, 2  ;;  %s4597_s8 = sand.u32 1, %s5970_s9  }
 0x251   : > { %s4598_s15 = scalar_lea.sflag [#allocation4], %s4597_s8 }
 0x252   : > { %p5738_p3 = pnand %p5741_p2, %p6057_p8 }
 0x254   : > { %5965 = dma.done.wait (!%p5738_p3), %s4598_s15, 4096  }
 0x255   : > { %5967 = vsyncadd (!%p5738_p3), %s4598_s15, 4294963200  ;;  %s15_s14 = sadd.s32 1, %s5990_s14   ;;  %s7768_s9 = smov %s5974_s10 }
 0x256   : > { %p12_p5 = scmp.ge.s32.totalorder %s15_s14, 4   ;;  %s7769_s10 = smov %s5978_s11 }
 0x257   : > { %s7770_s11 = smov %s6063_s22  ;;  %s7771_s12 = smov %s5986_s13 }
 0x258   : > { %s7772_s13 = smov %s7774_s17  ;;  %14 = sbr.rel (!%p12_p5) target bundleno = 4 (0x4), region = 66 }
 0x25f   :  { %4603 = vsyncpa [#allocation4], 1 }
 0x260   :  { %4605 = vsyncpa [#allocation4 + $0x1], 1 }

</bundles_post_ra>
